<compile_context>
chip_gen: v7x
topology: tpu7x:2x2x1
jax: 0.10.0
libtpu: 0.0.40
codegen_flags: <defaults>
</compile_context>

<pallas_src>
import functools

import jax
import jax.numpy as jnp
from jax.experimental import pallas as pl
from jax.experimental.pallas import tpu as pltpu


def _round_up(x, m):
    return ((x + m - 1) // m) * m


# --------------------------- bilinear upsample (align_corners=True) ---------------------------


def _interp_matrix(out_size, in_size):
    # Linear interpolation matrix, align_corners=True semantics.
    if out_size == 1:
        src = jnp.zeros((1,), jnp.float32)
    else:
        src = jnp.arange(out_size, dtype=jnp.float32) * ((in_size - 1) / (out_size - 1))
    i0 = jnp.clip(jnp.floor(src).astype(jnp.int32), 0, in_size - 1)
    i1 = jnp.clip(i0 + 1, 0, in_size - 1)
    frac = src - i0.astype(jnp.float32)
    rows = jnp.arange(out_size)
    m = jnp.zeros((out_size, in_size), jnp.float32)
    m = m.at[rows, i0].add(1.0 - frac)
    m = m.at[rows, i1].add(frac)
    return m


def _interp_kernel(x_ref, u_ref, o_ref):
    # x_ref: (1, in, L), u_ref: (out, in), o_ref: (1, out, L) ; L = spatial * Cpad (lane dense)
    o_ref[0] = jnp.dot(u_ref[...], x_ref[0], preferred_element_type=jnp.float32)


def _apply_interp(x3, u):
    # x3: (N, in, L) f32, u: (out, in) -> (N, out, L)
    n, in_sz, lanes = x3.shape
    out_sz = u.shape[0]
    return pl.pallas_call(
        _interp_kernel,
        out_shape=jax.ShapeDtypeStruct((n, out_sz, lanes), jnp.float32),
        grid=(n,),
        in_specs=[
            pl.BlockSpec((1, in_sz, lanes), lambda i: (i, 0, 0)),
            pl.BlockSpec((out_sz, in_sz), lambda i: (0, 0)),
        ],
        out_specs=pl.BlockSpec((1, out_sz, lanes), lambda i: (i, 0, 0)),
        compiler_params=pltpu.CompilerParams(dimension_semantics=("parallel",)),
    )(x3, u)


def bilinear_upsample_nhwc(x_nchw, out_hw, c_pad):
    """(N, C, h, w) -> (N, H, W, c_pad) channels-last, bilinear, align_corners=True."""
    n, c, h, w = x_nchw.shape
    big_h, big_w = out_hw
    uh = _interp_matrix(big_h, h)   # (H, h)
    uw = _interp_matrix(big_w, w)   # (W, w)
    # channels onto lanes (padded); small wrapper-side layout change on the coarse map only
    xc = jnp.transpose(x_nchw, (0, 3, 2, 1)).astype(jnp.float32)          # (N, w, h, C)
    xc = jnp.pad(xc, ((0, 0), (0, 0), (0, 0), (0, c_pad - c)))            # (N, w, h, Cp)
    t = _apply_interp(xc.reshape(n, w, h * c_pad), uw)                    # (N, W, h*Cp)
    t = t.reshape(n, big_w, h, c_pad).transpose(0, 2, 1, 3).reshape(n, h, big_w * c_pad)
    o = _apply_interp(t, uh)                                              # (N, H, W*Cp)
    return o.reshape(n, big_h, big_w, c_pad)


# --------------------- fused conv3x3 (+ prev-layer BN/ReLU on load) + BN stats ---------------------


def _conv_bn_relu_stats_kernel(prev_ref, cent_ref, next_ref, mw_ref,
                               scale_ref, shift_ref, w_ref,
                               out_ref, stats_ref, win_ref,
                               *, tr, halo, wp, apply_act):
    """One (batch, row-tile) step.

    prev/cent/next_ref : (1, tr, Cin_pad) f32   row blocks t-1, t, t+1 (clamped) of the
                         padded-flat activation (raw conv output of the previous layer,
                         or the layer-0 input).
    mw_ref             : (1, tr + 2*halo, 1) f32 validity mask of the halo'd window rows.
    scale/shift_ref    : (1, Cin_pad) f32       previous layer's folded BN affine.
    w_ref              : (9, Cin_pad, Cout_pad) bf16, tap-major 3x3 weights.
    out_ref            : (1, tr, Cout_pad) f32  raw conv output (masked: padding rows = 0).
    stats_ref          : (1, 1, 8, Cout_pad)    rows 0/1 = per-tile sum / sum-of-squares.
    win_ref            : VMEM scratch (tr + 2*halo, Cin_pad) f32, the assembled window.
    """
    mw = mw_ref[0]                                   # (tr + 2*halo, 1)

    def xform(v, m):
        # Fused input transform: previous layer's BN affine + ReLU, then zero out the
        # spatial zero-padding ring / out-of-range halo rows (mask m).
        v = v.astype(jnp.float32)
        if apply_act:
            v = jnp.maximum(v * scale_ref[...] + shift_ref[...], 0.0)
        return v * m

    # Assemble the halo'd row window: [last `halo` rows of block t-1 | block t | first
    # `halo` rows of block t+1].  Where the clamped neighbour data is wrong (t==0 /
    # t==last) the mask is 0, so the window is exact everywhere that matters.
    win_ref[0:halo, :] = xform(prev_ref[0, tr - halo:tr, :], mw[0:halo])
    win_ref[halo:halo + tr, :] = xform(cent_ref[0], mw[halo:halo + tr])
    win_ref[halo + tr:halo + tr + halo, :] = xform(next_ref[0, 0:halo, :],
                                                   mw[halo + tr:halo + tr + halo])

    # 3x3 conv = 9 accumulating MXU matmuls over row-shifted slices of the window.
    # Tap (dh, dw) of the padded-flat layout is a constant row offset dh*Wp + dw.
    acc = None
    for dh in range(3):
        for dw in range(3):
            s0 = dh * wp + dw
            lhs = win_ref[s0:s0 + tr, :].astype(jnp.bfloat16)     # bf16 MXU operands
            part = jnp.dot(lhs, w_ref[dh * 3 + dw], preferred_element_type=jnp.float32)
            acc = part if acc is None else acc + part

    y = acc * mw[halo:halo + tr]          # zero padding / fake rows -> keeps stats exact
    out_ref[0] = y

    # Per-(n, tile) partial BN statistics (reduced in the wrapper) -> grid fully parallel.
    coutp = out_ref.shape[-1]
    stats_ref[0, 0, 0:1, :] = jnp.sum(y, axis=0, keepdims=True)
    stats_ref[0, 0, 1:2, :] = jnp.sum(y * y, axis=0, keepdims=True)
    stats_ref[0, 0, 2:8, :] = jnp.zeros((6, coutp), jnp.float32)


def conv3x3_bn_stats(a_in, mw, w9, scale_in, shift_in, *, apply_act, tr, halo, wp, coutp):
    n, tot, cpin = a_in.shape
    n_tiles = tot // tr
    kern = functools.partial(_conv_bn_relu_stats_kernel,
                             tr=tr, halo=halo, wp=wp, apply_act=apply_act)
    out, stats = pl.pallas_call(
        kern,
        out_shape=(
            jax.ShapeDtypeStruct((n, tot, coutp), jnp.float32),
            jax.ShapeDtypeStruct((n, n_tiles, 8, coutp), jnp.float32),
        ),
        grid=(n, n_tiles),
        in_specs=[
            pl.BlockSpec((1, tr, cpin), lambda b, t: (b, jnp.maximum(t - 1, 0), 0)),
            pl.BlockSpec((1, tr, cpin), lambda b, t: (b, t, 0)),
            pl.BlockSpec((1, tr, cpin),
                         lambda b, t: (b, jnp.minimum(t + 1, n_tiles - 1), 0)),
            pl.BlockSpec((1, tr + 2 * halo, 1), lambda b, t: (t, 0, 0)),
            pl.BlockSpec((1, cpin), lambda b, t: (0, 0)),
            pl.BlockSpec((1, cpin), lambda b, t: (0, 0)),
            pl.BlockSpec((9, cpin, coutp), lambda b, t: (0, 0, 0)),
        ],
        out_specs=(
            pl.BlockSpec((1, tr, coutp), lambda b, t: (b, t, 0)),
            pl.BlockSpec((1, 1, 8, coutp), lambda b, t: (b, t, 0, 0)),
        ),
        scratch_shapes=[pltpu.VMEM((tr + 2 * halo, cpin), jnp.float32)],
        compiler_params=pltpu.CompilerParams(
            dimension_semantics=("parallel", "parallel"),
            vmem_limit_bytes=32 * 1024 * 1024,
        ),
    )(a_in, a_in, a_in, mw, scale_in, shift_in, w9)
    return out, stats


# ----------------------------- final BN + ReLU epilogue -----------------------------


def _bn_relu_kernel(x_ref, scale_ref, shift_ref, o_ref):
    o_ref[0] = jnp.maximum(x_ref[0] * scale_ref[...] + shift_ref[...], 0.0)


def bn_relu_apply(a, scale, shift, *, tr):
    n, tot, c = a.shape
    n_tiles = tot // tr
    return pl.pallas_call(
        _bn_relu_kernel,
        out_shape=jax.ShapeDtypeStruct((n, tot, c), jnp.float32),
        grid=(n, n_tiles),
        in_specs=[
            pl.BlockSpec((1, tr, c), lambda b, t: (b, t, 0)),
            pl.BlockSpec((1, c), lambda b, t: (0, 0)),
            pl.BlockSpec((1, c), lambda b, t: (0, 0)),
        ],
        out_specs=pl.BlockSpec((1, tr, c), lambda b, t: (b, t, 0)),
        compiler_params=pltpu.CompilerParams(dimension_semantics=("parallel", "parallel")),
    )(a, scale, shift)


# --------------------------------------- decoder ---------------------------------------


def decoder_forward(x_big, x, params, *, eps=1e-5, row_tile=512):
    """Decoder.forward: x_big (N, Cb, H, W), x (N, Cs, h, w) -> (N, Cout, H, W)."""
    assert len(params) >= 1
    n, cb, big_h, big_w = x_big.shape
    _, cs, _, _ = x.shape
    hp, wp = big_h + 2, big_w + 2
    hpwp = hp * wp
    halo = wp + 1

    # Row tile: multiple of 8 sublanes, at least one halo wide. Size per generation /
    # VMEM budget (keep input+output+window blocks well under the scoped VMEM limit).
    tr = _round_up(max(int(row_tile), _round_up(halo, 8)), 8)
    tot = _round_up(hpwp, tr)
    n_tiles = tot // tr

    cin0 = cs + cb
    cp0 = _round_up(cin0, 128)    # lane-pad channels -> dense stores / full MXU columns

    # ---- layer-0 input: upsample + "concat" placed once into the padded-flat buffer ----
    ups = bilinear_upsample_nhwc(x, (big_h, big_w), cp0)            # (N, H, W, cp0)
    big = jnp.transpose(x_big, (0, 2, 3, 1)).astype(jnp.float32)    # (N, H, W, cb)
    interior = ups.at[..., cs:cs + cb].set(big)                     # channel order: [ups | big]
    a = jnp.pad(interior, ((0, 0), (1, 1), (1, 1), (0, 0)))         # (N, hp, wp, cp0)
    a = a.reshape(n, hpwp, cp0)
    a = jnp.pad(a, ((0, 0), (0, tot - hpwp), (0, 0)))               # (N, tot, cp0)
    # TODO(synk): the layer-0 ingest (and the final interior extraction below) are XLA
    # layout glue; they could be fused into the first/last conv kernels for large shapes.

    # Validity mask per padded-flat row, pre-gathered into per-tile halo windows (tiny).
    p = jnp.arange(tot)
    r = p // wp
    c = p % wp
    mask_flat = ((p < hpwp) & (r >= 1) & (r <= big_h)
                 & (c >= 1) & (c <= big_w)).astype(jnp.float32)
    widx = (jnp.arange(n_tiles) * tr - halo)[:, None] + jnp.arange(tr + 2 * halo)[None, :]
    mw = jnp.where((widx >= 0) & (widx < tot),
                   mask_flat[jnp.clip(widx, 0, tot - 1)], 0.0)[..., None]   # (n_tiles, TRW, 1)

    cnt = float(n * big_h * big_w)
    cpin = cp0
    scale = jnp.zeros((1, cpin), jnp.float32)   # unused on layer 0 (apply_act=False)
    shift = jnp.zeros((1, cpin), jnp.float32)
    apply_act = False
    cout = coutp = None

    for layer in params:
        wt = layer["w"]                          # (cout, cin, 3, 3)
        # NOTE: layer["b"] (conv bias) is intentionally ignored: with train-mode BN it
        # is absorbed by the batch mean and cancels exactly in the normalized output.
        cout, cin = wt.shape[0], wt.shape[1]
        coutp = _round_up(cout, 128)
        w9 = jnp.transpose(wt, (2, 3, 1, 0)).reshape(9, cin, cout)          # tap-major
        w9 = jnp.pad(w9, ((0, 0), (0, cpin - cin), (0, coutp - cout))).astype(jnp.bfloat16)

        # conv (with previous layer's BN+ReLU fused into the input load) + partial stats
        a, stats = conv3x3_bn_stats(a, mw, w9, scale, shift, apply_act=apply_act,
                                    tr=tr, halo=halo, wp=wp, coutp=coutp)

        # fold this layer's train-mode BN into a per-channel affine for the next stage
        ssum = jnp.sum(stats[:, :, 0, :], axis=(0, 1))
        ssq = jnp.sum(stats[:, :, 1, :], axis=(0, 1))
        mean = ssum / cnt
        var = ssq / cnt - mean * mean            # biased variance (train-mode BN)
        # TODO(synk): for very large N*H*W, accumulate variance around a per-channel
        # shift (or Welford) to avoid E[y^2]-E[y]^2 cancellation; fine at these scales.
        g = jnp.pad(layer["gamma"], (0, coutp - cout))
        b = jnp.pad(layer["beta"], (0, coutp - cout))
        sc = g * jax.lax.rsqrt(var + eps)
        sh = b - mean * sc
        scale = sc.reshape(1, coutp)
        shift = sh.reshape(1, coutp)
        cpin = coutp
        apply_act = True

    # last layer's BN + ReLU epilogue, then extract the interior and go back to NCHW
    y = bn_relu_apply(a, scale, shift, tr=tr)                                  # (N, tot, coutp)
    y = y[:, :hpwp, :].reshape(n, hp, wp, coutp)[:, 1:big_h + 1, 1:big_w + 1, :cout]
    return jnp.transpose(y, (0, 3, 1, 2))
    # TODO(synk): BatchNorm running_mean / running_var buffer updates (training side
    # effect) are not modeled; they do not affect the forward output.


# ------------------------------------------ main ------------------------------------------

if __name__ == "__main__":
    key = jax.random.PRNGKey(0)

    N = 2
    C_big, C_small = 4, 4            # concat => input_channels = 8
    H = W = 16
    h = w = 8
    input_channels = C_big + C_small
    output_channels = 4
    depth = 2

    keys = jax.random.split(key, 2 + 4 * depth)
    x_big = jax.random.normal(keys[0], (N, C_big, H, W), jnp.float32)
    x = jax.random.normal(keys[1], (N, C_small, h, w), jnp.float32)

    params = []
    cin = input_channels
    for i in range(depth):
        kw, kb, kg, kbe = keys[2 + 4 * i: 6 + 4 * i]
        bound = 1.0 / float((cin * 9) ** 0.5)
        params.append(dict(
            w=jax.random.uniform(kw, (output_channels, cin, 3, 3), jnp.float32, -bound, bound),
            b=jax.random.uniform(kb, (output_channels,), jnp.float32, -bound, bound),
            gamma=jax.random.uniform(kg, (output_channels,), jnp.float32, 0.5, 1.5),
            beta=0.1 * jax.random.normal(kbe, (output_channels,), jnp.float32),
        ))
        cin = output_channels

    fwd = jax.jit(functools.partial(decoder_forward, row_tile=128))
    out = fwd(x_big, x, params)
    jax.block_until_ready(out)
    assert out.shape == (N, output_channels, H, W)
    print("KERNEL_OK")
</pallas_src>

<mosaic_0001>
module attributes {stable_mosaic.version = 11 : i64} {
  func.func private @main(%arg0: i32) attributes {dimension_semantics = [#tpu.dimension_semantics<core_parallel>], iteration_bounds = array<i64: 2>, tpu.core_type = #tpu.core_type<sc_scalar_subcore>, window_params = []} {
    return
  }
}

module attributes {stable_mosaic.version = 11 : i64} {
  func.func private @main(%arg0: i32) attributes {dimension_semantics = [#tpu.dimension_semantics<core_parallel>], iteration_bounds = array<i64: 2>, tpu.core_type = #tpu.core_type<sc_scalar_subcore>, window_params = []} {
    return
  }
}

module attributes {stable_mosaic.version = 11 : i64} {
  func.func @_interp_kernel(%arg0: i32, %arg1: memref<1x8x2048xf32, #tpu.memory_space<vmem>>, %arg2: memref<16x8xf32, #tpu.memory_space<vmem>>, %arg3: memref<1x16x2048xf32, #tpu.memory_space<vmem>>) attributes {dimension_semantics = [#tpu.dimension_semantics<parallel>], iteration_bounds = array<i64: 2>, scalar_prefetch = 0 : i64, scratch_operands = 0 : i64, tpu.core_type = #tpu.core_type<tc>, window_params = [{transform_indices = @transform_0, window_bounds = array<i64: 1, 8, 2048>}, {pipeline_mode = #tpu.pipeline_mode<synchronous>, transform_indices = @transform_1, window_bounds = array<i64: 16, 8>}, {transform_indices = @transform_2, window_bounds = array<i64: 1, 16, 2048>}]} {
    %c0 = arith.constant 0 : index
    %c0_0 = arith.constant 0 : index
    %0 = vector.load %arg2[%c0, %c0_0] : memref<16x8xf32, #tpu.memory_space<vmem>>, vector<16x8xf32>
    %c0_1 = arith.constant 0 : index
    %c0_2 = arith.constant 0 : index
    %c0_3 = arith.constant 0 : index
    %1 = vector.load %arg1[%c0_1, %c0_2, %c0_3] : memref<1x8x2048xf32, #tpu.memory_space<vmem>>, vector<1x8x2048xf32>
    %2 = vector.shape_cast %1 : vector<1x8x2048xf32> to vector<8x2048xf32>
    %cst = arith.constant dense<0.000000e+00> : vector<16x2048xf32>
    %3 = tpu.matmul %0, %2, %cst {dimension_numbers = #tpu.dot_dimension_numbers<[1], [0], [0], [1], [0, 0, 1, 1], [], []>} : vector<16x8xf32>, vector<8x2048xf32>, vector<16x2048xf32> -> vector<16x2048xf32>
    %c0_4 = arith.constant 0 : index
    %c0_5 = arith.constant 0 : index
    %c0_6 = arith.constant 0 : index
    %4 = vector.load %arg3[%c0_4, %c0_5, %c0_6] : memref<1x16x2048xf32, #tpu.memory_space<vmem>>, vector<1x16x2048xf32>
    %5 = vector.shape_cast %4 : vector<1x16x2048xf32> to vector<16x2048xf32>
    %6 = vector.shape_cast %3 : vector<16x2048xf32> to vector<1x16x2048xf32>
    tpu.vector_store %arg3[%c0_4, %c0_5, %c0_6], %6 {strides = array<i32>} : memref<1x16x2048xf32, #tpu.memory_space<vmem>>, vector<1x16x2048xf32>,
    return
  }
  func.func @transform_0(%arg0: i32) -> (i32, i32, i32) {
    %c0_i32 = arith.constant 0 : i32
    %c0_i32_0 = arith.constant 0 : i32
    %c0_i32_1 = arith.constant 0 : i32
    return %arg0, %c0_i32, %c0_i32_0 : i32, i32, i32
  }
  func.func @transform_1(%arg0: i32) -> (i32, i32) {
    %c0_i32 = arith.constant 0 : i32
    %c0_i32_0 = arith.constant 0 : i32
    %c0_i32_1 = arith.constant 0 : i32
    return %c0_i32, %c0_i32_0 : i32, i32
  }
  func.func @transform_2(%arg0: i32) -> (i32, i32, i32) {
    %c0_i32 = arith.constant 0 : i32
    %c0_i32_0 = arith.constant 0 : i32
    %c0_i32_1 = arith.constant 0 : i32
    return %arg0, %c0_i32, %c0_i32_0 : i32, i32, i32
  }
}

module attributes {stable_mosaic.version = 11 : i64} {
  func.func @_interp_kernel(%arg0: i32, %arg1: memref<1x8x1024xf32, #tpu.memory_space<vmem>>, %arg2: memref<16x8xf32, #tpu.memory_space<vmem>>, %arg3: memref<1x16x1024xf32, #tpu.memory_space<vmem>>) attributes {dimension_semantics = [#tpu.dimension_semantics<parallel>], iteration_bounds = array<i64: 2>, scalar_prefetch = 0 : i64, scratch_operands = 0 : i64, tpu.core_type = #tpu.core_type<tc>, window_params = [{transform_indices = @transform_0, window_bounds = array<i64: 1, 8, 1024>}, {pipeline_mode = #tpu.pipeline_mode<synchronous>, transform_indices = @transform_1, window_bounds = array<i64: 16, 8>}, {transform_indices = @transform_2, window_bounds = array<i64: 1, 16, 1024>}]} {
    %c0 = arith.constant 0 : index
    %c0_0 = arith.constant 0 : index
    %0 = vector.load %arg2[%c0, %c0_0] : memref<16x8xf32, #tpu.memory_space<vmem>>, vector<16x8xf32>
    %c0_1 = arith.constant 0 : index
    %c0_2 = arith.constant 0 : index
    %c0_3 = arith.constant 0 : index
    %1 = vector.load %arg1[%c0_1, %c0_2, %c0_3] : memref<1x8x1024xf32, #tpu.memory_space<vmem>>, vector<1x8x1024xf32>
    %2 = vector.shape_cast %1 : vector<1x8x1024xf32> to vector<8x1024xf32>
    %cst = arith.constant dense<0.000000e+00> : vector<16x1024xf32>
    %3 = tpu.matmul %0, %2, %cst {dimension_numbers = #tpu.dot_dimension_numbers<[1], [0], [0], [1], [0, 0, 1, 1], [], []>} : vector<16x8xf32>, vector<8x1024xf32>, vector<16x1024xf32> -> vector<16x1024xf32>
    %c0_4 = arith.constant 0 : index
    %c0_5 = arith.constant 0 : index
    %c0_6 = arith.constant 0 : index
    %4 = vector.load %arg3[%c0_4, %c0_5, %c0_6] : memref<1x16x1024xf32, #tpu.memory_space<vmem>>, vector<1x16x1024xf32>
    %5 = vector.shape_cast %4 : vector<1x16x1024xf32> to vector<16x1024xf32>
    %6 = vector.shape_cast %3 : vector<16x1024xf32> to vector<1x16x1024xf32>
    tpu.vector_store %arg3[%c0_4, %c0_5, %c0_6], %6 {strides = array<i32>} : memref<1x16x1024xf32, #tpu.memory_space<vmem>>, vector<1x16x1024xf32>,
    return
  }
  func.func @transform_0(%arg0: i32) -> (i32, i32, i32) {
    %c0_i32 = arith.constant 0 : i32
    %c0_i32_0 = arith.constant 0 : i32
    %c0_i32_1 = arith.constant 0 : i32
    return %arg0, %c0_i32, %c0_i32_0 : i32, i32, i32
  }
  func.func @transform_1(%arg0: i32) -> (i32, i32) {
    %c0_i32 = arith.constant 0 : i32
    %c0_i32_0 = arith.constant 0 : i32
    %c0_i32_1 = arith.constant 0 : i32
    return %c0_i32, %c0_i32_0 : i32, i32
  }
  func.func @transform_2(%arg0: i32) -> (i32, i32, i32) {
    %c0_i32 = arith.constant 0 : i32
    %c0_i32_0 = arith.constant 0 : i32
    %c0_i32_1 = arith.constant 0 : i32
    return %arg0, %c0_i32, %c0_i32_0 : i32, i32, i32
  }
}

module attributes {stable_mosaic.version = 11 : i64} {
  func.func @_conv_bn_relu_stats_kernel(%arg0: i32, %arg1: i32, %arg2: memref<1x128x128xf32, #tpu.memory_space<vmem>>, %arg3: memref<1x128x128xf32, #tpu.memory_space<vmem>>, %arg4: memref<1x128x128xf32, #tpu.memory_space<vmem>>, %arg5: memref<1x166x1xf32, #tpu.memory_space<vmem>>, %arg6: memref<1x128xf32, #tpu.memory_space<vmem>>, %arg7: memref<1x128xf32, #tpu.memory_space<vmem>>, %arg8: memref<9x128x128xbf16, #tpu.memory_space<vmem>>, %arg9: memref<1x128x128xf32, #tpu.memory_space<vmem>>, %arg10: memref<1x1x8x128xf32, #tpu.memory_space<vmem>>, %arg11: memref<166x128xf32, #tpu.memory_space<vmem>>) attributes {dimension_semantics = [#tpu.dimension_semantics<parallel>, #tpu.dimension_semantics<parallel>], iteration_bounds = array<i64: 2, 3>, scalar_prefetch = 0 : i64, scratch_operands = 1 : i64, tpu.core_type = #tpu.core_type<tc>, window_params = [{transform_indices = @transform_0, window_bounds = array<i64: 1, 128, 128>}, {transform_indices = @transform_1, window_bounds = array<i64: 1, 128, 128>}, {transform_indices = @transform_2, window_bounds = array<i64: 1, 128, 128>}, {transform_indices = @transform_3, window_bounds = array<i64: 1, 166, 1>}, {pipeline_mode = #tpu.pipeline_mode<synchronous>, transform_indices = @transform_4, window_bounds = array<i64: 1, 128>}, {pipeline_mode = #tpu.pipeline_mode<synchronous>, transform_indices = @transform_5, window_bounds = array<i64: 1, 128>}, {pipeline_mode = #tpu.pipeline_mode<synchronous>, transform_indices = @transform_6, window_bounds = array<i64: 9, 128, 128>}, {transform_indices = @transform_7, window_bounds = array<i64: 1, 128, 128>}, {transform_indices = @transform_8, window_bounds = array<i64: 1, 1, 8, 128>}]} {
    %c0 = arith.constant 0 : index
    %c0_0 = arith.constant 0 : index
    %c0_1 = arith.constant 0 : index
    %0 = vector.load %arg5[%c0, %c0_0, %c0_1] : memref<1x166x1xf32, #tpu.memory_space<vmem>>, vector<1x166x1xf32>
    %1 = vector.shape_cast %0 : vector<1x166x1xf32> to vector<166x1xf32>
    %c0_2 = arith.constant 0 : index
    %c109 = arith.constant 109 : index
    %c0_3 = arith.constant 0 : index
    %2 = vector.load %arg2[%c0_2, %c109, %c0_3] : memref<1x128x128xf32, #tpu.memory_space<vmem>>, vector<1x19x128xf32>
    %3 = vector.shape_cast %2 : vector<1x19x128xf32> to vector<19x128xf32>
    %4 = vector.extract_strided_slice %1 {offsets = [0, 0], sizes = [19, 1], strides = [1, 1]} : vector<166x1xf32> to vector<19x1xf32>
    %c0_4 = arith.constant 0 : index
    %c0_5 = arith.constant 0 : index
    %5 = vector.load %arg6[%c0_4, %c0_5] : memref<1x128xf32, #tpu.memory_space<vmem>>, vector<1x128xf32>
    %6 = vector.broadcast %5 : vector<1x128xf32> to vector<19x128xf32>
    %7 = arith.mulf %3, %6 : vector<19x128xf32>
    %c0_6 = arith.constant 0 : index
    %c0_7 = arith.constant 0 : index
    %8 = vector.load %arg7[%c0_6, %c0_7] : memref<1x128xf32, #tpu.memory_space<vmem>>, vector<1x128xf32>
    %9 = vector.broadcast %8 : vector<1x128xf32> to vector<19x128xf32>
    %10 = arith.addf %7, %9 : vector<19x128xf32>
    %cst = arith.constant 0.000000e+00 : f32
    %11 = vector.broadcast %cst : f32 to vector<19x128xf32>
    %12 = arith.maximumf %10, %11 : vector<19x128xf32>
    %13 = vector.broadcast %4 : vector<19x1xf32> to vector<19x128xf32>
    %14 = arith.mulf %12, %13 : vector<19x128xf32>
    %c0_8 = arith.constant 0 : index
    %c0_9 = arith.constant 0 : index
    %15 = vector.load %arg11[%c0_8, %c0_9] : memref<166x128xf32, #tpu.memory_space<vmem>>, vector<19x128xf32>
    tpu.vector_store %arg11[%c0_8, %c0_9], %14 {strides = array<i32>} : memref<166x128xf32, #tpu.memory_space<vmem>>, vector<19x128xf32>,
    %c0_10 = arith.constant 0 : index
    %c0_11 = arith.constant 0 : index
    %c0_12 = arith.constant 0 : index
    %16 = vector.load %arg3[%c0_10, %c0_11, %c0_12] : memref<1x128x128xf32, #tpu.memory_space<vmem>>, vector<1x128x128xf32>
    %17 = vector.shape_cast %16 : vector<1x128x128xf32> to vector<128x128xf32>
    %18 = vector.extract_strided_slice %1 {offsets = [19, 0], sizes = [128, 1], strides = [1, 1]} : vector<166x1xf32> to vector<128x1xf32>
    %c0_13 = arith.constant 0 : index
    %c0_14 = arith.constant 0 : index
    %19 = vector.load %arg6[%c0_13, %c0_14] : memref<1x128xf32, #tpu.memory_space<vmem>>, vector<1x128xf32>
    %20 = vector.broadcast %19 : vector<1x128xf32> to vector<128x128xf32>
    %21 = arith.mulf %17, %20 : vector<128x128xf32>
    %c0_15 = arith.constant 0 : index
    %c0_16 = arith.constant 0 : index
    %22 = vector.load %arg7[%c0_15, %c0_16] : memref<1x128xf32, #tpu.memory_space<vmem>>, vector<1x128xf32>
    %23 = vector.broadcast %22 : vector<1x128xf32> to vector<128x128xf32>
    %24 = arith.addf %21, %23 : vector<128x128xf32>
    %cst_17 = arith.constant 0.000000e+00 : f32
    %25 = vector.broadcast %cst_17 : f32 to vector<128x128xf32>
    %26 = arith.maximumf %24, %25 : vector<128x128xf32>
    %27 = vector.broadcast %18 : vector<128x1xf32> to vector<128x128xf32>
    %28 = arith.mulf %26, %27 : vector<128x128xf32>
    %c19 = arith.constant 19 : index
    %c0_18 = arith.constant 0 : index
    %29 = vector.load %arg11[%c19, %c0_18] : memref<166x128xf32, #tpu.memory_space<vmem>>, vector<128x128xf32>
    tpu.vector_store %arg11[%c19, %c0_18], %28 {strides = array<i32>} : memref<166x128xf32, #tpu.memory_space<vmem>>, vector<128x128xf32>,
    %c0_19 = arith.constant 0 : index
    %c0_20 = arith.constant 0 : index
    %c0_21 = arith.constant 0 : index
    %30 = vector.load %arg4[%c0_19, %c0_20, %c0_21] : memref<1x128x128xf32, #tpu.memory_space<vmem>>, vector<1x19x128xf32>
    %31 = vector.shape_cast %30 : vector<1x19x128xf32> to vector<19x128xf32>
    %32 = vector.extract_strided_slice %1 {offsets = [147, 0], sizes = [19, 1], strides = [1, 1]} : vector<166x1xf32> to vector<19x1xf32>
    %c0_22 = arith.constant 0 : index
    %c0_23 = arith.constant 0 : index
    %33 = vector.load %arg6[%c0_22, %c0_23] : memref<1x128xf32, #tpu.memory_space<vmem>>, vector<1x128xf32>
    %34 = vector.broadcast %33 : vector<1x128xf32> to vector<19x128xf32>
    %35 = arith.mulf %31, %34 : vector<19x128xf32>
    %c0_24 = arith.constant 0 : index
    %c0_25 = arith.constant 0 : index
    %36 = vector.load %arg7[%c0_24, %c0_25] : memref<1x128xf32, #tpu.memory_space<vmem>>, vector<1x128xf32>
    %37 = vector.broadcast %36 : vector<1x128xf32> to vector<19x128xf32>
    %38 = arith.addf %35, %37 : vector<19x128xf32>
    %cst_26 = arith.constant 0.000000e+00 : f32
    %39 = vector.broadcast %cst_26 : f32 to vector<19x128xf32>
    %40 = arith.maximumf %38, %39 : vector<19x128xf32>
    %41 = vector.broadcast %32 : vector<19x1xf32> to vector<19x128xf32>
    %42 = arith.mulf %40, %41 : vector<19x128xf32>
    %c147 = arith.constant 147 : index
    %c0_27 = arith.constant 0 : index
    %43 = vector.load %arg11[%c147, %c0_27] : memref<166x128xf32, #tpu.memory_space<vmem>>, vector<19x128xf32>
    tpu.vector_store %arg11[%c147, %c0_27], %42 {strides = array<i32>} : memref<166x128xf32, #tpu.memory_space<vmem>>, vector<19x128xf32>,
    %c0_28 = arith.constant 0 : index
    %c0_29 = arith.constant 0 : index
    %44 = vector.load %arg11[%c0_28, %c0_29] : memref<166x128xf32, #tpu.memory_space<vmem>>, vector<128x128xf32>
    %45 = arith.truncf %44 : vector<128x128xf32> to vector<128x128xbf16>
    %c0_30 = arith.constant 0 : index
    %c0_31 = arith.constant 0 : index
    %c0_32 = arith.constant 0 : index
    %46 = vector.load %arg8[%c0_30, %c0_31, %c0_32] : memref<9x128x128xbf16, #tpu.memory_space<vmem>>, vector<1x128x128xbf16>
    %47 = vector.shape_cast %46 : vector<1x128x128xbf16> to vector<128x128xbf16>
    %cst_33 = arith.constant dense<0.000000e+00> : vector<128x128xf32>
    %48 = tpu.matmul %45, %47, %cst_33 {dimension_numbers = #tpu.dot_dimension_numbers<[1], [0], [0], [1], [0, 0, 1, 1], [], []>} : vector<128x128xbf16>, vector<128x128xbf16>, vector<128x128xf32> -> vector<128x128xf32>
    %c1 = arith.constant 1 : index
    %c0_34 = arith.constant 0 : index
    %49 = vector.load %arg11[%c1, %c0_34] : memref<166x128xf32, #tpu.memory_space<vmem>>, vector<128x128xf32>
    %50 = arith.truncf %49 : vector<128x128xf32> to vector<128x128xbf16>
    %c1_35 = arith.constant 1 : index
    %c0_36 = arith.constant 0 : index
    %c0_37 = arith.constant 0 : index
    %51 = vector.load %arg8[%c1_35, %c0_36, %c0_37] : memref<9x128x128xbf16, #tpu.memory_space<vmem>>, vector<1x128x128xbf16>
    %52 = vector.shape_cast %51 : vector<1x128x128xbf16> to vector<128x128xbf16>
    %cst_38 = arith.constant dense<0.000000e+00> : vector<128x128xf32>
    %53 = tpu.matmul %50, %52, %cst_38 {dimension_numbers = #tpu.dot_dimension_numbers<[1], [0], [0], [1], [0, 0, 1, 1], [], []>} : vector<128x128xbf16>, vector<128x128xbf16>, vector<128x128xf32> -> vector<128x128xf32>
    %54 = arith.addf %48, %53 : vector<128x128xf32>
    %c2 = arith.constant 2 : index
    %c0_39 = arith.constant 0 : index
    %55 = vector.load %arg11[%c2, %c0_39] : memref<166x128xf32, #tpu.memory_space<vmem>>, vector<128x128xf32>
    %56 = arith.truncf %55 : vector<128x128xf32> to vector<128x128xbf16>
    %c2_40 = arith.constant 2 : index
    %c0_41 = arith.constant 0 : index
    %c0_42 = arith.constant 0 : index
    %57 = vector.load %arg8[%c2_40, %c0_41, %c0_42] : memref<9x128x128xbf16, #tpu.memory_space<vmem>>, vector<1x128x128xbf16>
    %58 = vector.shape_cast %57 : vector<1x128x128xbf16> to vector<128x128xbf16>
    %cst_43 = arith.constant dense<0.000000e+00> : vector<128x128xf32>
    %59 = tpu.matmul %56, %58, %cst_43 {dimension_numbers = #tpu.dot_dimension_numbers<[1], [0], [0], [1], [0, 0, 1, 1], [], []>} : vector<128x128xbf16>, vector<128x128xbf16>, vector<128x128xf32> -> vector<128x128xf32>
    %60 = arith.addf %54, %59 : vector<128x128xf32>
    %c18 = arith.constant 18 : index
    %c0_44 = arith.constant 0 : index
    %61 = vector.load %arg11[%c18, %c0_44] : memref<166x128xf32, #tpu.memory_space<vmem>>, vector<128x128xf32>
    %62 = arith.truncf %61 : vector<128x128xf32> to vector<128x128xbf16>
    %c3 = arith.constant 3 : index
    %c0_45 = arith.constant 0 : index
    %c0_46 = arith.constant 0 : index
    %63 = vector.load %arg8[%c3, %c0_45, %c0_46] : memref<9x128x128xbf16, #tpu.memory_space<vmem>>, vector<1x128x128xbf16>
    %64 = vector.shape_cast %63 : vector<1x128x128xbf16> to vector<128x128xbf16>
    %cst_47 = arith.constant dense<0.000000e+00> : vector<128x128xf32>
    %65 = tpu.matmul %62, %64, %cst_47 {dimension_numbers = #tpu.dot_dimension_numbers<[1], [0], [0], [1], [0, 0, 1, 1], [], []>} : vector<128x128xbf16>, vector<128x128xbf16>, vector<128x128xf32> -> vector<128x128xf32>
    %66 = arith.addf %60, %65 : vector<128x128xf32>
    %c19_48 = arith.constant 19 : index
    %c0_49 = arith.constant 0 : index
    %67 = vector.load %arg11[%c19_48, %c0_49] : memref<166x128xf32, #tpu.memory_space<vmem>>, vector<128x128xf32>
    %68 = arith.truncf %67 : vector<128x128xf32> to vector<128x128xbf16>
    %c4 = arith.constant 4 : index
    %c0_50 = arith.constant 0 : index
    %c0_51 = arith.constant 0 : index
    %69 = vector.load %arg8[%c4, %c0_50, %c0_51] : memref<9x128x128xbf16, #tpu.memory_space<vmem>>, vector<1x128x128xbf16>
    %70 = vector.shape_cast %69 : vector<1x128x128xbf16> to vector<128x128xbf16>
    %cst_52 = arith.constant dense<0.000000e+00> : vector<128x128xf32>
    %71 = tpu.matmul %68, %70, %cst_52 {dimension_numbers = #tpu.dot_dimension_numbers<[1], [0], [0], [1], [0, 0, 1, 1], [], []>} : vector<128x128xbf16>, vector<128x128xbf16>, vector<128x128xf32> -> vector<128x128xf32>
    %72 = arith.addf %66, %71 : vector<128x128xf32>
    %c20 = arith.constant 20 : index
    %c0_53 = arith.constant 0 : index
    %73 = vector.load %arg11[%c20, %c0_53] : memref<166x128xf32, #tpu.memory_space<vmem>>, vector<128x128xf32>
    %74 = arith.truncf %73 : vector<128x128xf32> to vector<128x128xbf16>
    %c5 = arith.constant 5 : index
    %c0_54 = arith.constant 0 : index
    %c0_55 = arith.constant 0 : index
    %75 = vector.load %arg8[%c5, %c0_54, %c0_55] : memref<9x128x128xbf16, #tpu.memory_space<vmem>>, vector<1x128x128xbf16>
    %76 = vector.shape_cast %75 : vector<1x128x128xbf16> to vector<128x128xbf16>
    %cst_56 = arith.constant dense<0.000000e+00> : vector<128x128xf32>
    %77 = tpu.matmul %74, %76, %cst_56 {dimension_numbers = #tpu.dot_dimension_numbers<[1], [0], [0], [1], [0, 0, 1, 1], [], []>} : vector<128x128xbf16>, vector<128x128xbf16>, vector<128x128xf32> -> vector<128x128xf32>
    %78 = arith.addf %72, %77 : vector<128x128xf32>
    %c36 = arith.constant 36 : index
    %c0_57 = arith.constant 0 : index
    %79 = vector.load %arg11[%c36, %c0_57] : memref<166x128xf32, #tpu.memory_space<vmem>>, vector<128x128xf32>
    %80 = arith.truncf %79 : vector<128x128xf32> to vector<128x128xbf16>
    %c6 = arith.constant 6 : index
    %c0_58 = arith.constant 0 : index
    %c0_59 = arith.constant 0 : index
    %81 = vector.load %arg8[%c6, %c0_58, %c0_59] : memref<9x128x128xbf16, #tpu.memory_space<vmem>>, vector<1x128x128xbf16>
    %82 = vector.shape_cast %81 : vector<1x128x128xbf16> to vector<128x128xbf16>
    %cst_60 = arith.constant dense<0.000000e+00> : vector<128x128xf32>
    %83 = tpu.matmul %80, %82, %cst_60 {dimension_numbers = #tpu.dot_dimension_numbers<[1], [0], [0], [1], [0, 0, 1, 1], [], []>} : vector<128x128xbf16>, vector<128x128xbf16>, vector<128x128xf32> -> vector<128x128xf32>
    %84 = arith.addf %78, %83 : vector<128x128xf32>
    %c37 = arith.constant 37 : index
    %c0_61 = arith.constant 0 : index
    %85 = vector.load %arg11[%c37, %c0_61] : memref<166x128xf32, #tpu.memory_space<vmem>>, vector<128x128xf32>
    %86 = arith.truncf %85 : vector<128x128xf32> to vector<128x128xbf16>
    %c7 = arith.constant 7 : index
    %c0_62 = arith.constant 0 : index
    %c0_63 = arith.constant 0 : index
    %87 = vector.load %arg8[%c7, %c0_62, %c0_63] : memref<9x128x128xbf16, #tpu.memory_space<vmem>>, vector<1x128x128xbf16>
    %88 = vector.shape_cast %87 : vector<1x128x128xbf16> to vector<128x128xbf16>
    %cst_64 = arith.constant dense<0.000000e+00> : vector<128x128xf32>
    %89 = tpu.matmul %86, %88, %cst_64 {dimension_numbers = #tpu.dot_dimension_numbers<[1], [0], [0], [1], [0, 0, 1, 1], [], []>} : vector<128x128xbf16>, vector<128x128xbf16>, vector<128x128xf32> -> vector<128x128xf32>
    %90 = arith.addf %84, %89 : vector<128x128xf32>
    %c38 = arith.constant 38 : index
    %c0_65 = arith.constant 0 : index
    %91 = vector.load %arg11[%c38, %c0_65] : memref<166x128xf32, #tpu.memory_space<vmem>>, vector<128x128xf32>
    %92 = arith.truncf %91 : vector<128x128xf32> to vector<128x128xbf16>
    %c8 = arith.constant 8 : index
    %c0_66 = arith.constant 0 : index
    %c0_67 = arith.constant 0 : index
    %93 = vector.load %arg8[%c8, %c0_66, %c0_67] : memref<9x128x128xbf16, #tpu.memory_space<vmem>>, vector<1x128x128xbf16>
    %94 = vector.shape_cast %93 : vector<1x128x128xbf16> to vector<128x128xbf16>
    %cst_68 = arith.constant dense<0.000000e+00> : vector<128x128xf32>
    %95 = tpu.matmul %92, %94, %cst_68 {dimension_numbers = #tpu.dot_dimension_numbers<[1], [0], [0], [1], [0, 0, 1, 1], [], []>} : vector<128x128xbf16>, vector<128x128xbf16>, vector<128x128xf32> -> vector<128x128xf32>
    %96 = arith.addf %90, %95 : vector<128x128xf32>
    %97 = vector.extract_strided_slice %1 {offsets = [19, 0], sizes = [128, 1], strides = [1, 1]} : vector<166x1xf32> to vector<128x1xf32>
    %98 = vector.broadcast %97 : vector<128x1xf32> to vector<128x128xf32>
    %99 = arith.mulf %96, %98 : vector<128x128xf32>
    %c0_69 = arith.constant 0 : index
    %c0_70 = arith.constant 0 : index
    %c0_71 = arith.constant 0 : index
    %100 = vector.load %arg9[%c0_69, %c0_70, %c0_71] : memref<1x128x128xf32, #tpu.memory_space<vmem>>, vector<1x128x128xf32>
    %101 = vector.shape_cast %100 : vector<1x128x128xf32> to vector<128x128xf32>
    %102 = vector.shape_cast %99 : vector<128x128xf32> to vector<1x128x128xf32>
    tpu.vector_store %arg9[%c0_69, %c0_70, %c0_71], %102 {strides = array<i32>} : memref<1x128x128xf32, #tpu.memory_space<vmem>>, vector<1x128x128xf32>,
    %cst_72 = arith.constant dense<0.000000e+00> : vector<128xf32>
    %103 = vector.multi_reduction <add>, %99, %cst_72 [0] : vector<128x128xf32> to vector<128xf32>
    %104 = vector.shape_cast %103 : vector<128xf32> to vector<1x128xf32>
    %c0_73 = arith.constant 0 : index
    %c0_74 = arith.constant 0 : index
    %c0_75 = arith.constant 0 : index
    %c0_76 = arith.constant 0 : index
    %105 = vector.load %arg10[%c0_73, %c0_74, %c0_75, %c0_76] : memref<1x1x8x128xf32, #tpu.memory_space<vmem>>, vector<1x1x1x128xf32>
    %106 = vector.shape_cast %105 : vector<1x1x1x128xf32> to vector<1x128xf32>
    %107 = vector.shape_cast %104 : vector<1x128xf32> to vector<1x1x1x128xf32>
    tpu.vector_store %arg10[%c0_73, %c0_74, %c0_75, %c0_76], %107 {strides = array<i32>} : memref<1x1x8x128xf32, #tpu.memory_space<vmem>>, vector<1x1x1x128xf32>,
    %108 = arith.mulf %99, %99 : vector<128x128xf32>
    %cst_77 = arith.constant dense<0.000000e+00> : vector<128xf32>
    %109 = vector.multi_reduction <add>, %108, %cst_77 [0] : vector<128x128xf32> to vector<128xf32>
    %110 = vector.shape_cast %109 : vector<128xf32> to vector<1x128xf32>
    %c0_78 = arith.constant 0 : index
    %c0_79 = arith.constant 0 : index
    %c1_80 = arith.constant 1 : index
    %c0_81 = arith.constant 0 : index
    %111 = vector.load %arg10[%c0_78, %c0_79, %c1_80, %c0_81] : memref<1x1x8x128xf32, #tpu.memory_space<vmem>>, vector<1x1x1x128xf32>
    %112 = vector.shape_cast %111 : vector<1x1x1x128xf32> to vector<1x128xf32>
    %113 = vector.shape_cast %110 : vector<1x128xf32> to vector<1x1x1x128xf32>
    tpu.vector_store %arg10[%c0_78, %c0_79, %c1_80, %c0_81], %113 {strides = array<i32>} : memref<1x1x8x128xf32, #tpu.memory_space<vmem>>, vector<1x1x1x128xf32>,
    %cst_82 = arith.constant 0.000000e+00 : f32
    %114 = vector.broadcast %cst_82 : f32 to vector<6x128xf32>
    %c0_83 = arith.constant 0 : index
    %c0_84 = arith.constant 0 : index
    %c2_85 = arith.constant 2 : index
    %c0_86 = arith.constant 0 : index
    %115 = vector.load %arg10[%c0_83, %c0_84, %c2_85, %c0_86] : memref<1x1x8x128xf32, #tpu.memory_space<vmem>>, vector<1x1x6x128xf32>
    %116 = vector.shape_cast %115 : vector<1x1x6x128xf32> to vector<6x128xf32>
    %117 = vector.shape_cast %114 : vector<6x128xf32> to vector<1x1x6x128xf32>
    tpu.vector_store %arg10[%c0_83, %c0_84, %c2_85, %c0_86], %117 {strides = array<i32>} : memref<1x1x8x128xf32, #tpu.memory_space<vmem>>, vector<1x1x6x128xf32>,
    return
  }
  func.func @transform_0(%arg0: i32, %arg1: i32) -> (i32, i32, i32) {
    %c1_i32 = arith.constant 1 : i32
    %0 = arith.subi %arg1, %c1_i32 : i32
    %c0_i32 = arith.constant 0 : i32
    %1 = arith.maxsi %0, %c0_i32 : i32
    %c0_i32_0 = arith.constant 0 : i32
    %c0_i32_1 = arith.constant 0 : i32
    return %arg0, %1, %c0_i32_0 : i32, i32, i32
  }
  func.func @transform_1(%arg0: i32, %arg1: i32) -> (i32, i32, i32) {
    %c0_i32 = arith.constant 0 : i32
    %c0_i32_0 = arith.constant 0 : i32
    return %arg0, %arg1, %c0_i32 : i32, i32, i32
  }
  func.func @transform_2(%arg0: i32, %arg1: i32) -> (i32, i32, i32) {
    %c1_i32 = arith.constant 1 : i32
    %0 = arith.addi %arg1, %c1_i32 : i32
    %c2_i32 = arith.constant 2 : i32
    %1 = arith.minsi %0, %c2_i32 : i32
    %c0_i32 = arith.constant 0 : i32
    %c0_i32_0 = arith.constant 0 : i32
    return %arg0, %1, %c0_i32 : i32, i32, i32
  }
  func.func @transform_3(%arg0: i32, %arg1: i32) -> (i32, i32, i32) {
    %c0_i32 = arith.constant 0 : i32
    %c0_i32_0 = arith.constant 0 : i32
    %c0_i32_1 = arith.constant 0 : i32
    return %arg1, %c0_i32, %c0_i32_0 : i32, i32, i32
  }
  func.func @transform_4(%arg0: i32, %arg1: i32) -> (i32, i32) {
    %c0_i32 = arith.constant 0 : i32
    %c0_i32_0 = arith.constant 0 : i32
    %c0_i32_1 = arith.constant 0 : i32
    return %c0_i32, %c0_i32_0 : i32, i32
  }
  func.func @transform_5(%arg0: i32, %arg1: i32) -> (i32, i32) {
    %c0_i32 = arith.constant 0 : i32
    %c0_i32_0 = arith.constant 0 : i32
    %c0_i32_1 = arith.constant 0 : i32
    return %c0_i32, %c0_i32_0 : i32, i32
  }
  func.func @transform_6(%arg0: i32, %arg1: i32) -> (i32, i32, i32) {
    %c0_i32 = arith.constant 0 : i32
    %c0_i32_0 = arith.constant 0 : i32
    %c0_i32_1 = arith.constant 0 : i32
    %c0_i32_2 = arith.constant 0 : i32
    return %c0_i32, %c0_i32_0, %c0_i32_1 : i32, i32, i32
  }
  func.func @transform_7(%arg0: i32, %arg1: i32) -> (i32, i32, i32) {
    %c0_i32 = arith.constant 0 : i32
    %c0_i32_0 = arith.constant 0 : i32
    return %arg0, %arg1, %c0_i32 : i32, i32, i32
  }
  func.func @transform_8(%arg0: i32, %arg1: i32) -> (i32, i32, i32, i32) {
    %c0_i32 = arith.constant 0 : i32
    %c0_i32_0 = arith.constant 0 : i32
    %c0_i32_1 = arith.constant 0 : i32
    return %arg0, %arg1, %c0_i32, %c0_i32_0 : i32, i32, i32, i32
  }
}

module attributes {stable_mosaic.version = 11 : i64} {
  func.func @_conv_bn_relu_stats_kernel(%arg0: i32, %arg1: i32, %arg2: memref<1x128x128xf32, #tpu.memory_space<vmem>>, %arg3: memref<1x128x128xf32, #tpu.memory_space<vmem>>, %arg4: memref<1x128x128xf32, #tpu.memory_space<vmem>>, %arg5: memref<1x166x1xf32, #tpu.memory_space<vmem>>, %arg6: memref<1x128xf32, #tpu.memory_space<vmem>>, %arg7: memref<1x128xf32, #tpu.memory_space<vmem>>, %arg8: memref<9x128x128xbf16, #tpu.memory_space<vmem>>, %arg9: memref<1x128x128xf32, #tpu.memory_space<vmem>>, %arg10: memref<1x1x8x128xf32, #tpu.memory_space<vmem>>, %arg11: memref<166x128xf32, #tpu.memory_space<vmem>>) attributes {dimension_semantics = [#tpu.dimension_semantics<parallel>, #tpu.dimension_semantics<parallel>], iteration_bounds = array<i64: 2, 3>, scalar_prefetch = 0 : i64, scratch_operands = 1 : i64, tpu.core_type = #tpu.core_type<tc>, window_params = [{transform_indices = @transform_0, window_bounds = array<i64: 1, 128, 128>}, {transform_indices = @transform_1, window_bounds = array<i64: 1, 128, 128>}, {transform_indices = @transform_2, window_bounds = array<i64: 1, 128, 128>}, {transform_indices = @transform_3, window_bounds = array<i64: 1, 166, 1>}, {pipeline_mode = #tpu.pipeline_mode<synchronous>, transform_indices = @transform_4, window_bounds = array<i64: 1, 128>}, {pipeline_mode = #tpu.pipeline_mode<synchronous>, transform_indices = @transform_5, window_bounds = array<i64: 1, 128>}, {pipeline_mode = #tpu.pipeline_mode<synchronous>, transform_indices = @transform_6, window_bounds = array<i64: 9, 128, 128>}, {transform_indices = @transform_7, window_bounds = array<i64: 1, 128, 128>}, {transform_indices = @transform_8, window_bounds = array<i64: 1, 1, 8, 128>}]} {
    %c0 = arith.constant 0 : index
    %c0_0 = arith.constant 0 : index
    %c0_1 = arith.constant 0 : index
    %0 = vector.load %arg5[%c0, %c0_0, %c0_1] : memref<1x166x1xf32, #tpu.memory_space<vmem>>, vector<1x166x1xf32>
    %1 = vector.shape_cast %0 : vector<1x166x1xf32> to vector<166x1xf32>
    %c0_2 = arith.constant 0 : index
    %c109 = arith.constant 109 : index
    %c0_3 = arith.constant 0 : index
    %2 = vector.load %arg2[%c0_2, %c109, %c0_3] : memref<1x128x128xf32, #tpu.memory_space<vmem>>, vector<1x19x128xf32>
    %3 = vector.shape_cast %2 : vector<1x19x128xf32> to vector<19x128xf32>
    %4 = vector.extract_strided_slice %1 {offsets = [0, 0], sizes = [19, 1], strides = [1, 1]} : vector<166x1xf32> to vector<19x1xf32>
    %5 = vector.broadcast %4 : vector<19x1xf32> to vector<19x128xf32>
    %6 = arith.mulf %3, %5 : vector<19x128xf32>
    %c0_4 = arith.constant 0 : index
    %c0_5 = arith.constant 0 : index
    %7 = vector.load %arg11[%c0_4, %c0_5] : memref<166x128xf32, #tpu.memory_space<vmem>>, vector<19x128xf32>
    tpu.vector_store %arg11[%c0_4, %c0_5], %6 {strides = array<i32>} : memref<166x128xf32, #tpu.memory_space<vmem>>, vector<19x128xf32>,
    %c0_6 = arith.constant 0 : index
    %c0_7 = arith.constant 0 : index
    %c0_8 = arith.constant 0 : index
    %8 = vector.load %arg3[%c0_6, %c0_7, %c0_8] : memref<1x128x128xf32, #tpu.memory_space<vmem>>, vector<1x128x128xf32>
    %9 = vector.shape_cast %8 : vector<1x128x128xf32> to vector<128x128xf32>
    %10 = vector.extract_strided_slice %1 {offsets = [19, 0], sizes = [128, 1], strides = [1, 1]} : vector<166x1xf32> to vector<128x1xf32>
    %11 = vector.broadcast %10 : vector<128x1xf32> to vector<128x128xf32>
    %12 = arith.mulf %9, %11 : vector<128x128xf32>
    %c19 = arith.constant 19 : index
    %c0_9 = arith.constant 0 : index
    %13 = vector.load %arg11[%c19, %c0_9] : memref<166x128xf32, #tpu.memory_space<vmem>>, vector<128x128xf32>
    tpu.vector_store %arg11[%c19, %c0_9], %12 {strides = array<i32>} : memref<166x128xf32, #tpu.memory_space<vmem>>, vector<128x128xf32>,
    %c0_10 = arith.constant 0 : index
    %c0_11 = arith.constant 0 : index
    %c0_12 = arith.constant 0 : index
    %14 = vector.load %arg4[%c0_10, %c0_11, %c0_12] : memref<1x128x128xf32, #tpu.memory_space<vmem>>, vector<1x19x128xf32>
    %15 = vector.shape_cast %14 : vector<1x19x128xf32> to vector<19x128xf32>
    %16 = vector.extract_strided_slice %1 {offsets = [147, 0], sizes = [19, 1], strides = [1, 1]} : vector<166x1xf32> to vector<19x1xf32>
    %17 = vector.broadcast %16 : vector<19x1xf32> to vector<19x128xf32>
    %18 = arith.mulf %15, %17 : vector<19x128xf32>
    %c147 = arith.constant 147 : index
    %c0_13 = arith.constant 0 : index
    %19 = vector.load %arg11[%c147, %c0_13] : memref<166x128xf32, #tpu.memory_space<vmem>>, vector<19x128xf32>
    tpu.vector_store %arg11[%c147, %c0_13], %18 {strides = array<i32>} : memref<166x128xf32, #tpu.memory_space<vmem>>, vector<19x128xf32>,
    %c0_14 = arith.constant 0 : index
    %c0_15 = arith.constant 0 : index
    %20 = vector.load %arg11[%c0_14, %c0_15] : memref<166x128xf32, #tpu.memory_space<vmem>>, vector<128x128xf32>
    %21 = arith.truncf %20 : vector<128x128xf32> to vector<128x128xbf16>
    %c0_16 = arith.constant 0 : index
    %c0_17 = arith.constant 0 : index
    %c0_18 = arith.constant 0 : index
    %22 = vector.load %arg8[%c0_16, %c0_17, %c0_18] : memref<9x128x128xbf16, #tpu.memory_space<vmem>>, vector<1x128x128xbf16>
    %23 = vector.shape_cast %22 : vector<1x128x128xbf16> to vector<128x128xbf16>
    %cst = arith.constant dense<0.000000e+00> : vector<128x128xf32>
    %24 = tpu.matmul %21, %23, %cst {dimension_numbers = #tpu.dot_dimension_numbers<[1], [0], [0], [1], [0, 0, 1, 1], [], []>} : vector<128x128xbf16>, vector<128x128xbf16>, vector<128x128xf32> -> vector<128x128xf32>
    %c1 = arith.constant 1 : index
    %c0_19 = arith.constant 0 : index
    %25 = vector.load %arg11[%c1, %c0_19] : memref<166x128xf32, #tpu.memory_space<vmem>>, vector<128x128xf32>
    %26 = arith.truncf %25 : vector<128x128xf32> to vector<128x128xbf16>
    %c1_20 = arith.constant 1 : index
    %c0_21 = arith.constant 0 : index
    %c0_22 = arith.constant 0 : index
    %27 = vector.load %arg8[%c1_20, %c0_21, %c0_22] : memref<9x128x128xbf16, #tpu.memory_space<vmem>>, vector<1x128x128xbf16>
    %28 = vector.shape_cast %27 : vector<1x128x128xbf16> to vector<128x128xbf16>
    %cst_23 = arith.constant dense<0.000000e+00> : vector<128x128xf32>
    %29 = tpu.matmul %26, %28, %cst_23 {dimension_numbers = #tpu.dot_dimension_numbers<[1], [0], [0], [1], [0, 0, 1, 1], [], []>} : vector<128x128xbf16>, vector<128x128xbf16>, vector<128x128xf32> -> vector<128x128xf32>
    %30 = arith.addf %24, %29 : vector<128x128xf32>
    %c2 = arith.constant 2 : index
    %c0_24 = arith.constant 0 : index
    %31 = vector.load %arg11[%c2, %c0_24] : memref<166x128xf32, #tpu.memory_space<vmem>>, vector<128x128xf32>
    %32 = arith.truncf %31 : vector<128x128xf32> to vector<128x128xbf16>
    %c2_25 = arith.constant 2 : index
    %c0_26 = arith.constant 0 : index
    %c0_27 = arith.constant 0 : index
    %33 = vector.load %arg8[%c2_25, %c0_26, %c0_27] : memref<9x128x128xbf16, #tpu.memory_space<vmem>>, vector<1x128x128xbf16>
    %34 = vector.shape_cast %33 : vector<1x128x128xbf16> to vector<128x128xbf16>
    %cst_28 = arith.constant dense<0.000000e+00> : vector<128x128xf32>
    %35 = tpu.matmul %32, %34, %cst_28 {dimension_numbers = #tpu.dot_dimension_numbers<[1], [0], [0], [1], [0, 0, 1, 1], [], []>} : vector<128x128xbf16>, vector<128x128xbf16>, vector<128x128xf32> -> vector<128x128xf32>
    %36 = arith.addf %30, %35 : vector<128x128xf32>
    %c18 = arith.constant 18 : index
    %c0_29 = arith.constant 0 : index
    %37 = vector.load %arg11[%c18, %c0_29] : memref<166x128xf32, #tpu.memory_space<vmem>>, vector<128x128xf32>
    %38 = arith.truncf %37 : vector<128x128xf32> to vector<128x128xbf16>
    %c3 = arith.constant 3 : index
    %c0_30 = arith.constant 0 : index
    %c0_31 = arith.constant 0 : index
    %39 = vector.load %arg8[%c3, %c0_30, %c0_31] : memref<9x128x128xbf16, #tpu.memory_space<vmem>>, vector<1x128x128xbf16>
    %40 = vector.shape_cast %39 : vector<1x128x128xbf16> to vector<128x128xbf16>
    %cst_32 = arith.constant dense<0.000000e+00> : vector<128x128xf32>
    %41 = tpu.matmul %38, %40, %cst_32 {dimension_numbers = #tpu.dot_dimension_numbers<[1], [0], [0], [1], [0, 0, 1, 1], [], []>} : vector<128x128xbf16>, vector<128x128xbf16>, vector<128x128xf32> -> vector<128x128xf32>
    %42 = arith.addf %36, %41 : vector<128x128xf32>
    %c19_33 = arith.constant 19 : index
    %c0_34 = arith.constant 0 : index
    %43 = vector.load %arg11[%c19_33, %c0_34] : memref<166x128xf32, #tpu.memory_space<vmem>>, vector<128x128xf32>
    %44 = arith.truncf %43 : vector<128x128xf32> to vector<128x128xbf16>
    %c4 = arith.constant 4 : index
    %c0_35 = arith.constant 0 : index
    %c0_36 = arith.constant 0 : index
    %45 = vector.load %arg8[%c4, %c0_35, %c0_36] : memref<9x128x128xbf16, #tpu.memory_space<vmem>>, vector<1x128x128xbf16>
    %46 = vector.shape_cast %45 : vector<1x128x128xbf16> to vector<128x128xbf16>
    %cst_37 = arith.constant dense<0.000000e+00> : vector<128x128xf32>
    %47 = tpu.matmul %44, %46, %cst_37 {dimension_numbers = #tpu.dot_dimension_numbers<[1], [0], [0], [1], [0, 0, 1, 1], [], []>} : vector<128x128xbf16>, vector<128x128xbf16>, vector<128x128xf32> -> vector<128x128xf32>
    %48 = arith.addf %42, %47 : vector<128x128xf32>
    %c20 = arith.constant 20 : index
    %c0_38 = arith.constant 0 : index
    %49 = vector.load %arg11[%c20, %c0_38] : memref<166x128xf32, #tpu.memory_space<vmem>>, vector<128x128xf32>
    %50 = arith.truncf %49 : vector<128x128xf32> to vector<128x128xbf16>
    %c5 = arith.constant 5 : index
    %c0_39 = arith.constant 0 : index
    %c0_40 = arith.constant 0 : index
    %51 = vector.load %arg8[%c5, %c0_39, %c0_40] : memref<9x128x128xbf16, #tpu.memory_space<vmem>>, vector<1x128x128xbf16>
    %52 = vector.shape_cast %51 : vector<1x128x128xbf16> to vector<128x128xbf16>
    %cst_41 = arith.constant dense<0.000000e+00> : vector<128x128xf32>
    %53 = tpu.matmul %50, %52, %cst_41 {dimension_numbers = #tpu.dot_dimension_numbers<[1], [0], [0], [1], [0, 0, 1, 1], [], []>} : vector<128x128xbf16>, vector<128x128xbf16>, vector<128x128xf32> -> vector<128x128xf32>
    %54 = arith.addf %48, %53 : vector<128x128xf32>
    %c36 = arith.constant 36 : index
    %c0_42 = arith.constant 0 : index
    %55 = vector.load %arg11[%c36, %c0_42] : memref<166x128xf32, #tpu.memory_space<vmem>>, vector<128x128xf32>
    %56 = arith.truncf %55 : vector<128x128xf32> to vector<128x128xbf16>
    %c6 = arith.constant 6 : index
    %c0_43 = arith.constant 0 : index
    %c0_44 = arith.constant 0 : index
    %57 = vector.load %arg8[%c6, %c0_43, %c0_44] : memref<9x128x128xbf16, #tpu.memory_space<vmem>>, vector<1x128x128xbf16>
    %58 = vector.shape_cast %57 : vector<1x128x128xbf16> to vector<128x128xbf16>
    %cst_45 = arith.constant dense<0.000000e+00> : vector<128x128xf32>
    %59 = tpu.matmul %56, %58, %cst_45 {dimension_numbers = #tpu.dot_dimension_numbers<[1], [0], [0], [1], [0, 0, 1, 1], [], []>} : vector<128x128xbf16>, vector<128x128xbf16>, vector<128x128xf32> -> vector<128x128xf32>
    %60 = arith.addf %54, %59 : vector<128x128xf32>
    %c37 = arith.constant 37 : index
    %c0_46 = arith.constant 0 : index
    %61 = vector.load %arg11[%c37, %c0_46] : memref<166x128xf32, #tpu.memory_space<vmem>>, vector<128x128xf32>
    %62 = arith.truncf %61 : vector<128x128xf32> to vector<128x128xbf16>
    %c7 = arith.constant 7 : index
    %c0_47 = arith.constant 0 : index
    %c0_48 = arith.constant 0 : index
    %63 = vector.load %arg8[%c7, %c0_47, %c0_48] : memref<9x128x128xbf16, #tpu.memory_space<vmem>>, vector<1x128x128xbf16>
    %64 = vector.shape_cast %63 : vector<1x128x128xbf16> to vector<128x128xbf16>
    %cst_49 = arith.constant dense<0.000000e+00> : vector<128x128xf32>
    %65 = tpu.matmul %62, %64, %cst_49 {dimension_numbers = #tpu.dot_dimension_numbers<[1], [0], [0], [1], [0, 0, 1, 1], [], []>} : vector<128x128xbf16>, vector<128x128xbf16>, vector<128x128xf32> -> vector<128x128xf32>
    %66 = arith.addf %60, %65 : vector<128x128xf32>
    %c38 = arith.constant 38 : index
    %c0_50 = arith.constant 0 : index
    %67 = vector.load %arg11[%c38, %c0_50] : memref<166x128xf32, #tpu.memory_space<vmem>>, vector<128x128xf32>
    %68 = arith.truncf %67 : vector<128x128xf32> to vector<128x128xbf16>
    %c8 = arith.constant 8 : index
    %c0_51 = arith.constant 0 : index
    %c0_52 = arith.constant 0 : index
    %69 = vector.load %arg8[%c8, %c0_51, %c0_52] : memref<9x128x128xbf16, #tpu.memory_space<vmem>>, vector<1x128x128xbf16>
    %70 = vector.shape_cast %69 : vector<1x128x128xbf16> to vector<128x128xbf16>
    %cst_53 = arith.constant dense<0.000000e+00> : vector<128x128xf32>
    %71 = tpu.matmul %68, %70, %cst_53 {dimension_numbers = #tpu.dot_dimension_numbers<[1], [0], [0], [1], [0, 0, 1, 1], [], []>} : vector<128x128xbf16>, vector<128x128xbf16>, vector<128x128xf32> -> vector<128x128xf32>
    %72 = arith.addf %66, %71 : vector<128x128xf32>
    %73 = vector.extract_strided_slice %1 {offsets = [19, 0], sizes = [128, 1], strides = [1, 1]} : vector<166x1xf32> to vector<128x1xf32>
    %74 = vector.broadcast %73 : vector<128x1xf32> to vector<128x128xf32>
    %75 = arith.mulf %72, %74 : vector<128x128xf32>
    %c0_54 = arith.constant 0 : index
    %c0_55 = arith.constant 0 : index
    %c0_56 = arith.constant 0 : index
    %76 = vector.load %arg9[%c0_54, %c0_55, %c0_56] : memref<1x128x128xf32, #tpu.memory_space<vmem>>, vector<1x128x128xf32>
    %77 = vector.shape_cast %76 : vector<1x128x128xf32> to vector<128x128xf32>
    %78 = vector.shape_cast %75 : vector<128x128xf32> to vector<1x128x128xf32>
    tpu.vector_store %arg9[%c0_54, %c0_55, %c0_56], %78 {strides = array<i32>} : memref<1x128x128xf32, #tpu.memory_space<vmem>>, vector<1x128x128xf32>,
    %cst_57 = arith.constant dense<0.000000e+00> : vector<128xf32>
    %79 = vector.multi_reduction <add>, %75, %cst_57 [0] : vector<128x128xf32> to vector<128xf32>
    %80 = vector.shape_cast %79 : vector<128xf32> to vector<1x128xf32>
    %c0_58 = arith.constant 0 : index
    %c0_59 = arith.constant 0 : index
    %c0_60 = arith.constant 0 : index
    %c0_61 = arith.constant 0 : index
    %81 = vector.load %arg10[%c0_58, %c0_59, %c0_60, %c0_61] : memref<1x1x8x128xf32, #tpu.memory_space<vmem>>, vector<1x1x1x128xf32>
    %82 = vector.shape_cast %81 : vector<1x1x1x128xf32> to vector<1x128xf32>
    %83 = vector.shape_cast %80 : vector<1x128xf32> to vector<1x1x1x128xf32>
    tpu.vector_store %arg10[%c0_58, %c0_59, %c0_60, %c0_61], %83 {strides = array<i32>} : memref<1x1x8x128xf32, #tpu.memory_space<vmem>>, vector<1x1x1x128xf32>,
    %84 = arith.mulf %75, %75 : vector<128x128xf32>
    %cst_62 = arith.constant dense<0.000000e+00> : vector<128xf32>
    %85 = vector.multi_reduction <add>, %84, %cst_62 [0] : vector<128x128xf32> to vector<128xf32>
    %86 = vector.shape_cast %85 : vector<128xf32> to vector<1x128xf32>
    %c0_63 = arith.constant 0 : index
    %c0_64 = arith.constant 0 : index
    %c1_65 = arith.constant 1 : index
    %c0_66 = arith.constant 0 : index
    %87 = vector.load %arg10[%c0_63, %c0_64, %c1_65, %c0_66] : memref<1x1x8x128xf32, #tpu.memory_space<vmem>>, vector<1x1x1x128xf32>
    %88 = vector.shape_cast %87 : vector<1x1x1x128xf32> to vector<1x128xf32>
    %89 = vector.shape_cast %86 : vector<1x128xf32> to vector<1x1x1x128xf32>
    tpu.vector_store %arg10[%c0_63, %c0_64, %c1_65, %c0_66], %89 {strides = array<i32>} : memref<1x1x8x128xf32, #tpu.memory_space<vmem>>, vector<1x1x1x128xf32>,
    %cst_67 = arith.constant 0.000000e+00 : f32
    %90 = vector.broadcast %cst_67 : f32 to vector<6x128xf32>
    %c0_68 = arith.constant 0 : index
    %c0_69 = arith.constant 0 : index
    %c2_70 = arith.constant 2 : index
    %c0_71 = arith.constant 0 : index
    %91 = vector.load %arg10[%c0_68, %c0_69, %c2_70, %c0_71] : memref<1x1x8x128xf32, #tpu.memory_space<vmem>>, vector<1x1x6x128xf32>
    %92 = vector.shape_cast %91 : vector<1x1x6x128xf32> to vector<6x128xf32>
    %93 = vector.shape_cast %90 : vector<6x128xf32> to vector<1x1x6x128xf32>
    tpu.vector_store %arg10[%c0_68, %c0_69, %c2_70, %c0_71], %93 {strides = array<i32>} : memref<1x1x8x128xf32, #tpu.memory_space<vmem>>, vector<1x1x6x128xf32>,
    return
  }
  func.func @transform_0(%arg0: i32, %arg1: i32) -> (i32, i32, i32) {
    %c1_i32 = arith.constant 1 : i32
    %0 = arith.subi %arg1, %c1_i32 : i32
    %c0_i32 = arith.constant 0 : i32
    %1 = arith.maxsi %0, %c0_i32 : i32
    %c0_i32_0 = arith.constant 0 : i32
    %c0_i32_1 = arith.constant 0 : i32
    return %arg0, %1, %c0_i32_0 : i32, i32, i32
  }
  func.func @transform_1(%arg0: i32, %arg1: i32) -> (i32, i32, i32) {
    %c0_i32 = arith.constant 0 : i32
    %c0_i32_0 = arith.constant 0 : i32
    return %arg0, %arg1, %c0_i32 : i32, i32, i32
  }
  func.func @transform_2(%arg0: i32, %arg1: i32) -> (i32, i32, i32) {
    %c1_i32 = arith.constant 1 : i32
    %0 = arith.addi %arg1, %c1_i32 : i32
    %c2_i32 = arith.constant 2 : i32
    %1 = arith.minsi %0, %c2_i32 : i32
    %c0_i32 = arith.constant 0 : i32
    %c0_i32_0 = arith.constant 0 : i32
    return %arg0, %1, %c0_i32 : i32, i32, i32
  }
  func.func @transform_3(%arg0: i32, %arg1: i32) -> (i32, i32, i32) {
    %c0_i32 = arith.constant 0 : i32
    %c0_i32_0 = arith.constant 0 : i32
    %c0_i32_1 = arith.constant 0 : i32
    return %arg1, %c0_i32, %c0_i32_0 : i32, i32, i32
  }
  func.func @transform_4(%arg0: i32, %arg1: i32) -> (i32, i32) {
    %c0_i32 = arith.constant 0 : i32
    %c0_i32_0 = arith.constant 0 : i32
    %c0_i32_1 = arith.constant 0 : i32
    return %c0_i32, %c0_i32_0 : i32, i32
  }
  func.func @transform_5(%arg0: i32, %arg1: i32) -> (i32, i32) {
    %c0_i32 = arith.constant 0 : i32
    %c0_i32_0 = arith.constant 0 : i32
    %c0_i32_1 = arith.constant 0 : i32
    return %c0_i32, %c0_i32_0 : i32, i32
  }
  func.func @transform_6(%arg0: i32, %arg1: i32) -> (i32, i32, i32) {
    %c0_i32 = arith.constant 0 : i32
    %c0_i32_0 = arith.constant 0 : i32
    %c0_i32_1 = arith.constant 0 : i32
    %c0_i32_2 = arith.constant 0 : i32
    return %c0_i32, %c0_i32_0, %c0_i32_1 : i32, i32, i32
  }
  func.func @transform_7(%arg0: i32, %arg1: i32) -> (i32, i32, i32) {
    %c0_i32 = arith.constant 0 : i32
    %c0_i32_0 = arith.constant 0 : i32
    return %arg0, %arg1, %c0_i32 : i32, i32, i32
  }
  func.func @transform_8(%arg0: i32, %arg1: i32) -> (i32, i32, i32, i32) {
    %c0_i32 = arith.constant 0 : i32
    %c0_i32_0 = arith.constant 0 : i32
    %c0_i32_1 = arith.constant 0 : i32
    return %arg0, %arg1, %c0_i32, %c0_i32_0 : i32, i32, i32, i32
  }
}

module attributes {stable_mosaic.version = 11 : i64} {
  func.func @_bn_relu_kernel(%arg0: i32, %arg1: i32, %arg2: memref<1x128x128xf32, #tpu.memory_space<vmem>>, %arg3: memref<1x128xf32, #tpu.memory_space<vmem>>, %arg4: memref<1x128xf32, #tpu.memory_space<vmem>>, %arg5: memref<1x128x128xf32, #tpu.memory_space<vmem>>) attributes {dimension_semantics = [#tpu.dimension_semantics<parallel>, #tpu.dimension_semantics<parallel>], iteration_bounds = array<i64: 2, 3>, scalar_prefetch = 0 : i64, scratch_operands = 0 : i64, tpu.core_type = #tpu.core_type<tc>, window_params = [{transform_indices = @transform_0, window_bounds = array<i64: 1, 128, 128>}, {pipeline_mode = #tpu.pipeline_mode<synchronous>, transform_indices = @transform_1, window_bounds = array<i64: 1, 128>}, {pipeline_mode = #tpu.pipeline_mode<synchronous>, transform_indices = @transform_2, window_bounds = array<i64: 1, 128>}, {transform_indices = @transform_3, window_bounds = array<i64: 1, 128, 128>}]} {
    %c0 = arith.constant 0 : index
    %c0_0 = arith.constant 0 : index
    %c0_1 = arith.constant 0 : index
    %0 = vector.load %arg2[%c0, %c0_0, %c0_1] : memref<1x128x128xf32, #tpu.memory_space<vmem>>, vector<1x128x128xf32>
    %1 = vector.shape_cast %0 : vector<1x128x128xf32> to vector<128x128xf32>
    %c0_2 = arith.constant 0 : index
    %c0_3 = arith.constant 0 : index
    %2 = vector.load %arg3[%c0_2, %c0_3] : memref<1x128xf32, #tpu.memory_space<vmem>>, vector<1x128xf32>
    %3 = vector.broadcast %2 : vector<1x128xf32> to vector<128x128xf32>
    %4 = arith.mulf %1, %3 : vector<128x128xf32>
    %c0_4 = arith.constant 0 : index
    %c0_5 = arith.constant 0 : index
    %5 = vector.load %arg4[%c0_4, %c0_5] : memref<1x128xf32, #tpu.memory_space<vmem>>, vector<1x128xf32>
    %6 = vector.broadcast %5 : vector<1x128xf32> to vector<128x128xf32>
    %7 = arith.addf %4, %6 : vector<128x128xf32>
    %cst = arith.constant 0.000000e+00 : f32
    %8 = vector.broadcast %cst : f32 to vector<128x128xf32>
    %9 = arith.maximumf %7, %8 : vector<128x128xf32>
    %c0_6 = arith.constant 0 : index
    %c0_7 = arith.constant 0 : index
    %c0_8 = arith.constant 0 : index
    %10 = vector.load %arg5[%c0_6, %c0_7, %c0_8] : memref<1x128x128xf32, #tpu.memory_space<vmem>>, vector<1x128x128xf32>
    %11 = vector.shape_cast %10 : vector<1x128x128xf32> to vector<128x128xf32>
    %12 = vector.shape_cast %9 : vector<128x128xf32> to vector<1x128x128xf32>
    tpu.vector_store %arg5[%c0_6, %c0_7, %c0_8], %12 {strides = array<i32>} : memref<1x128x128xf32, #tpu.memory_space<vmem>>, vector<1x128x128xf32>,
    return
  }
  func.func @transform_0(%arg0: i32, %arg1: i32) -> (i32, i32, i32) {
    %c0_i32 = arith.constant 0 : i32
    %c0_i32_0 = arith.constant 0 : i32
    return %arg0, %arg1, %c0_i32 : i32, i32, i32
  }
  func.func @transform_1(%arg0: i32, %arg1: i32) -> (i32, i32) {
    %c0_i32 = arith.constant 0 : i32
    %c0_i32_0 = arith.constant 0 : i32
    %c0_i32_1 = arith.constant 0 : i32
    return %c0_i32, %c0_i32_0 : i32, i32
  }
  func.func @transform_2(%arg0: i32, %arg1: i32) -> (i32, i32) {
    %c0_i32 = arith.constant 0 : i32
    %c0_i32_0 = arith.constant 0 : i32
    %c0_i32_1 = arith.constant 0 : i32
    return %c0_i32, %c0_i32_0 : i32, i32
  }
  func.func @transform_3(%arg0: i32, %arg1: i32) -> (i32, i32, i32) {
    %c0_i32 = arith.constant 0 : i32
    %c0_i32_0 = arith.constant 0 : i32
    return %arg0, %arg1, %c0_i32 : i32, i32, i32
  }
}

</mosaic_0001>

<bundles_post_ra>
// kernel: decoder_forward.5
= control target key start
LH: loop header
LB: loop body
LE: loop exit
PB: predicated region body
PF: predicated region fallthrough
CT: control target
= control target key end

     0   :  { %s594_s9 = smov 0   ;;  %s647_s0 = inlined_call_operand.vmem [shape: f32[2,8,1024], index: 0, kind: input, shape index: {}]   ;;  %s648_s1 = inlined_call_operand.vmem [shape: f32[16,8], index: 1, kind: input, shape index: {}]   ;;  %s649_s2 = inlined_call_operand.vmem [shape: f32[2,16,1024], index: 2, kind: output, shape index: {}]  }
   0x1 LB: > { %s540_s10 = sadd.s32 4294967295, %s576_s9   ;;  %p544_p0 = scmp.ge.s32.totalorder %s576_s9, 1  ;;  %s576_s9 = sphi %s594_s9, %s12_s9  }
   0x2   : > { %p112_p1 = scmp.lt.s32.totalorder %s576_s9, 3 }
   0x4   : > { %p113_p2 = pnand %p544_p0, %p112_p1 }
   0x5   : > { %p134_p3 = scmp.lt.s32.totalorder (!%p113_p2), %s540_s10, 1  ;;  %v578_v0 = vmov (!%p113_p2), 0.0   ;;  %v144_v1 = vld [vmem:[%s648_s1] sm:$0xff] (!%p113_p2)  ;;  %vm154_vm0 = vcmask (!%p113_p2), 64512   ;;  %v145_v10 = vld [vmem:[%s648_s1 + $0x8] sm:$0xff] (!%p113_p2) }
   0x6   : > { %116 = sbr.rel (%p113_p2) target bundleno = 245 (0xf5), region = 28  ;;  %225 = vmatprep.mubr.f32.mxu0 (!%p113_p2), %v578_v0  ;;  %302 = vmatprep.mubr.f32.mxu1 (!%p113_p2), %v578_v0 }
   0xd   : > { %s651_s10 = smov (!%p134_p3, %s540_s10), 1 }
   0xe   : > { %s559_s11 = sshll.u32 %s651_s10, 6  ;;  %s560_s19 = sshll.u32 %s651_s10, 7 }
   0xf   : > { %s138_s14 = scalar_lea.vmem %s647_s0, %s559_s11  ;;  %s626_s22 = scalar_lea.vmem %s649_s2, %s560_s19 }
  0x10   : > { %v147_v2 = vld [vmem:[%s138_s14 + $0x8] sm:$0xff]  ;;  %v149_v3 = vld [vmem:[%s138_s14 + $0x18] sm:$0xff]  ;;  %v146_v4 = vld [vmem:[%s138_s14] sm:$0xff] }
  0x11   : > { %161 = vmatprep.subr.mxu0 %v147_v2  ;;  %238 = vmatprep.subr.mxu1 %v149_v3  ;;  %v148_v5 = vld [vmem:[%s138_s14 + $0x10] sm:$0xff]  ;;  %v151_v6 = vld [vmem:[%s138_s14 + $0x28] sm:$0xff]  ;;  %v153_v7 = vld [vmem:[%s138_s14 + $0x38] sm:$0xff] }
  0x12   : > { %162 = vmatpush1.msra.mxu0 %v146_v4  ;;  %239 = vmatpush1.msra.mxu1 %v148_v5  ;;  %v150_v8 = vld [vmem:[%s138_s14 + $0x20] sm:$0xff]  ;;  %v152_v9 = vld [vmem:[%s138_s14 + $0x30] sm:$0xff] }
  0x13   : > { %549 = vmatmul.mubr.msk.f32.vlgmr.msra.gmra.mrb[0].mxu0 %vm154_vm0, %v144_v1  ;;  %551 = vmatmul.mubr.msk.f32.vlgmr.msra.gmra.mrb[0].mxu1 %vm154_vm0, %v144_v1 }
  0x14   : > { %315 = vmatprep.subr.mxu0 %v151_v6  ;;  %392 = vmatprep.subr.mxu1 %v153_v7 }
  0x15   : > { %316 = vmatpush1.msra.mxu0 %v150_v8  ;;  %393 = vmatpush1.msra.mxu1 %v152_v9 }
  0x16   : > { %231 = vmatprep.mubr.f32.mxu0 %v578_v0  ;;  %308 = vmatprep.mubr.f32.mxu1 %v578_v0 }
  0x17   : > { %550 = vmatmul.mubr.msk.f32.gmra.mrb[2].mxu0 %vm154_vm0, %v145_v10  ;;  %552 = vmatmul.mubr.msk.f32.gmra.mrb[2].mxu1 %vm154_vm0, %v145_v10 }
  0x18   : > { %379 = vmatprep.mubr.f32.mxu0 %v578_v0  ;;  %456 = vmatprep.mubr.f32.mxu1 %v578_v0 }
  0x1b   : > { %553 = vmatmul.mubr.msk.f32.vlgmr.msra.gmra.mrb[4].mxu0 %vm154_vm0, %v144_v1  ;;  %555 = vmatmul.mubr.msk.f32.vlgmr.msra.gmra.mrb[4].mxu1 %vm154_vm0, %v144_v1 }
  0x1c   : > { %385 = vmatprep.mubr.f32.mxu0 %v578_v0  ;;  %462 = vmatprep.mubr.f32.mxu1 %v578_v0 }
  0x1f   : > { %554 = vmatmul.mubr.msk.f32.gmra.mrb[6].mxu0 %vm154_vm0, %v145_v10  ;;  %556 = vmatmul.mubr.msk.f32.gmra.mrb[6].mxu1 %vm154_vm0, %v145_v10 }
  0xe6   : > { %v227_v11 = vpop.f32.mrb[0].mxu0  ;;  %v304_v12 = vpop.f32.mrb[0].mxu1 }
  0xe7   : > { %469 = vst [vmem:[%s626_s22] sm:$0xff] %v227_v11  ;;  %471 = vst [vmem:[%s626_s22 + $0x10] sm:$0xff] %v304_v12  ;;  %v229_v13 = vpop.f32.mrb[1].mxu0  ;;  %v306_v14 = vpop.f32.mrb[1].mxu1 }
  0xe8   : > { %470 = vst [vmem:[%s626_s22 + $0x8] sm:$0xff] %v229_v13  ;;  %472 = vst [vmem:[%s626_s22 + $0x18] sm:$0xff] %v306_v14 }
  0xea   : > { %v233_v15 = vpop.f32.mrb[2].mxu0  ;;  %v310_v16 = vpop.f32.mrb[2].mxu1 }
  0xeb   : > { %477 = vst [vmem:[%s626_s22 + $0x40] sm:$0xff] %v233_v15  ;;  %479 = vst [vmem:[%s626_s22 + $0x50] sm:$0xff] %v310_v16  ;;  %v235_v17 = vpop.f32.mrb[3].mxu0  ;;  %v312_v18 = vpop.f32.mrb[3].mxu1 }
  0xec   : > { %478 = vst [vmem:[%s626_s22 + $0x48] sm:$0xff] %v235_v17  ;;  %480 = vst [vmem:[%s626_s22 + $0x58] sm:$0xff] %v312_v18 }
  0xee   : > { %v381_v19 = vpop.f32.mrb[4].mxu0  ;;  %v458_v20 = vpop.f32.mrb[4].mxu1 }
  0xef   : > { %473 = vst [vmem:[%s626_s22 + $0x20] sm:$0xff] %v381_v19  ;;  %475 = vst [vmem:[%s626_s22 + $0x30] sm:$0xff] %v458_v20  ;;  %v383_v21 = vpop.f32.mrb[5].mxu0  ;;  %v460_v22 = vpop.f32.mrb[5].mxu1 }
  0xf0   : > { %474 = vst [vmem:[%s626_s22 + $0x28] sm:$0xff] %v383_v21  ;;  %476 = vst [vmem:[%s626_s22 + $0x38] sm:$0xff] %v460_v22 }
  0xf2   : > { %v387_v23 = vpop.f32.mrb[6].mxu0  ;;  %v464_v24 = vpop.f32.mrb[6].mxu1 }
  0xf3   : > { %481 = vst [vmem:[%s626_s22 + $0x60] sm:$0xff] %v387_v23  ;;  %483 = vst [vmem:[%s626_s22 + $0x70] sm:$0xff] %v464_v24  ;;  %v389_v25 = vpop.f32.mrb[7].mxu0  ;;  %v466_v26 = vpop.f32.mrb[7].mxu1 }
  0xf4   : > { %482 = vst [vmem:[%s626_s22 + $0x68] sm:$0xff] %v389_v25  ;;  %484 = vst [vmem:[%s626_s22 + $0x78] sm:$0xff] %v466_v26 }
  0xf5 PF: > { %s12_s9 = sadd.s32 1, %s576_s9  }
  0xf6   : > { %p9_p4 = scmp.ge.s32.totalorder %s12_s9, 4  }
  0xf8   :  { %11 = sbr.rel (!%p9_p4) target bundleno = 1 (0x1), region = 58 }

// kernel: decoder_forward.6
= control target key start
LH: loop header
LB: loop body
LE: loop exit
PB: predicated region body
PF: predicated region fallthrough
CT: control target
= control target key end

     0   :  { %s934_s9 = smov 0   ;;  %s1045_s0 = inlined_call_operand.vmem [shape: f32[2,8,2048], index: 0, kind: input, shape index: {}]   ;;  %s1046_s1 = inlined_call_operand.vmem [shape: f32[16,8], index: 1, kind: input, shape index: {}]   ;;  %s1047_s2 = inlined_call_operand.vmem [shape: f32[2,16,2048], index: 2, kind: output, shape index: {}]  }
   0x1 LB: > { %s872_s10 = sadd.s32 4294967295, %s916_s9   ;;  %p876_p0 = scmp.ge.s32.totalorder %s916_s9, 1  ;;  %s916_s9 = sphi %s934_s9, %s12_s9  }
   0x2   : > { %p112_p1 = scmp.lt.s32.totalorder %s916_s9, 3 }
   0x4   : > { %p113_p2 = pnand %p876_p0, %p112_p1 }
   0x5   : > { %p134_p3 = scmp.lt.s32.totalorder (!%p113_p2), %s872_s10, 1  ;;  %v918_v0 = vmov (!%p113_p2), 0.0   ;;  %v144_v1 = vld [vmem:[%s1046_s1] sm:$0xff] (!%p113_p2)  ;;  %vm162_vm0 = vcmask (!%p113_p2), 64512   ;;  %v145_v10 = vld [vmem:[%s1046_s1 + $0x8] sm:$0xff] (!%p113_p2) }
   0x6   : > { %116 = sbr.rel (%p113_p2) target bundleno = 261 (0x105), region = 28  ;;  %233 = vmatprep.mubr.f32.mxu0 (!%p113_p2), %v918_v0  ;;  %310 = vmatprep.mubr.f32.mxu1 (!%p113_p2), %v918_v0 }
   0xd   : > { %s1049_s10 = smov (!%p134_p3, %s872_s10), 1 }
   0xe   : > { %s899_s11 = sshll.u32 %s1049_s10, 7  ;;  %s900_s19 = sshll.u32 %s1049_s10, 8 }
   0xf   : > { %s950_s14 = scalar_lea.vmem %s1045_s0, %s899_s11  ;;  %s1008_s22 = scalar_lea.vmem %s1047_s2, %s900_s19 }
  0x10   : > { %v147_v2 = vld [vmem:[%s950_s14 + $0x8] sm:$0xff]  ;;  %v149_v3 = vld [vmem:[%s950_s14 + $0x18] sm:$0xff]  ;;  %v146_v4 = vld [vmem:[%s950_s14] sm:$0xff] }
  0x11   : > { %169 = vmatprep.subr.mxu0 %v147_v2  ;;  %246 = vmatprep.subr.mxu1 %v149_v3  ;;  %v148_v5 = vld [vmem:[%s950_s14 + $0x10] sm:$0xff]  ;;  %v151_v6 = vld [vmem:[%s950_s14 + $0x28] sm:$0xff]  ;;  %v153_v7 = vld [vmem:[%s950_s14 + $0x38] sm:$0xff] }
  0x12   : > { %170 = vmatpush1.msra.mxu0 %v146_v4  ;;  %247 = vmatpush1.msra.mxu1 %v148_v5  ;;  %v150_v8 = vld [vmem:[%s950_s14 + $0x20] sm:$0xff]  ;;  %v152_v9 = vld [vmem:[%s950_s14 + $0x30] sm:$0xff]  ;;  %v155_v11 = vld [vmem:[%s950_s14 + $0x48] sm:$0xff] }
  0x13   : > { %881 = vmatmul.mubr.msk.f32.vlgmr.msra.gmra.mrb[0].mxu0 %vm162_vm0, %v144_v1  ;;  %883 = vmatmul.mubr.msk.f32.vlgmr.msra.gmra.mrb[0].mxu1 %vm162_vm0, %v144_v1  ;;  %v157_v12 = vld [vmem:[%s950_s14 + $0x58] sm:$0xff]  ;;  %v154_v13 = vld [vmem:[%s950_s14 + $0x40] sm:$0xff]  ;;  %v156_v14 = vld [vmem:[%s950_s14 + $0x50] sm:$0xff] }
  0x14   : > { %323 = vmatprep.subr.mxu0 %v151_v6  ;;  %400 = vmatprep.subr.mxu1 %v153_v7  ;;  %v159_v15 = vld [vmem:[%s950_s14 + $0x68] sm:$0xff]  ;;  %v161_v16 = vld [vmem:[%s950_s14 + $0x78] sm:$0xff]  ;;  %v158_v17 = vld [vmem:[%s950_s14 + $0x60] sm:$0xff] }
  0x15   : > { %324 = vmatpush1.msra.mxu0 %v150_v8  ;;  %401 = vmatpush1.msra.mxu1 %v152_v9  ;;  %v160_v18 = vld [vmem:[%s950_s14 + $0x70] sm:$0xff] }
  0x16   : > { %239 = vmatprep.mubr.f32.mxu0 %v918_v0  ;;  %316 = vmatprep.mubr.f32.mxu1 %v918_v0 }
  0x17   : > { %882 = vmatmul.mubr.msk.f32.gmra.mrb[2].mxu0 %vm162_vm0, %v145_v10  ;;  %884 = vmatmul.mubr.msk.f32.gmra.mrb[2].mxu1 %vm162_vm0, %v145_v10 }
  0x18   : > { %387 = vmatprep.mubr.f32.mxu0 %v918_v0  ;;  %464 = vmatprep.mubr.f32.mxu1 %v918_v0 }
  0x19   : > { %477 = vmatprep.subr.mxu0 %v155_v11  ;;  %554 = vmatprep.subr.mxu1 %v157_v12 }
  0x1b   : > { %885 = vmatmul.mubr.msk.f32.vlgmr.msra.gmra.mrb[4].mxu0 %vm162_vm0, %v144_v1  ;;  %887 = vmatmul.mubr.msk.f32.vlgmr.msra.gmra.mrb[4].mxu1 %vm162_vm0, %v144_v1 }
  0x1c   : > { %478 = vmatpush1.msra.mxu0 %v154_v13  ;;  %555 = vmatpush1.msra.mxu1 %v156_v14 }
  0x1d   : > { %393 = vmatprep.mubr.f32.mxu0 %v918_v0  ;;  %470 = vmatprep.mubr.f32.mxu1 %v918_v0 }
  0x1e   : > { %631 = vmatprep.subr.mxu0 %v159_v15  ;;  %708 = vmatprep.subr.mxu1 %v161_v16 }
  0x1f   : > { %886 = vmatmul.mubr.msk.f32.gmra.mrb[6].mxu0 %vm162_vm0, %v145_v10  ;;  %888 = vmatmul.mubr.msk.f32.gmra.mrb[6].mxu1 %vm162_vm0, %v145_v10 }
  0x20   : > { %541 = vmatprep.mubr.f32.mxu0 %v918_v0  ;;  %618 = vmatprep.mubr.f32.mxu1 %v918_v0 }
  0x23   : > { %889 = vmatmul.mubr.msk.f32.vlgmr.msra.gmra.mrb[8].mxu0 %vm162_vm0, %v144_v1  ;;  %891 = vmatmul.mubr.msk.f32.vlgmr.msra.gmra.mrb[8].mxu1 %vm162_vm0, %v144_v1 }
  0x24   : > { %632 = vmatpush1.msra.mxu0 %v158_v17  ;;  %709 = vmatpush1.msra.mxu1 %v160_v18 }
  0x25   : > { %547 = vmatprep.mubr.f32.mxu0 %v918_v0  ;;  %624 = vmatprep.mubr.f32.mxu1 %v918_v0 }
  0x27   : > { %890 = vmatmul.mubr.msk.f32.gmra.mrb[10].mxu0 %vm162_vm0, %v145_v10  ;;  %892 = vmatmul.mubr.msk.f32.gmra.mrb[10].mxu1 %vm162_vm0, %v145_v10 }
  0x28   : > { %695 = vmatprep.mubr.f32.mxu0 %v918_v0  ;;  %772 = vmatprep.mubr.f32.mxu1 %v918_v0 }
  0x2b   : > { %893 = vmatmul.mubr.msk.f32.vlgmr.msra.gmra.mrb[12].mxu0 %vm162_vm0, %v144_v1  ;;  %895 = vmatmul.mubr.msk.f32.vlgmr.msra.gmra.mrb[12].mxu1 %vm162_vm0, %v144_v1 }
  0x2c   : > { %701 = vmatprep.mubr.f32.mxu0 %v918_v0  ;;  %778 = vmatprep.mubr.f32.mxu1 %v918_v0 }
  0x2f   : > { %894 = vmatmul.mubr.msk.f32.gmra.mrb[14].mxu0 %vm162_vm0, %v145_v10  ;;  %896 = vmatmul.mubr.msk.f32.gmra.mrb[14].mxu1 %vm162_vm0, %v145_v10 }
  0xe6   : > { %v235_v19 = vpop.f32.mrb[0].mxu0  ;;  %v312_v20 = vpop.f32.mrb[0].mxu1 }
  0xe7   : > { %785 = vst [vmem:[%s1008_s22] sm:$0xff] %v235_v19  ;;  %787 = vst [vmem:[%s1008_s22 + $0x10] sm:$0xff] %v312_v20  ;;  %v237_v21 = vpop.f32.mrb[1].mxu0  ;;  %v314_v22 = vpop.f32.mrb[1].mxu1 }
  0xe8   : > { %786 = vst [vmem:[%s1008_s22 + $0x8] sm:$0xff] %v237_v21  ;;  %788 = vst [vmem:[%s1008_s22 + $0x18] sm:$0xff] %v314_v22 }
  0xea   : > { %v241_v23 = vpop.f32.mrb[2].mxu0  ;;  %v318_v24 = vpop.f32.mrb[2].mxu1 }
  0xeb   : > { %801 = vst [vmem:[%s1008_s22 + $0x80] sm:$0xff] %v241_v23  ;;  %803 = vst [vmem:[%s1008_s22 + $0x90] sm:$0xff] %v318_v24  ;;  %v243_v25 = vpop.f32.mrb[3].mxu0  ;;  %v320_v26 = vpop.f32.mrb[3].mxu1 }
  0xec   : > { %802 = vst [vmem:[%s1008_s22 + $0x88] sm:$0xff] %v243_v25  ;;  %804 = vst [vmem:[%s1008_s22 + $0x98] sm:$0xff] %v320_v26 }
  0xee   : > { %v389_v27 = vpop.f32.mrb[4].mxu0  ;;  %v466_v28 = vpop.f32.mrb[4].mxu1 }
  0xef   : > { %789 = vst [vmem:[%s1008_s22 + $0x20] sm:$0xff] %v389_v27  ;;  %791 = vst [vmem:[%s1008_s22 + $0x30] sm:$0xff] %v466_v28  ;;  %v391_v29 = vpop.f32.mrb[5].mxu0  ;;  %v468_v30 = vpop.f32.mrb[5].mxu1 }
  0xf0   : > { %790 = vst [vmem:[%s1008_s22 + $0x28] sm:$0xff] %v391_v29  ;;  %792 = vst [vmem:[%s1008_s22 + $0x38] sm:$0xff] %v468_v30 }
  0xf2   : > { %v395_v31 = vpop.f32.mrb[6].mxu0  ;;  %v472_v32 = vpop.f32.mrb[6].mxu1 }
  0xf3   : > { %805 = vst [vmem:[%s1008_s22 + $0xa0] sm:$0xff] %v395_v31  ;;  %807 = vst [vmem:[%s1008_s22 + $0xb0] sm:$0xff] %v472_v32  ;;  %v397_v33 = vpop.f32.mrb[7].mxu0  ;;  %v474_v34 = vpop.f32.mrb[7].mxu1 }
  0xf4   : > { %806 = vst [vmem:[%s1008_s22 + $0xa8] sm:$0xff] %v397_v33  ;;  %808 = vst [vmem:[%s1008_s22 + $0xb8] sm:$0xff] %v474_v34 }
  0xf6   : > { %v543_v35 = vpop.f32.mrb[8].mxu0  ;;  %v620_v36 = vpop.f32.mrb[8].mxu1 }
  0xf7   : > { %793 = vst [vmem:[%s1008_s22 + $0x40] sm:$0xff] %v543_v35  ;;  %795 = vst [vmem:[%s1008_s22 + $0x50] sm:$0xff] %v620_v36  ;;  %v545_v37 = vpop.f32.mrb[9].mxu0  ;;  %v622_v38 = vpop.f32.mrb[9].mxu1 }
  0xf8   : > { %794 = vst [vmem:[%s1008_s22 + $0x48] sm:$0xff] %v545_v37  ;;  %796 = vst [vmem:[%s1008_s22 + $0x58] sm:$0xff] %v622_v38 }
  0xfa   : > { %v549_v39 = vpop.f32.mrb[10].mxu0  ;;  %v626_v40 = vpop.f32.mrb[10].mxu1 }
  0xfb   : > { %809 = vst [vmem:[%s1008_s22 + $0xc0] sm:$0xff] %v549_v39  ;;  %811 = vst [vmem:[%s1008_s22 + $0xd0] sm:$0xff] %v626_v40  ;;  %v551_v41 = vpop.f32.mrb[11].mxu0  ;;  %v628_v42 = vpop.f32.mrb[11].mxu1 }
  0xfc   : > { %810 = vst [vmem:[%s1008_s22 + $0xc8] sm:$0xff] %v551_v41  ;;  %812 = vst [vmem:[%s1008_s22 + $0xd8] sm:$0xff] %v628_v42 }
  0xfe   : > { %v697_v43 = vpop.f32.mrb[12].mxu0  ;;  %v774_v44 = vpop.f32.mrb[12].mxu1 }
  0xff   : > { %797 = vst [vmem:[%s1008_s22 + $0x60] sm:$0xff] %v697_v43  ;;  %799 = vst [vmem:[%s1008_s22 + $0x70] sm:$0xff] %v774_v44  ;;  %v699_v45 = vpop.f32.mrb[13].mxu0  ;;  %v776_v46 = vpop.f32.mrb[13].mxu1 }
 0x100   : > { %798 = vst [vmem:[%s1008_s22 + $0x68] sm:$0xff] %v699_v45  ;;  %800 = vst [vmem:[%s1008_s22 + $0x78] sm:$0xff] %v776_v46 }
 0x102   : > { %v703_v47 = vpop.f32.mrb[14].mxu0  ;;  %v780_v48 = vpop.f32.mrb[14].mxu1 }
 0x103   : > { %813 = vst [vmem:[%s1008_s22 + $0xe0] sm:$0xff] %v703_v47  ;;  %815 = vst [vmem:[%s1008_s22 + $0xf0] sm:$0xff] %v780_v48  ;;  %v705_v49 = vpop.f32.mrb[15].mxu0  ;;  %v782_v50 = vpop.f32.mrb[15].mxu1 }
 0x104   : > { %814 = vst [vmem:[%s1008_s22 + $0xe8] sm:$0xff] %v705_v49  ;;  %816 = vst [vmem:[%s1008_s22 + $0xf8] sm:$0xff] %v782_v50 }
 0x105 PF: > { %s12_s9 = sadd.s32 1, %s916_s9  }
 0x106   : > { %p9_p4 = scmp.ge.s32.totalorder %s12_s9, 4  }
 0x108   :  { %11 = sbr.rel (!%p9_p4) target bundleno = 1 (0x1), region = 58 }

// kernel: decoder_forward.9
= control target key start
LH: loop header
LB: loop body
LE: loop exit
PB: predicated region body
PF: predicated region fallthrough
CT: control target
= control target key end

     0   :  { %s508_s12 = smov 0   ;;  %s510_s13 = smov 0   ;;  %s637_s0 = inlined_call_operand.vmem [shape: f32[2,384,128], index: 0, kind: input, shape index: {}]   ;;  %s638_s1 = inlined_call_operand.vmem [shape: f32[1,128], index: 1, kind: input, shape index: {}]   ;;  %s639_s2 = inlined_call_operand.vmem [shape: f32[1,128], index: 2, kind: input, shape index: {}]   ;;  %s640_s3 = inlined_call_operand.vmem [shape: f32[2,384,128], index: 3, kind: output, shape index: {}]  }
   0x1   :  { %s512_s14 = smov 0   ;;  %s514_s15 = smov 0  }
   0x2   :  { %s516_s16 = smov 0  }
   0x3 LB: > { %s22_s17 = sadd.s32 1, %s478_s14  ;;  %s25_s18 = sadd.s32 1, %s482_s15  ;;  %s486_s16 = sphi %s516_s16, %s13_s16   ;;  %s482_s15 = sphi %s514_s15, %s644_s15   ;;  %s478_s14 = sphi %s512_s14, %s643_s14   ;;  %s474_s13 = sphi %s510_s13, %s642_s13   ;;  %s470_s12 = sphi %s508_s12, %s641_s12  }
   0x4   : > { %p23_p0 = scmp.ge.s32.totalorder %s22_s17, 3  ;;  %p398_p1 = scmp.ge.s32.totalorder %s486_s16, 1 }
   0x5   : > { %p158_p2 = scmp.lt.s32.totalorder %s486_s16, 7 }
   0x6   : > { %s646_s17 = smov (%p23_p0, %s22_s17), 0  ;;  %s648_s18 = smov (!%p23_p0, %s25_s18), %s482_s15 }
   0x7   : > { %p159_p3 = pnand %p398_p1, %p158_p2  ;;  %p27_p4 = scmp.ge.s32.totalorder %s648_s18, 2 }
   0x8   : > { %s399_s19 = sshll.u32 (!%p159_p3), %s470_s12, 4  ;;  %p191_p5 = scmp.lt.s32.totalorder (!%p159_p3), %s474_s13, 1  ;;  %v541_v0 = vld [vmem:[%s638_s1] ss:$0 sm:$0xff] (!%p159_p3) }
   0x9   : > { %s650_s18 = smov (%p27_p4, %s648_s18), 0  ;;  %162 = sbr.rel (%p159_p3) target bundleno = 40 (0x28), region = 32 }
   0xa   : > { %p193_p6 = scmp.lt.s32.totalorder (!%p159_p3), %s399_s19, 47  ;;  %v551_v1 = vld [vmem:[%s639_s2] ss:$0 sm:$0xff] (!%p159_p3) }
  0x10   : > { %s652_s13 = smov (!%p191_p5, %s474_s13), 1  ;;  %s654_s19 = smov (!%p193_p6, %s399_s19), 47 }
  0x11   : > { %s407_s20 = smul.u32 48, %s652_s13 }
  0x13   : > { %s196_s21 = sadd.s32 %s407_s20, %s654_s19 }
  0x14   : > { %s400_s22 = sshll.u32 %s196_s21, 3 }
  0x15   : > { %s546_s27 = scalar_lea.vmem %s637_s0, %s400_s22  ;;  %s574_s5 = scalar_lea.vmem %s640_s3, %s400_s22 }
  0x16   : > { %v210_v2 = vld [vmem:[%s546_s27] sm:$0xff]  ;;  %v211_v3 = vld [vmem:[%s546_s27 + $0x8] sm:$0xff]  ;;  %v212_v4 = vld [vmem:[%s546_s27 + $0x10] sm:$0xff] }
  0x17   : > { %v233_v5 = vmul.f32 %v541_v0, %v210_v2  ;;  %v234_v6 = vmul.f32 %v541_v0, %v211_v3  ;;  %v235_v7 = vmul.f32 %v541_v0, %v212_v4  ;;  %v213_v8 = vld [vmem:[%s546_s27 + $0x18] sm:$0xff]  ;;  %v214_v9 = vld [vmem:[%s546_s27 + $0x20] sm:$0xff]  ;;  %v215_v10 = vld [vmem:[%s546_s27 + $0x28] sm:$0xff] }
  0x18   : > { %v236_v11 = vmul.f32 %v541_v0, %v213_v8  ;;  %v237_v12 = vmul.f32 %v541_v0, %v214_v9  ;;  %v238_v13 = vmul.f32 %v541_v0, %v215_v10  ;;  %v216_v14 = vld [vmem:[%s546_s27 + $0x30] sm:$0xff]  ;;  %v217_v15 = vld [vmem:[%s546_s27 + $0x38] sm:$0xff]  ;;  %v218_v24 = vld [vmem:[%s546_s27 + $0x40] sm:$0xff] }
  0x19   : > { %v256_v16 = vadd.f32 %v551_v1, %v233_v5  ;;  %v257_v17 = vadd.f32 %v551_v1, %v234_v6  ;;  %v258_v18 = vadd.f32 %v551_v1, %v235_v7  ;;  %v239_v19 = vmul.f32 %v541_v0, %v216_v14  ;;  %v219_v25 = vld [vmem:[%s546_s27 + $0x48] sm:$0xff]  ;;  %v220_v26 = vld [vmem:[%s546_s27 + $0x50] sm:$0xff]  ;;  %v221_v31 = vld [vmem:[%s546_s27 + $0x58] sm:$0xff] }
  0x1a   : > { %v259_v20 = vadd.f32 %v551_v1, %v236_v11  ;;  %v260_v21 = vadd.f32 %v551_v1, %v237_v12  ;;  %v261_v22 = vadd.f32 %v551_v1, %v238_v13  ;;  %v240_v23 = vmul.f32 %v541_v0, %v217_v15  ;;  %v222_v32 = vld [vmem:[%s546_s27 + $0x60] sm:$0xff]  ;;  %v223_v33 = vld [vmem:[%s546_s27 + $0x68] sm:$0xff]  ;;  %v224_v38 = vld [vmem:[%s546_s27 + $0x70] sm:$0xff] }
  0x1b   : > { %v272_v27 = vmax.f32 %v256_v16, 0.0  ;;  %v273_v28 = vmax.f32 %v257_v17, 0.0  ;;  %v274_v29 = vmax.f32 %v258_v18, 0.0  ;;  %v262_v30 = vadd.f32 %v551_v1, %v239_v19  ;;  %v225_v43 = vld [vmem:[%s546_s27 + $0x78] sm:$0xff] }
  0x1c   : > { %v275_v34 = vmax.f32 %v259_v20, 0.0  ;;  %v276_v35 = vmax.f32 %v260_v21, 0.0  ;;  %v277_v36 = vmax.f32 %v261_v22, 0.0  ;;  %v263_v37 = vadd.f32 %v551_v1, %v240_v23 }
  0x1d   : > { %288 = vst [vmem:[%s574_s5] sm:$0xff] %v272_v27  ;;  %289 = vst [vmem:[%s574_s5 + $0x8] sm:$0xff] %v273_v28  ;;  %v278_v39 = vmax.f32 %v262_v30, 0.0  ;;  %v241_v40 = vmul.f32 %v541_v0, %v218_v24  ;;  %v242_v41 = vmul.f32 %v541_v0, %v219_v25  ;;  %v243_v42 = vmul.f32 %v541_v0, %v220_v26 }
  0x1e   : > { %290 = vst [vmem:[%s574_s5 + $0x10] sm:$0xff] %v274_v29  ;;  %291 = vst [vmem:[%s574_s5 + $0x18] sm:$0xff] %v275_v34  ;;  %v279_v44 = vmax.f32 %v263_v37, 0.0  ;;  %v244_v45 = vmul.f32 %v541_v0, %v221_v31  ;;  %v245_v46 = vmul.f32 %v541_v0, %v222_v32  ;;  %v246_v47 = vmul.f32 %v541_v0, %v223_v33 }
  0x1f   : > { %292 = vst [vmem:[%s574_s5 + $0x20] sm:$0xff] %v276_v35  ;;  %293 = vst [vmem:[%s574_s5 + $0x28] sm:$0xff] %v277_v36  ;;  %v264_v48 = vadd.f32 %v551_v1, %v241_v40  ;;  %v265_v49 = vadd.f32 %v551_v1, %v242_v41  ;;  %v266_v50 = vadd.f32 %v551_v1, %v243_v42 }
  0x20   : > { %294 = vst [vmem:[%s574_s5 + $0x30] sm:$0xff] %v278_v39  ;;  %v247_v51 = vmul.f32 %v541_v0, %v224_v38  ;;  %295 = vst [vmem:[%s574_s5 + $0x38] sm:$0xff] %v279_v44  ;;  %v267_v52 = vadd.f32 %v551_v1, %v244_v45  ;;  %v268_v53 = vadd.f32 %v551_v1, %v245_v46 }
  0x21   : > { %v269_v54 = vadd.f32 %v551_v1, %v246_v47  ;;  %v248_v55 = vmul.f32 %v541_v0, %v225_v43  ;;  %v280_v56 = vmax.f32 %v264_v48, 0.0  ;;  %v281_v57 = vmax.f32 %v265_v49, 0.0 }
  0x22   : > { %v282_v58 = vmax.f32 %v266_v50, 0.0  ;;  %v270_v59 = vadd.f32 %v551_v1, %v247_v51  ;;  %v283_v60 = vmax.f32 %v267_v52, 0.0  ;;  %v284_v61 = vmax.f32 %v268_v53, 0.0 }
  0x23   : > { %v285_v62 = vmax.f32 %v269_v54, 0.0  ;;  %v271_v63 = vadd.f32 %v551_v1, %v248_v55  ;;  %296 = vst [vmem:[%s574_s5 + $0x40] sm:$0xff] %v280_v56  ;;  %297 = vst [vmem:[%s574_s5 + $0x48] sm:$0xff] %v281_v57 }
  0x24   : > { %298 = vst [vmem:[%s574_s5 + $0x50] sm:$0xff] %v282_v58  ;;  %v286_v2 = vmax.f32 %v270_v59, 0.0  ;;  %299 = vst [vmem:[%s574_s5 + $0x58] sm:$0xff] %v283_v60 }
  0x25   : > { %300 = vst [vmem:[%s574_s5 + $0x60] sm:$0xff] %v284_v61  ;;  %301 = vst [vmem:[%s574_s5 + $0x68] sm:$0xff] %v285_v62  ;;  %v287_v0 = vmax.f32 %v271_v63, 0.0 }
  0x26   : > { %302 = vst [vmem:[%s574_s5 + $0x70] sm:$0xff] %v286_v2 }
  0x27   : > { %303 = vst [vmem:[%s574_s5 + $0x78] sm:$0xff] %v287_v0 }
  0x28 PF: > { %s13_s16 = sadd.s32 1, %s486_s16   ;;  %s641_s12 = smov %s478_s14 }
  0x29   : > { %p10_p7 = scmp.ge.s32.totalorder %s13_s16, 8   ;;  %s642_s13 = smov %s482_s15 }
  0x2a   : > { %s643_s14 = smov %s646_s17  ;;  %s644_s15 = smov %s650_s18 }
  0x2b   :  { %12 = sbr.rel (!%p10_p7) target bundleno = 3 (0x3), region = 62 }

// kernel: decoder_forward.8
= control target key start
LH: loop header
LB: loop body
LE: loop exit
PB: predicated region body
PF: predicated region fallthrough
CT: control target
= control target key end

     0   :  { %s3911_s27 = smov 0   ;;  %s3913_s28 = smov 0   ;;  %s4548_s0 = inlined_call_operand.vmem [shape: f32[2,384,128], index: 0, kind: input, shape index: {}, may-alias: {0,1,2}]   ;;  %s4549_s1 = inlined_call_operand.vmem [shape: f32[2,384,128], index: 1, kind: input, shape index: {}, may-alias: {0,1,2}]   ;;  %s4550_s2 = inlined_call_operand.vmem [shape: f32[2,384,128], index: 2, kind: input, shape index: {}, may-alias: {0,1,2}]   ;;  %s4551_s3 = inlined_call_operand.vmem [shape: f32[3,166,1], index: 3, kind: input, shape index: {}]   ;;  %s4552_s4 = inlined_call_operand.vmem [shape: f32[1,128], index: 4, kind: input, shape index: {}]   ;;  %s4553_s5 = inlined_call_operand.vmem [shape: f32[1,128], index: 5, kind: input, shape index: {}]   ;;  %s4554_s6 = inlined_call_operand.vmem [shape: bf16[9,128,128], index: 6, kind: input, shape index: {}]   ;;  %s4555_s7 = inlined_call_operand.vmem [shape: f32[2,384,128], index: 7, kind: output, shape index: {0}]   ;;  %s4556_s8 = inlined_call_operand.vmem [shape: f32[2,3,8,128], index: 8, kind: output, shape index: {1}]  }
   0x1   :  { %s3915_s29 = smov 0   ;;  %s3917_s30 = smov 0  }
   0x2   :  { %s3919_s9 = smov 0  }
   0x3 LB: > { %s28_s10 = sadd.s32 1, %s3854_s29  ;;  %s31_s11 = sadd.s32 1, %s3858_s30  ;;  %s3862_s9 = sphi %s3919_s9, %s19_s9   ;;  %s3858_s30 = sphi %s3917_s30, %s4561_s30   ;;  %s3854_s29 = sphi %s3915_s29, %s4560_s29   ;;  %s3850_s28 = sphi %s3913_s28, %s4559_s28   ;;  %s3846_s27 = sphi %s3911_s27, %s4558_s27  }
   0x4   : > { %p29_p0 = scmp.ge.s32.totalorder %s28_s10, 3  ;;  %p2909_p1 = scmp.ge.s32.totalorder %s3862_s9, 1 }
   0x5   : > { %p356_p2 = scmp.lt.s32.totalorder %s3862_s9, 7 }
   0x6   : > { %s4563_s10 = smov (%p29_p0, %s28_s10), 0  ;;  %s4565_s11 = smov (!%p29_p0, %s31_s11), %s3858_s30 }
   0x7   : > { %p357_p3 = pnand %p2909_p1, %p356_p2  ;;  %p33_p4 = scmp.ge.s32.totalorder %s4565_s11, 2 }
   0x8   : > { %p477_p5 = scmp.lt.s32.totalorder (!%p357_p3), %s3846_s27, 2  ;;  %v3864_v0 = vmov (!%p357_p3), 0   ;;  %v3752_v1 = vld [vmem:[%s4554_s6 + $0x100] sm:$0xff] (!%p357_p3)   ;;  %v3753_v2 = vld [vmem:[%s4554_s6 + $0x108] sm:$0xff] (!%p357_p3)   ;;  %v3754_v3 = vld [vmem:[%s4554_s6 + $0x110] sm:$0xff] (!%p357_p3)   ;;  %p439_p6 = scmp.lt.s32.totalorder (!%p357_p3), %s3850_s28, 1 }
   0x9   : > { %s4567_s11 = smov (%p33_p4, %s4565_s11), 0  ;;  %360 = sbr.rel (%p357_p3) target bundleno = 567 (0x237), region = 48 }
   0xa   : > { %3751 = vset.pattern.permute.xlu1 (!%p357_p3), %v3864_v0  ;;  %3750 = vset.pattern.permute.xlu0 (!%p357_p3), %v3864_v0  ;;  %v3755_v8 = vld [vmem:[%s4554_s6 + $0x118] sm:$0xff] (!%p357_p3)   ;;  %v3756_v11 = vld [vmem:[%s4554_s6 + $0x120] sm:$0xff] (!%p357_p3)   ;;  %v3758_v15 = vld [vmem:[%s4554_s6 + $0x128] sm:$0xff] (!%p357_p3)   ;;  %v3865_v18 = vmov (!%p357_p3), 0.0   ;;  %s2910_s18 = sadd.s32 (!%p357_p3), 4294967295, %s3846_s27  ;;  %vm711_vm0 = vcmask (!%p357_p3), 1044480  }
   0xb   : > { %3401 = vmatprep.subr.bf16.mxu0 (!%p357_p3), %v3752_v1  ;;  %v3757_v12 = vld [vmem:[%s4554_s6 + $0x40] sm:$0xff] (!%p357_p3)   ;;  %v3759_v16 = vld [vmem:[%s4554_s6 + $0x48] sm:$0xff] (!%p357_p3)   ;;  %v3760_v20 = vld [vmem:[%s4554_s6 + $0x130] sm:$0xff] (!%p357_p3)   ;;  %p436_p7 = scmp.gt.s32.totalorder (!%p357_p3), %s2910_s18, 0 }
   0xc   : > { %3402 = vmatpush3.bf16.msra.mxu0 (!%p357_p3), %v3752_v1  ;;  %3273 = vmatprep.subr.bf16.mxu1 (!%p357_p3), %v3757_v12  ;;  %v3761_v21 = vld [vmem:[%s4554_s6 + $0x50] sm:$0xff] (!%p357_p3)   ;;  %v3762_v24 = vld [vmem:[%s4554_s6 + $0x138] sm:$0xff] (!%p357_p3)   ;;  %v4020_v28 = vld [vmem:[%s4554_s6 + $0x140] sm:$0xff] (!%p357_p3)  }
   0xd   : > { %3403 = vmatprep.subr.bf16.mxu0 (!%p357_p3), %v3753_v2  ;;  %3274 = vmatpush3.bf16.msra.mxu1 (!%p357_p3), %v3757_v12  ;;  %v3763_v25 = vld [vmem:[%s4554_s6 + $0x58] sm:$0xff] (!%p357_p3)   ;;  %v3764_v29 = vld [vmem:[%s4554_s6 + $0x60] sm:$0xff] (!%p357_p3)   ;;  %v3766_v32 = vld [vmem:[%s4554_s6 + $0x68] sm:$0xff] (!%p357_p3)  }
   0xe   : > { %3275 = vmatprep.subr.bf16.mxu1 (!%p357_p3), %v3759_v16  ;;  %v3768_v35 = vld [vmem:[%s4554_s6 + $0x70] sm:$0xff] (!%p357_p3)   ;;  %v3770_v38 = vld [vmem:[%s4554_s6 + $0x78] sm:$0xff] (!%p357_p3)   ;;  %v4045_v40 = vld [vmem:[%s4554_s6] sm:$0xff] (!%p357_p3)  }
   0xf   : > { %v4063_v41 = vld [vmem:[%s4552_s4] ss:$0 sm:$0xff] (!%p357_p3) }
  0x10   : > { %s3950_s14 = scalar_select %p477_p5, %s3846_s27, 2  ;;  %3404 = vmatpush3.bf16.msra.mxu0 %v3753_v2  ;;  %v4072_v44 = vld [vmem:[%s4553_s5] ss:$0 sm:$0xff] }
  0x11   : > { %3405 = vmatprep.subr.bf16.mxu0 %v3754_v3  ;;  %s4569_s28 = smov (!%p439_p6, %s3850_s28), 1  ;;  %3276 = vmatpush3.bf16.msra.mxu1 %v3759_v16  ;;  %s4571_s18 = smov (!%p436_p7, %s2910_s18), 0 }
  0x12   : > { %s3706_s17 = smul.u32 168, %s3950_s14  ;;  %3277 = vmatprep.subr.bf16.mxu1 %v3761_v21  ;;  %s2911_s19 = sshll.u32 %s4571_s18, 4 }
  0x13   : > { %s3707_s25 = smul.u32 3, %s4569_s28  ;;  %p441_p8 = scmp.lt.s32.totalorder %s2911_s19, 47 }
  0x14   : > { %s3959_s20 = scalar_lea.vmem %s4551_s3, %s3706_s17  ;;  %3406 = vmatpush3.bf16.msra.mxu0 %v3754_v3  ;;  %s4050_s21 = smul.u32 48, %s4569_s28 }
  0x15   : > { %v505_v4 = vld [vmem:[%s3959_s20 + $0x20] sm:$0xff]  ;;  %v503_v5 = vld [vmem:[%s3959_s20 + $0x10] sm:$0xff]  ;;  %v506_v6 = vld [vmem:[%s3959_s20 + $0x28] sm:$0xff]  ;;  %3407 = vmatprep.subr.bf16.mxu0 %v3755_v8  ;;  %s497_s16 = sadd.s32 %s3707_s25, %s3950_s14  ;;  %3278 = vmatpush3.bf16.msra.mxu1 %v3761_v21  ;;  %s4573_s19 = smov (!%p441_p8, %s2911_s19), 47 }
  0x16   : > { %653 = vperm.xlu1 %3751, %v505_v4   ;;  %560 = vperm.xlu0 %3750, %v503_v5   ;;  %v504_v7 = vld [vmem:[%s3959_s20 + $0x18] sm:$0xff]  ;;  %v507_v10 = vld [vmem:[%s3959_s20 + $0x30] sm:$0xff]  ;;  %v510_v13 = vld [vmem:[%s3959_s20 + $0x48] sm:$0xff]  ;;  %s2920_s17 = sshll.u32 %s497_s16, 3  ;;  %s444_s22 = sadd.s32 %s4050_s21, %s4573_s19 }
  0x17   : > { %v508_v9 = vld [vmem:[%s3959_s20 + $0x38] sm:$0xff]  ;;  %v509_v14 = vld [vmem:[%s3959_s20 + $0x40] sm:$0xff]  ;;  %s3993_s23 = scalar_lea.vmem %s4556_s8, %s2920_s17  ;;  %v511_v19 = vld [vmem:[%s3959_s20 + $0x50] sm:$0xff]  ;;  %3279 = vmatprep.subr.bf16.mxu1 %v3763_v25  ;;  %s2912_s24 = sshll.u32 %s444_s22, 3 }
  0x18   : > { %3408 = vmatpush3.bf16.msra.mxu0 %v3755_v8  ;;  %v512_v17 = vld [vmem:[%s3959_s20 + $0x58] sm:$0xff]  ;;  %2717 = vst [vmem:[%s3993_s23 + $0x2] sm:$0x3f] %v3865_v18  ;;  %v514_v22 = vld [vmem:[%s3959_s20 + $0x68] sm:$0xff]  ;;  %v513_v23 = vld [vmem:[%s3959_s20 + $0x60] sm:$0xff]  ;;  %s4057_s25 = scalar_lea.vmem %s4548_s0, %s2912_s24  ;;  %s461_s22 = sadd.s32 1, %s3846_s27 }
  0x19   : > { %3409 = vmatprep.subr.bf16.mxu0 %v3756_v11  ;;  %v515_v26 = vld [vmem:[%s3959_s20 + $0x70] sm:$0xff]  ;;  %v501_v27 = vld [vmem:[%s3959_s20] sm:$0xff]  ;;  %3280 = vmatpush3.bf16.msra.mxu1 %v3763_v25  ;;  %v502_v30 = vld [vmem:[%s3959_s20 + $0x8] sm:$0xff]  ;;  %p462_p10 = scmp.lt.s32.totalorder %s461_s22, 2 }
  0x1a   : > { %657 = vperm.xlu1 %3751, %v506_v6   ;;  %649 = vperm.xlu0 %3750, %v504_v7   ;;  %v516_v31 = vld [vmem:[%s3959_s20 + $0x78] sm:$0xff]  ;;  %v517_v33 = vld [vmem:[%s3959_s20 + $0x80] sm:$0xff]  ;;  %v518_v34 = vld [vmem:[%s3959_s20 + $0x88] sm:$0xff] }
  0x1b   : > { %3281 = vmatprep.subr.bf16.mxu1 %v3764_v29  ;;  %v519_v36 = vld [vmem:[%s3959_s20 + $0x90] sm:$0xff]  ;;  %v520_v37 = vld [vmem:[%s3959_s20 + $0x98] sm:$0xff]  ;;  %v521_v39 = vld [vmem:[%s3959_s20 + $0xa0] sm:$0x3f]  ;;  %s2913_s20 = sshll.u32 %s3846_s27, 4  ;;  %s4577_s22 = smov (!%p462_p10, %s461_s22), 2 }
  0x1c   : > { %3410 = vmatpush3.bf16.msra.mxu0 %v3756_v11  ;;  %p454_p9 = scmp.lt.s32.totalorder %s2913_s20, 47  ;;  %v524_v42 = vld [vmem:[%s4057_s25 + $0x7d] sm:$0x7]  ;;  %s2915_s27 = sshll.u32 %s4577_s22, 4 }
  0x1d   : > { %3411 = vmatprep.subr.bf16.mxu0 %v3758_v15  ;;  %3282 = vmatpush3.bf16.msra.mxu1 %v3764_v29  ;;  %v534_v43 = vmul.f32 %v4063_v41, %v524_v42  ;;  %p4125_p11 = scmp.lt.s32.totalorder %s2915_s27, 47 }
  0x1e   : > { %665 = vperm.xlu1 %3751, %v508_v9   ;;  %661 = vperm.xlu0 %3750, %v507_v10   ;;  %s4575_s20 = smov (!%p454_p9, %s2913_s20), 47 }
  0x1f   : > { %3283 = vmatprep.subr.bf16.mxu1 %v3766_v32  ;;  %s457_s12 = sadd.s32 %s4050_s21, %s4575_s20  ;;  %v544_v45 = vadd.f32 %v4072_v44, %v534_v43  ;;  %s4579_s27 = smov (!%p4125_p11, %s2915_s27), 47 }
  0x20   : > { %3412 = vmatpush3.bf16.msra.mxu0 %v3758_v15  ;;  %s4066_s28 = sshll.u32 %s457_s12, 3 }
  0x21   : > { %3413 = vmatprep.subr.bf16.mxu0 %v3760_v20  ;;  %3284 = vmatpush3.bf16.msra.mxu1 %v3766_v32  ;;  %s4078_s20 = scalar_lea.vmem %s4549_s1, %s4066_s28  ;;  %v547_v54 = vmax.f32 %v544_v45, 0.0  ;;  %s4495_s19 = scalar_lea.vmem %s4555_s7, %s4066_s28 }
  0x22   : > { %673 = vperm.xlu1 %3751, %v510_v13   ;;  %669 = vperm.xlu0 %3750, %v509_v14   ;;  %v571_v46 = vld [vmem:[%s4078_s20 + $0x10] sm:$0xff]  ;;  %v569_v47 = vld [vmem:[%s4078_s20] sm:$0xff]  ;;  %v570_v48 = vld [vmem:[%s4078_s20 + $0x8] sm:$0xff] }
  0x23   : > { %3285 = vmatprep.subr.bf16.mxu1 %v3768_v35  ;;  %v572_v49 = vld [vmem:[%s4078_s20 + $0x18] sm:$0xff]  ;;  %v573_v50 = vld [vmem:[%s4078_s20 + $0x20] sm:$0xff]  ;;  %v594_v51 = vmul.f32 %v4063_v41, %v571_v46  ;;  %v592_v52 = vmul.f32 %v4063_v41, %v569_v47  ;;  %v593_v53 = vmul.f32 %v4063_v41, %v570_v48  ;;  %v574_v57 = vld [vmem:[%s4078_s20 + $0x28] sm:$0xff] }
  0x24   : > { %3414 = vmatpush3.bf16.msra.mxu0 %v3760_v20  ;;  %v595_v55 = vmul.f32 %v4063_v41, %v572_v49  ;;  %v596_v56 = vmul.f32 %v4063_v41, %v573_v50  ;;  %v575_v63 = vld [vmem:[%s4078_s20 + $0x30] sm:$0xff]  ;;  %v597_v3 = vmul.f32 %v4063_v41, %v574_v57  ;;  %v576_v6 = vld [vmem:[%s4078_s20 + $0x38] sm:$0xff]  ;;  %v577_v15 = vld [vmem:[%s4078_s20 + $0x40] sm:$0xff] }
  0x25   : > { %3415 = vmatprep.subr.bf16.mxu0 %v3762_v24  ;;  %3286 = vmatpush3.bf16.msra.mxu1 %v3768_v35  ;;  %v617_v60 = vadd.f32 %v4072_v44, %v594_v51  ;;  %v615_v61 = vadd.f32 %v4072_v44, %v592_v52  ;;  %v616_v62 = vadd.f32 %v4072_v44, %v593_v53  ;;  %v580_v52 = vld [vmem:[%s4078_s20 + $0x58] sm:$0xff] }
  0x26   : > { %681 = vperm.xlu1 %3751, %v512_v17   ;;  %677 = vperm.xlu0 %3750, %v511_v19   ;;  %v618_v1 = vadd.f32 %v4072_v44, %v595_v55  ;;  %v619_v2 = vadd.f32 %v4072_v44, %v596_v56  ;;  %v598_v5 = vmul.f32 %v4063_v41, %v575_v63 }
  0x27   : > { %3287 = vmatprep.subr.bf16.mxu1 %v3770_v38  ;;  %v633_v8 = vmax.f32 %v617_v60, 0.0  ;;  %v631_v10 = vmax.f32 %v615_v61, 0.0  ;;  %v632_v11 = vmax.f32 %v616_v62, 0.0  ;;  %v620_v18 = vadd.f32 %v4072_v44, %v597_v3 }
  0x28   : > { %3416 = vmatpush3.bf16.msra.mxu0 %v3762_v24  ;;  %v634_v16 = vmax.f32 %v618_v1, 0.0  ;;  %v635_v17 = vmax.f32 %v619_v2, 0.0  ;;  %v599_v19 = vmul.f32 %v4063_v41, %v576_v6  ;;  %v603_v63 = vmul.f32 %v4063_v41, %v580_v52 }
  0x29   : > { %3433 = vmatprep.subr.bf16.mxu0 %v4020_v28  ;;  %3288 = vmatpush3.bf16.msra.mxu1 %v3770_v38  ;;  %v636_v35 = vmax.f32 %v620_v18, 0.0  ;;  %v522_v38 = vld [vmem:[%s4057_s25 + $0x6d] sm:$0xff] }
  0x2a   : > { %689 = vperm.xlu1 %3751, %v514_v22   ;;  %685 = vperm.xlu0 %3750, %v513_v23   ;;  %v621_v23 = vadd.f32 %v4072_v44, %v598_v5  ;;  %v532_v55 = vmul.f32 %v4063_v41, %v522_v38 }
  0x2b   : > { %3305 = vmatprep.subr.bf16.mxu1 %v4045_v40 }
  0x2c   : > { %v637_v43 = vmax.f32 %v621_v23, 0.0 }
  0x2e   : > { %693 = vperm.xlu0 %3750, %v515_v26   ;;  %550 = vperm.xlu1 %3751, %v501_v27  }
  0x32   : > { %555 = vperm.xlu0 %3750, %v502_v30   ;;  %697 = vperm.xlu1 %3751, %v516_v31   ;;  %v600_v30 = vmul.f32 %v4063_v41, %v577_v15  ;;  %v578_v31 = vld [vmem:[%s4078_s20 + $0x48] sm:$0xff] }
  0x33   : > { %v601_v45 = vmul.f32 %v4063_v41, %v578_v31  ;;  %v583_v31 = vld [vmem:[%s4078_s20 + $0x70] sm:$0xff] }
  0x34   : > { %v623_v50 = vadd.f32 %v4072_v44, %v600_v30 }
  0x35   : > { %v624_v62 = vadd.f32 %v4072_v44, %v601_v45 }
  0x36   : > { %701 = vperm.xlu0 %3750, %v517_v33   ;;  %705 = vperm.xlu1 %3751, %v518_v34   ;;  %v579_v34 = vld [vmem:[%s4078_s20 + $0x50] sm:$0xff] }
  0x37   : > { %v602_v51 = vmul.f32 %v4063_v41, %v579_v34  ;;  %v640_v15 = vmax.f32 %v624_v62, 0.0 }
  0x39   : > { %v625_v5 = vadd.f32 %v4072_v44, %v602_v51 }
  0x3a   : > { %709 = vperm.xlu0 %3750, %v519_v36   ;;  %821 = vperm.xlu1 %3751, %v520_v37   ;;  %v622_v36 = vadd.f32 %v4072_v44, %v599_v19 }
  0x3b   : > { %v641_v23 = vmax.f32 %v625_v5, 0.0 }
  0x3c   : > { %v638_v56 = vmax.f32 %v622_v36, 0.0 }
  0x3e   : > { %825 = vperm.xlu0 %3750, %v521_v39  }
  0x95   : > { %v654_v58 = vpop.permute.xlu1 %653  ;;  %v561_v59 = vpop.permute.xlu0 %560 }
  0x96   : > { %v565_v0 = vmul.f32 %v561_v59, %v547_v54  ;;  %v715_v4 = vrot.slane %v654_v58, 3  ;;  %v712_v12 = vrot.slane %v561_v59, 3  ;;  %v523_v58 = vld [vmem:[%s4057_s25 + $0x75] sm:$0xff]  ;;  %v3767_v59 = vld [vmem:[%s4554_s6 + $0x148] sm:$0xff]   ;;  %s470_s25 = sadd.s32 %s4050_s21, %s4579_s27 }
  0x97   : > { %s2916_s21 = sshll.u32 %s470_s25, 3 }
  0x98   : > { %568 = vst [vmem:[#allocation2 + $0x10] sm:$0x7] %v565_v0  ;;  %s4191_s17 = scalar_lea.vmem %s4550_s2, %s2916_s21 }
  0x99   : > { %v658_v7 = vpop.permute.xlu1 %657  ;;  %v650_v9 = vpop.permute.xlu0 %649 }
  0x9a   : > { %v717_v13 = vrot.slane %v658_v7, 3  ;;  %v713_v14 = vrot.slane %v650_v9, 3  ;;  %v533_v9 = vmul.f32 %v4063_v41, %v523_v58 }
  0x9c   : > { %v4109_v20 = vsel %vm711_vm0, %v715_v4, %v717_v13  ;;  %v4112_v21 = vsel %vm711_vm0, %v712_v12, %v713_v14  ;;  %v4115_v22 = vsel %vm711_vm0, %v713_v14, %v715_v4  ;;  %v639_v4 = vmax.f32 %v623_v50, 0.0  ;;  %v3769_v12 = vld [vmem:[%s4554_s6 + $0x150] sm:$0xff]  }
  0x9d   : > { %v763_v24 = vmul.f32 %v4109_v20, %v633_v8  ;;  %v761_v25 = vmul.f32 %v4112_v21, %v631_v10  ;;  %v762_v26 = vmul.f32 %v4115_v22, %v632_v11  ;;  %v666_v27 = vpop.permute.xlu1 %665  ;;  %v662_v29 = vpop.permute.xlu0 %661  ;;  %v542_v8 = vadd.f32 %v4072_v44, %v532_v55  ;;  %v581_v10 = vld [vmem:[%s4078_s20 + $0x60] sm:$0xff] }
  0x9e   : > { %v721_v32 = vrot.slane %v666_v27, 3  ;;  %v719_v33 = vrot.slane %v662_v29, 3  ;;  %v543_v30 = vadd.f32 %v4072_v44, %v533_v9  ;;  %v3773_v55 = vld [vmem:[%s4554_s6 + $0x160] sm:$0xff]  }
  0x9f   : > { %779 = vst [vmem:[#allocation2 + $0x23] sm:$0xff] %v763_v24  ;;  %777 = vst [vmem:[#allocation2 + $0x13] sm:$0xff] %v761_v25  ;;  %v1631_v37 = vpack.c.bf16 %v762_v26, %v761_v25  ;;  %v582_v25 = vld [vmem:[%s4078_s20 + $0x68] sm:$0xff]  ;;  %v545_v29 = vmax.f32 %v542_v8, 0.0 }
  0xa0   : > { %778 = vst [vmem:[#allocation2 + $0x1b] sm:$0xff] %v762_v26  ;;  %v4133_v39 = vsel %vm711_vm0, %v717_v13, %v719_v33  ;;  %v4136_v42 = vsel %vm711_vm0, %v719_v33, %v721_v32  ;;  %v3771_v33 = vld [vmem:[%s4554_s6 + $0x158] sm:$0xff]   ;;  %v546_v52 = vmax.f32 %v543_v30, 0.0  ;;  %v3775_v8 = vld [vmem:[%s4554_s6 + $0x168] sm:$0xff]  }
  0xa1   : > { %v764_v46 = vmul.f32 %v4133_v39, %v634_v16  ;;  %v765_v47 = vmul.f32 %v4136_v42, %v635_v17  ;;  %v674_v48 = vpop.permute.xlu1 %673  ;;  %v670_v49 = vpop.permute.xlu0 %669  ;;  %3417 = vmatprep.mubr.bf16.mxu0 %v1631_v37  ;;  %v626_v16 = vadd.f32 %v4072_v44, %v603_v63  ;;  %v605_v37 = vmul.f32 %v4063_v41, %v582_v25  ;;  %v3777_v25 = vld [vmem:[%s4554_s6 + $0x170] sm:$0xff]  }
  0xa2   : > { %v725_v53 = vrot.slane %v674_v48, 3  ;;  %v723_v54 = vrot.slane %v670_v49, 3  ;;  %v606_v48 = vmul.f32 %v4063_v41, %v583_v31  ;;  %v584_v49 = vld [vmem:[%s4078_s20 + $0x78] sm:$0xff] }
  0xa3   : > { %780 = vst [vmem:[#allocation2 + $0x2b] sm:$0xff] %v764_v46  ;;  %781 = vst [vmem:[#allocation2 + $0x33] sm:$0xff] %v765_v47  ;;  %v1632_v57 = vpack.c.bf16 %v764_v46, %v763_v24  ;;  %v604_v24 = vmul.f32 %v4063_v41, %v581_v10  ;;  %v642_v36 = vmax.f32 %v626_v16, 0.0  ;;  %v607_v58 = vmul.f32 %v4063_v41, %v584_v49 }
  0xa4   : > { %v4156_v60 = vsel %vm711_vm0, %v721_v32, %v723_v54  ;;  %v4159_v61 = vsel %vm711_vm0, %v723_v54, %v725_v53 }
  0xa5   : > { %v766_v0 = vmul.f32 %v4156_v60, %v636_v35  ;;  %v767_v1 = vmul.f32 %v4159_v61, %v637_v43  ;;  %v682_v2 = vpop.permute.xlu1 %681  ;;  %v678_v3 = vpop.permute.xlu0 %677  ;;  %3418 = vmatmul.mubr.bf16.vlgmr.msra.gmra.mrb[0].mxu0 %v1632_v57  ;;  %v628_v57 = vadd.f32 %v4072_v44, %v605_v37 }
  0xa6   : > { %v729_v6 = vrot.slane %v682_v2, 3  ;;  %v727_v7 = vrot.slane %v678_v3, 3  ;;  %3434 = vmatpush3.bf16.msra.mxu0 %v4020_v28  ;;  %v795_v3 = vld [vmem:[%s4191_s17 + $0x10] sm:$0x7] }
  0xa7   : > { %782 = vst [vmem:[#allocation2 + $0x3b] sm:$0xff] %v766_v0  ;;  %783 = vst [vmem:[#allocation2 + $0x43] sm:$0xff] %v767_v1  ;;  %v1633_v11 = vpack.c.bf16 %v766_v0, %v765_v47  ;;  %3435 = vmatprep.subr.bf16.mxu0 %v3767_v59  ;;  %v627_v47 = vadd.f32 %v4072_v44, %v604_v24  ;;  %v644_v10 = vmax.f32 %v628_v57, 0.0  ;;  %v3774_v57 = vld [vmem:[%s4554_s6 + $0x8] sm:$0xff]  }
  0xa8   : > { %v4176_v13 = vsel %vm711_vm0, %v725_v53, %v727_v7  ;;  %v4179_v14 = vsel %vm711_vm0, %v727_v7, %v729_v6  ;;  %v793_v53 = vld [vmem:[%s4191_s17] sm:$0xff] }
  0xa9   : > { %v768_v28 = vmul.f32 %v4176_v13, %v638_v56  ;;  %v769_v17 = vmul.f32 %v4179_v14, %v639_v4  ;;  %v690_v18 = vpop.permute.xlu1 %689  ;;  %v686_v19 = vpop.permute.xlu0 %685  ;;  %3421 = vmatprep.mubr.bf16.mxu0 %v1633_v11  ;;  %v643_v0 = vmax.f32 %v627_v47, 0.0  ;;  %v803_v2 = vmul.f32 %v4063_v41, %v793_v53  ;;  %v3779_v47 = vld [vmem:[%s4554_s6 + $0x178] sm:$0xff]  }
  0xaa   : > { %v733_v26 = vrot.slane %v690_v18, 3  ;;  %v731_v27 = vrot.slane %v686_v19, 3  ;;  %3436 = vmatpush3.bf16.msra.mxu0 %v3767_v59  ;;  %v630_v11 = vadd.f32 %v4072_v44, %v607_v58 }
  0xab   : > { %784 = vst [vmem:[#allocation2 + $0x4b] sm:$0xff] %v768_v28  ;;  %785 = vst [vmem:[#allocation2 + $0x53] sm:$0xff] %v769_v17  ;;  %v1634_v32 = vpack.c.bf16 %v768_v28, %v767_v1  ;;  %3437 = vmatprep.subr.bf16.mxu0 %v3769_v12  ;;  %v629_v1 = vadd.f32 %v4072_v44, %v606_v48  ;;  %v813_v18 = vadd.f32 %v4072_v44, %v803_v2  ;;  %v1817_v2 = vld [vmem:[#allocation2 + $0x14] sm:$0xff] }
  0xac   : > { %v4197_v34 = vsel %vm711_vm0, %v729_v6, %v731_v27  ;;  %v4200_v35 = vsel %vm711_vm0, %v731_v27, %v733_v26  ;;  %v794_v6 = vld [vmem:[%s4191_s17 + $0x8] sm:$0xff] }
  0xad   : > { %v770_v38 = vmul.f32 %v4197_v34, %v640_v15  ;;  %v771_v43 = vmul.f32 %v4200_v35, %v641_v23  ;;  %v694_v45 = vpop.permute.xlu0 %693  ;;  %v551_v46 = vpop.permute.xlu1 %550  ;;  %3422 = vmatmul.mubr.bf16.gmra.mrb[4].mxu0 %v1634_v32  ;;  %v804_v19 = vmul.f32 %v4063_v41, %v794_v6 }
  0xae   : > { %v735_v50 = vrot.slane %v694_v45, 3  ;;  %v4208_v51 = vmul.f32 %v551_v46, %v545_v29  ;;  %3438 = vmatpush3.bf16.msra.mxu0 %v3769_v12  ;;  %v805_v12 = vmul.f32 %v4063_v41, %v795_v3  ;;  %v646_v29 = vmax.f32 %v630_v11, 0.0  ;;  %v882_v45 = vld [vmem:[#allocation2 + $0x11] sm:$0xff]  ;;  %v883_v46 = vld [vmem:[#allocation2 + $0x19] sm:$0xff] }
  0xaf   : > { %786 = vst [vmem:[#allocation2 + $0x5b] sm:$0xff] %v770_v38  ;;  %787 = vst [vmem:[#allocation2 + $0x63] sm:$0xff] %v771_v43  ;;  %v1635_v54 = vpack.c.bf16 %v770_v38, %v769_v17  ;;  %3439 = vmatprep.subr.bf16.mxu0 %v3771_v33  ;;  %v645_v17 = vmax.f32 %v629_v1, 0.0  ;;  %v814_v37 = vadd.f32 %v4072_v44, %v804_v19  ;;  %v884_v1 = vld [vmem:[#allocation2 + $0x21] sm:$0xff] }
  0xb0   : > { %v4215_v56 = vsel %vm711_vm0, %v733_v26, %v735_v50  ;;  %566 = vst [vmem:[#allocation2] sm:$0xff] %v4208_v51  ;;  %v815_v30 = vadd.f32 %v4072_v44, %v805_v12  ;;  %v1818_v3 = vld [vmem:[#allocation2 + $0x1c] sm:$0xff]  ;;  %v1819_v19 = vld [vmem:[#allocation2 + $0x24] sm:$0xff] }
  0xb1   : > { %v772_v59 = vmul.f32 %v4215_v56, %v642_v36  ;;  %v556_v62 = vpop.permute.xlu0 %555  ;;  %v698_v63 = vpop.permute.xlu1 %697  ;;  %3425 = vmatprep.mubr.bf16.mxu0 %v1635_v54  ;;  %v816_v36 = vmax.f32 %v813_v18, 0.0  ;;  %v1833_v12 = vpack.c.bf16 %v1818_v3, %v1817_v2  ;;  %v3778_v18 = vld [vmem:[%s4554_s6 + $0x18] sm:$0xff]  }
  0xb2   : > { %v4224_v4 = vmul.f32 %v556_v62, %v546_v52  ;;  %v737_v5 = vrot.slane %v698_v63, 3  ;;  %3440 = vmatpush3.bf16.msra.mxu0 %v3771_v33  ;;  %v818_v54 = vmax.f32 %v815_v30, 0.0  ;;  %v817_v63 = vmax.f32 %v814_v37, 0.0  ;;  %v1822_v30 = vld [vmem:[#allocation2 + $0x3c] sm:$0xff] }
  0xb3   : > { %788 = vst [vmem:[#allocation2 + $0x6b] sm:$0xff] %v772_v59  ;;  %v1636_v7 = vpack.c.bf16 %v772_v59, %v771_v43  ;;  %3441 = vmatprep.subr.bf16.mxu0 %v3773_v55  ;;  %v3786_v3 = vld [vmem:[%s4554_s6 + $0x38] sm:$0xff]  }
  0xb4   : > { %567 = vst [vmem:[#allocation2 + $0x8] sm:$0xff] %v4224_v4  ;;  %v4232_v9 = vsel %vm711_vm0, %v735_v50, %v737_v5  ;;  %v885_v50 = vld [vmem:[#allocation2 + $0x29] sm:$0xff] }
  0xb5   : > { %v773_v15 = vmul.f32 %v4232_v9, %v643_v0  ;;  %v702_v16 = vpop.permute.xlu0 %701  ;;  %v706_v28 = vpop.permute.xlu1 %705  ;;  %3426 = vmatmul.mubr.bf16.gmra.mrb[8].mxu0 %v1636_v7  ;;  %v897_v0 = vpack.c.bf16 %v883_v46, %v882_v45  ;;  %v898_v6 = vpack.c.bf16 %v885_v50, %v884_v1  ;;  %v3785_v45 = vld [vmem:[%s4554_s6 + $0x190] sm:$0xff]  }
  0xb6   : > { %v739_v23 = vrot.slane %v702_v16, 3  ;;  %v741_v24 = vrot.slane %v706_v28, 3  ;;  %3442 = vmatpush3.bf16.msra.mxu0 %v3773_v55  ;;  %v3776_v16 = vld [vmem:[%s4554_s6 + $0x10] sm:$0xff]   ;;  %v887_v28 = vld [vmem:[#allocation2 + $0x39] sm:$0xff]  ;;  %v892_v50 = vld [vmem:[#allocation2 + $0x61] sm:$0xff] }
  0xb7   : > { %789 = vst [vmem:[#allocation2 + $0x73] sm:$0xff] %v773_v15  ;;  %3443 = vmatprep.subr.bf16.mxu0 %v3775_v8  ;;  %v891_v37 = vld [vmem:[#allocation2 + $0x59] sm:$0xff]  ;;  %v890_v46 = vld [vmem:[#allocation2 + $0x51] sm:$0xff] }
  0xb8   : > { %v4243_v26 = vsel %vm711_vm0, %v737_v5, %v739_v23  ;;  %v4246_v27 = vsel %vm711_vm0, %v739_v23, %v741_v24  ;;  %v1820_v23 = vld [vmem:[#allocation2 + $0x2c] sm:$0xff] }
  0xb9   : > { %v774_v41 = vmul.f32 %v4243_v26, %v644_v10  ;;  %v775_v31 = vmul.f32 %v4246_v27, %v645_v17  ;;  %v710_v32 = vpop.permute.xlu0 %709  ;;  %v822_v33 = vpop.permute.xlu1 %821  ;;  %v889_v17 = vld [vmem:[#allocation2 + $0x49] sm:$0xff] }
  0xba   : > { %v743_v38 = vrot.slane %v710_v32, 3  ;;  %v827_v43 = vrot.slane %v822_v33, 3  ;;  %3444 = vmatpush3.bf16.msra.mxu0 %v3775_v8  ;;  %v3781_v8 = vld [vmem:[%s4554_s6 + $0x180] sm:$0xff]   ;;  %v3783_v32 = vld [vmem:[%s4554_s6 + $0x188] sm:$0xff]  }
  0xbb   : > { %790 = vst [vmem:[#allocation2 + $0x7b] sm:$0xff] %v774_v41  ;;  %791 = vst [vmem:[#allocation2 + $0x83] sm:$0xff] %v775_v31  ;;  %v880_v48 = vld [vmem:[#allocation2 + $0x1] sm:$0xff]  ;;  %v881_v49 = vld [vmem:[#allocation2 + $0x9] sm:$0xff]  ;;  %v1637_v52 = vpack.c.bf16 %v774_v41, %v773_v15  ;;  %3445 = vmatprep.subr.bf16.mxu0 %v3777_v25 }
  0xbc   : > { %v4256_v53 = vsel %vm711_vm0, %v741_v24, %v743_v38  ;;  %v828_v44 = vsel %vm711_vm0, %v743_v38, %v827_v43  ;;  %v896_v55 = vpack.c.bf16 %v881_v49, %v880_v48  ;;  %v893_v38 = vld [vmem:[#allocation2 + $0x69] sm:$0xff]  ;;  %v901_v49 = vpack.c.bf16 %v891_v37, %v890_v46 }
  0xbd   : > { %v776_v58 = vmul.f32 %v4256_v53, %v646_v29  ;;  %v834_v59 = vmul.f32 %v828_v44, %v816_v36  ;;  %v826_v62 = vpop.permute.xlu0 %825  ;;  %3429 = vmatprep.mubr.bf16.mxu0 %v1637_v52  ;;  %v1821_v29 = vld [vmem:[#allocation2 + $0x34] sm:$0xff]  ;;  %v3780_v36 = vld [vmem:[%s4554_s6 + $0x20] sm:$0xff]   ;;  %v1824_v48 = vld [vmem:[#allocation2 + $0x4c] sm:$0xff] }
  0xbe   : > { %v829_v5 = vrot.slane %v826_v62, 3  ;;  %3289 = vmatprep.mubr.bf16.mxu1 %v896_v55  ;;  %3446 = vmatpush3.bf16.msra.mxu0 %v3777_v25  ;;  %v888_v25 = vld [vmem:[#allocation2 + $0x41] sm:$0xff]  ;;  %v4279_v33 = vpack.c.bf16 %v1822_v30, %v1821_v29  ;;  %v1825_v52 = vld [vmem:[#allocation2 + $0x54] sm:$0xff]  ;;  %v1828_v1 = vld [vmem:[#allocation2 + $0x6c] sm:$0xff] }
  0xbf   : > { %792 = vst [vmem:[#allocation2 + $0x8b] sm:$0xff] %v776_v58  ;;  %837 = vst [vmem:[#allocation2 + $0x93] sm:$0xff] %v834_v59  ;;  %3290 = vmatmul.mubr.bf16.vlgmr.msra.gmra.mrb[0].mxu1 %v897_v0  ;;  %v1638_v7 = vpack.c.bf16 %v776_v58, %v775_v31  ;;  %3447 = vmatprep.subr.bf16.mxu0 %v3779_v47  ;;  %v900_v41 = vpack.c.bf16 %v889_v17, %v888_v25  ;;  %v1826_v44 = vld [vmem:[#allocation2 + $0x5c] sm:$0xff]  ;;  %v3784_v59 = vld [vmem:[%s4554_s6 + $0x30] sm:$0xff]  }
  0xc0   : > { %v830_v10 = vsel %vm711_vm0, %v827_v43, %v829_v5  ;;  %v836_v11 = vmul.f32 %v829_v5, %v818_v54  ;;  %3293 = vmatprep.mubr.bf16.mxu1 %v898_v6  ;;  %3306 = vmatpush3.bf16.msra.mxu1 %v4045_v40  ;;  %v886_v40 = vld [vmem:[#allocation2 + $0x31] sm:$0xff]  ;;  %v4274_v31 = vpack.c.bf16 %v1820_v23, %v1819_v19  ;;  %v3782_v43 = vld [vmem:[%s4554_s6 + $0x28] sm:$0xff]   ;;  %v844_v19 = vld [vmem:[#allocation2 + $0x20] sm:$0xff] }
  0xc1   : > { %v835_v15 = vmul.f32 %v830_v10, %v817_v63  ;;  %3307 = vmatprep.subr.bf16.mxu1 %v3774_v57  ;;  %3430 = vmatmul.mubr.bf16.gmra.mrb[12].mxu0 %v1638_v7  ;;  %v899_v24 = vpack.c.bf16 %v887_v28, %v886_v40  ;;  %v902_v54 = vpack.c.bf16 %v893_v38, %v892_v50  ;;  %v3789_v63 = vld [vmem:[%s4554_s6 + $0x1a0] sm:$0xff]   ;;  %v894_v0 = vld [vmem:[#allocation2 + $0x71] sm:$0xff]  ;;  %v3790_v23 = vld [vmem:[%s4554_s6 + $0x88] sm:$0xff]  }
  0xc2   : > { %839 = vst [vmem:[#allocation2 + $0xa3] sm:$0x7] %v836_v11  ;;  %3449 = vmatprep.mubr.bf16.mxu0 %v1833_v12  ;;  %3448 = vmatpush3.bf16.msra.mxu0 %v3779_v47  ;;  %v1823_v47 = vld [vmem:[#allocation2 + $0x44] sm:$0xff]  ;;  %v4297_v58 = vpack.c.bf16 %v1826_v44, %v1825_v52  ;;  %v895_v62 = vld [vmem:[#allocation2 + $0x79] sm:$0xff]  ;;  %v856_v7 = vpack.c.bf16 %v4224_v4, %v4208_v51  ;;  %v842_v51 = vld [vmem:[#allocation2 + $0x10] sm:$0xff] }
  0xc3   : > { %838 = vst [vmem:[#allocation2 + $0x9b] sm:$0xff] %v835_v15  ;;  %3465 = vmatprep.subr.bf16.mxu0 %v3781_v8  ;;  %v4292_v55 = vpack.c.bf16 %v1824_v48, %v1823_v47  ;;  %v903_v2 = vpack.c.bf16 %v895_v62, %v894_v0  ;;  %v1829_v5 = vld [vmem:[#allocation2 + $0x74] sm:$0xff]  ;;  %v1830_v6 = vld [vmem:[#allocation2 + $0x7c] sm:$0xff]  ;;  %v3791_v11 = vld [vmem:[%s4554_s6 + $0x1a8] sm:$0xff]  }
  0xc4   : > { %3308 = vmatpush3.bf16.msra.mxu1 %v3774_v57  ;;  %v3787_v57 = vld [vmem:[%s4554_s6 + $0x198] sm:$0xff]   ;;  %v4317_v12 = vpack.c.bf16 %v1830_v6, %v1829_v5  ;;  %v3788_v15 = vld [vmem:[%s4554_s6 + $0x80] sm:$0xff]   ;;  %v3793_v28 = vld [vmem:[%s4554_s6 + $0x1b0] sm:$0xff]  }
  0xc5   : > { %3309 = vmatprep.subr.bf16.mxu1 %v3776_v16  ;;  %v843_v4 = vld [vmem:[#allocation2 + $0x18] sm:$0xff]  ;;  %v3792_v30 = vld [vmem:[%s4554_s6 + $0x90] sm:$0xff]   ;;  %v3796_v47 = vld [vmem:[%s4554_s6 + $0xa0] sm:$0xff]  }
  0xc6   : > { %v1831_v17 = vld [vmem:[#allocation2 + $0x84] sm:$0xff]  ;;  %v857_v40 = vpack.c.bf16 %v843_v4, %v842_v51  ;;  %v3795_v29 = vld [vmem:[%s4554_s6 + $0x1b8] sm:$0xff]   ;;  %v846_v37 = vld [vmem:[#allocation2 + $0x30] sm:$0xff] }
  0xc7   : > { %3294 = vmatmul.mubr.bf16.gmra.mrb[4].mxu1 %v899_v24  ;;  %v851_v48 = vld [vmem:[#allocation2 + $0x58] sm:$0xff]  ;;  %v3801_v50 = vld [vmem:[%s4554_s6 + $0x1d0] sm:$0xff]   ;;  %v3807_v6 = vld [vmem:[%s4554_s6 + $0x1e8] sm:$0xff]  }
  0xc8   : > { %3297 = vmatprep.mubr.bf16.mxu1 %v900_v41  ;;  %3310 = vmatpush3.bf16.msra.mxu1 %v3776_v16  ;;  %v845_v16 = vld [vmem:[#allocation2 + $0x28] sm:$0xff]  ;;  %v847_v41 = vld [vmem:[#allocation2 + $0x38] sm:$0xff]  ;;  %v850_v52 = vld [vmem:[#allocation2 + $0x50] sm:$0xff] }
  0xc9   : > { %3311 = vmatprep.subr.bf16.mxu1 %v3778_v18  ;;  %3450 = vmatmul.mubr.bf16.vlgmr.msra.gmra.mrb[0].mxu0 %v4274_v31  ;;  %v858_v24 = vpack.c.bf16 %v845_v16, %v844_v19  ;;  %v859_v38 = vpack.c.bf16 %v847_v41, %v846_v37  ;;  %v861_v44 = vpack.c.bf16 %v851_v48, %v850_v52  ;;  %v855_v62 = vld [vmem:[#allocation2 + $0x78] sm:$0xff]  ;;  %v1212_v0 = vld [vmem:[#allocation2 + $0xa] sm:$0xff]  ;;  %v3812_v52 = vld [vmem:[%s4554_s6 + $0xe0] sm:$0xff]  }
  0xca   : > { %3466 = vmatpush3.bf16.msra.mxu0 %v3781_v8  ;;  %3453 = vmatprep.mubr.bf16.mxu0 %v4279_v33  ;;  %v1827_v8 = vld [vmem:[#allocation2 + $0x64] sm:$0xff]  ;;  %v3802_v5 = vld [vmem:[%s4554_s6 + $0xb8] sm:$0xff]  }
  0xcb   : > { %3467 = vmatprep.subr.bf16.mxu0 %v3783_v32  ;;  %v4312_v10 = vpack.c.bf16 %v1828_v1, %v1827_v8  ;;  %v3805_v1 = vld [vmem:[%s4554_s6 + $0x1e0] sm:$0xff]   ;;  %v1213_v8 = vld [vmem:[#allocation2 + $0x12] sm:$0xff]  ;;  %v3806_v51 = vld [vmem:[%s4554_s6 + $0xc8] sm:$0xff]  }
  0xcc   : > { %3312 = vmatpush3.bf16.msra.mxu1 %v3778_v18  ;;  %v1832_v18 = vld [vmem:[#allocation2 + $0x8c] sm:$0xff]  ;;  %v2033_v4 = vld [vmem:[#allocation2 + $0x94] sm:$0xff]  ;;  %v2034_v16 = vld [vmem:[#allocation2 + $0x9c] sm:$0xff] }
  0xcd   : > { %3313 = vmatprep.subr.bf16.mxu1 %v3780_v36  ;;  %v4330_v25 = vpack.c.bf16 %v1832_v18, %v1831_v17  ;;  %v2221_v17 = vld [vmem:[#allocation2 + $0x25] sm:$0xff]  ;;  %v2222_v18 = vld [vmem:[#allocation2 + $0x2d] sm:$0xff]  ;;  %v2042_v19 = vpack.c.bf16 %v2034_v16, %v2033_v4  ;;  %v3810_v41 = vld [vmem:[%s4554_s6 + $0xd8] sm:$0xff]  }
  0xce   : > { %3468 = vmatpush3.bf16.msra.mxu0 %v3783_v32  ;;  %v849_v32 = vld [vmem:[#allocation2 + $0x48] sm:$0xff]  ;;  %v2223_v37 = vld [vmem:[#allocation2 + $0x35] sm:$0xff] }
  0xcf   : > { %3298 = vmatmul.mubr.bf16.gmra.mrb[8].mxu1 %v901_v49  ;;  %3469 = vmatprep.subr.bf16.mxu0 %v3785_v45  ;;  %v853_v49 = vld [vmem:[#allocation2 + $0x68] sm:$0xff]  ;;  %v3818_v16 = vld [vmem:[%s4554_s6 + $0xf8] sm:$0xff]  }
  0xd0   : > { %3301 = vmatprep.mubr.bf16.mxu1 %v902_v54  ;;  %3314 = vmatpush3.bf16.msra.mxu1 %v3780_v36  ;;  %v3797_v36 = vld [vmem:[%s4554_s6 + $0x1c0] sm:$0xff]  }
  0xd1   : > { %3315 = vmatprep.subr.bf16.mxu1 %v3782_v43  ;;  %3454 = vmatmul.mubr.bf16.gmra.mrb[4].mxu0 %v4292_v55  ;;  %v852_v54 = vld [vmem:[#allocation2 + $0x60] sm:$0xff] }
  0xd2   : > { %3470 = vmatpush3.bf16.msra.mxu0 %v3785_v45  ;;  %3457 = vmatprep.mubr.bf16.mxu0 %v4297_v58  ;;  %v3794_v45 = vld [vmem:[%s4554_s6 + $0x98] sm:$0xff]  }
  0xd3   : > { %3471 = vmatprep.subr.bf16.mxu0 %v3787_v57 }
  0xd4   : > { %3316 = vmatpush3.bf16.msra.mxu1 %v3782_v43  ;;  %v848_v43 = vld [vmem:[#allocation2 + $0x40] sm:$0xff] }
  0xd5   : > { %3317 = vmatprep.subr.bf16.mxu1 %v3784_v59  ;;  %v860_v46 = vpack.c.bf16 %v849_v32, %v848_v43  ;;  %v4406_v32 = vld [vmem:[%s4554_s6 + $0x200] sm:$0xff]  }
  0xd6   : > { %3472 = vmatpush3.bf16.msra.mxu0 %v3787_v57  ;;  %v3798_v57 = vld [vmem:[%s4554_s6 + $0xa8] sm:$0xff]  }
  0xd7   : > { %3302 = vmatmul.mubr.bf16.gmra.mrb[12].mxu1 %v903_v2  ;;  %3473 = vmatprep.subr.bf16.mxu0 %v3789_v63  ;;  %v854_v2 = vld [vmem:[#allocation2 + $0x70] sm:$0xff] }
  0xd8   : > { %3318 = vmatpush3.bf16.msra.mxu1 %v3784_v59  ;;  %3321 = vmatprep.mubr.bf16.mxu1 %v856_v7  ;;  %v3800_v59 = vld [vmem:[%s4554_s6 + $0xb0] sm:$0xff]   ;;  %v3804_v7 = vld [vmem:[%s4554_s6 + $0xc0] sm:$0xff]  }
  0xd9   : > { %3319 = vmatprep.subr.bf16.mxu1 %v3786_v3  ;;  %3458 = vmatmul.mubr.bf16.gmra.mrb[8].mxu0 %v4312_v10 }
  0xda   : > { %3474 = vmatpush3.bf16.msra.mxu0 %v3789_v63  ;;  %3461 = vmatprep.mubr.bf16.mxu0 %v4317_v12  ;;  %v1211_v63 = vld [vmem:[#allocation2 + $0x2] sm:$0xff] }
  0xdb   : > { %3475 = vmatprep.subr.bf16.mxu0 %v3791_v11 }
  0xdc   : > { %3320 = vmatpush3.bf16.msra.mxu1 %v3786_v3  ;;  %v863_v3 = vpack.c.bf16 %v855_v62, %v854_v2 }
  0xdd   : > { %3337 = vmatprep.subr.bf16.mxu1 %v3788_v15 }
  0xde   : > { %3476 = vmatpush3.bf16.msra.mxu0 %v3791_v11  ;;  %v1216_v11 = vld [vmem:[#allocation2 + $0x2a] sm:$0xff] }
  0xdf   : > { %3322 = vmatmul.mubr.bf16.vlgmr.msra.gmra.mrb[0].mxu1 %v857_v40  ;;  %3477 = vmatprep.subr.bf16.mxu0 %v3793_v28 }
  0xe0   : > { %3325 = vmatprep.mubr.bf16.mxu1 %v858_v24  ;;  %3338 = vmatpush3.bf16.msra.mxu1 %v3788_v15  ;;  %v3809_v15 = vld [vmem:[%s4554_s6 + $0x1f0] sm:$0xff]   ;;  %v2237_v24 = vpack.c.bf16 %v2222_v18, %v2221_v17 }
  0xe1   : > { %3339 = vmatprep.subr.bf16.mxu1 %v3790_v23  ;;  %3462 = vmatmul.mubr.bf16.gmra.mrb[12].mxu0 %v4330_v25  ;;  %v2234_v17 = vld [vmem:[#allocation2 + $0x8d] sm:$0xff] }
  0xe2   : > { %3478 = vmatpush3.bf16.msra.mxu0 %v3793_v28  ;;  %3481 = vmatprep.mubr.bf16.mxu0 %v4274_v31  ;;  %v3799_v31 = vld [vmem:[%s4554_s6 + $0x1c8] sm:$0xff]  }
  0xe3   : > { %3479 = vmatprep.subr.bf16.mxu0 %v3795_v29 }
  0xe4   : > { %3340 = vmatpush3.bf16.msra.mxu1 %v3790_v23  ;;  %v3811_v23 = vld [vmem:[%s4554_s6 + $0x1f8] sm:$0xff]  }
  0xe5   : > { %3341 = vmatprep.subr.bf16.mxu1 %v3792_v30 }
  0xe6   : > { %3480 = vmatpush3.bf16.msra.mxu0 %v3795_v29  ;;  %v1218_v29 = vld [vmem:[#allocation2 + $0x3a] sm:$0xff] }
  0xe7   : > { %3326 = vmatmul.mubr.bf16.gmra.mrb[4].mxu1 %v859_v38  ;;  %3497 = vmatprep.subr.bf16.mxu0 %v3797_v36  ;;  %v2224_v38 = vld [vmem:[#allocation2 + $0x3d] sm:$0xff] }
  0xe8   : > { %3329 = vmatprep.mubr.bf16.mxu1 %v860_v46  ;;  %3342 = vmatpush3.bf16.msra.mxu1 %v3792_v30  ;;  %v1220_v30 = vld [vmem:[#allocation2 + $0x4a] sm:$0xff]  ;;  %v2238_v48 = vpack.c.bf16 %v2224_v38, %v2223_v37  ;;  %v2426_v38 = vld [vmem:[#allocation2 + $0x3e] sm:$0xff] }
  0xe9   : > { %3343 = vmatprep.subr.bf16.mxu1 %v3794_v45  ;;  %3482 = vmatmul.mubr.bf16.vlgmr.msra.gmra.mrb[0].mxu0 %v4279_v33  ;;  %v862_v33 = vpack.c.bf16 %v853_v49, %v852_v54  ;;  %v2225_v46 = vld [vmem:[#allocation2 + $0x45] sm:$0xff] }
  0xea   : > { %3498 = vmatpush3.bf16.msra.mxu0 %v3797_v36  ;;  %3485 = vmatprep.mubr.bf16.mxu0 %v4292_v55  ;;  %v3803_v55 = vld [vmem:[%s4554_s6 + $0x1d8] sm:$0xff]   ;;  %v4417_v49 = vld [vmem:[%s4554_s6 + $0x208] sm:$0xff]  }
  0xeb   : > { %3499 = vmatprep.subr.bf16.mxu0 %v3799_v31  ;;  %v1217_v36 = vld [vmem:[#allocation2 + $0x32] sm:$0xff]  ;;  %v1224_v54 = vld [vmem:[#allocation2 + $0x6a] sm:$0xff] }
  0xec   : > { %3344 = vmatpush3.bf16.msra.mxu1 %v3794_v45  ;;  %v4408_v43 = vpack.c.bf16 %v1218_v29, %v1217_v36  ;;  %v1219_v45 = vld [vmem:[#allocation2 + $0x42] sm:$0xff]  ;;  %v3823_v36 = vld [vmem:[%s4554_s6 + $0x238] sm:$0xff]  }
  0xed   : > { %3345 = vmatprep.subr.bf16.mxu1 %v3796_v47  ;;  %v2236_v29 = vld [vmem:[#allocation2 + $0x9d] sm:$0xff] }
  0xee   : > { %3500 = vmatpush3.bf16.msra.mxu0 %v3799_v31  ;;  %v2226_v31 = vld [vmem:[#allocation2 + $0x4d] sm:$0xff] }
  0xef   : > { %3330 = vmatmul.mubr.bf16.gmra.mrb[8].mxu1 %v861_v44  ;;  %3501 = vmatprep.subr.bf16.mxu0 %v3801_v50  ;;  %v1222_v44 = vld [vmem:[#allocation2 + $0x5a] sm:$0xff] }
  0xf0   : > { %3333 = vmatprep.mubr.bf16.mxu1 %v862_v33  ;;  %3346 = vmatpush3.bf16.msra.mxu1 %v3796_v47  ;;  %v4410_v47 = vpack.c.bf16 %v1220_v30, %v1219_v45  ;;  %v1221_v33 = vld [vmem:[#allocation2 + $0x52] sm:$0xff]  ;;  %v2423_v30 = vld [vmem:[#allocation2 + $0x26] sm:$0xff] }
  0xf1   : > { %3347 = vmatprep.subr.bf16.mxu1 %v3798_v57  ;;  %3486 = vmatmul.mubr.bf16.gmra.mrb[4].mxu0 %v4297_v58  ;;  %v1227_v58 = vpack.c.bf16 %v1212_v0, %v1211_v63  ;;  %v4430_v62 = vpack.c.bf16 %v1222_v44, %v1221_v33  ;;  %v1223_v63 = vld [vmem:[#allocation2 + $0x62] sm:$0xff]  ;;  %v2433_v33 = vld [vmem:[#allocation2 + $0x76] sm:$0xff] }
  0xf2   : > { %3502 = vmatpush3.bf16.msra.mxu0 %v3801_v50  ;;  %3489 = vmatprep.mubr.bf16.mxu0 %v4312_v10  ;;  %v1214_v10 = vld [vmem:[#allocation2 + $0x1a] sm:$0xff]  ;;  %v2239_v50 = vpack.c.bf16 %v2226_v31, %v2225_v46  ;;  %v3814_v0 = vld [vmem:[%s4554_s6 + $0xe8] sm:$0xff]   ;;  %v4435_v2 = vpack.c.bf16 %v1224_v54, %v1223_v63 }
  0xf3   : > { %3503 = vmatprep.subr.bf16.mxu0 %v3803_v55  ;;  %v4388_v28 = vpack.c.bf16 %v1214_v10, %v1213_v8  ;;  %v1226_v8 = vld [vmem:[#allocation2 + $0x7a] sm:$0xff]  ;;  %v2427_v45 = vld [vmem:[#allocation2 + $0x46] sm:$0xff]  ;;  %v2428_v46 = vld [vmem:[#allocation2 + $0x4e] sm:$0xff] }
  0xf4   : > { %3348 = vmatpush3.bf16.msra.mxu1 %v3798_v57  ;;  %v4428_v57 = vld [vmem:[%s4554_s6 + $0x210] sm:$0xff]   ;;  %v4454_v10 = vld [vmem:[%s4554_s6 + $0x220] sm:$0xff]  }
  0xf5   : > { %3349 = vmatprep.subr.bf16.mxu1 %v3800_v59  ;;  %v2429_v31 = vld [vmem:[#allocation2 + $0x56] sm:$0xff]  ;;  %v2431_v54 = vld [vmem:[#allocation2 + $0x66] sm:$0xff] }
  0xf6   : > { %3504 = vmatpush3.bf16.msra.mxu0 %v3803_v55  ;;  %v2227_v55 = vld [vmem:[#allocation2 + $0x55] sm:$0xff] }
  0xf7   : > { %3334 = vmatmul.mubr.bf16.gmra.mrb[12].mxu1 %v863_v3  ;;  %3505 = vmatprep.subr.bf16.mxu0 %v3805_v1 }
  0xf8   : > { %3350 = vmatpush3.bf16.msra.mxu1 %v3800_v59  ;;  %3353 = vmatprep.mubr.bf16.mxu1 %v1227_v58  ;;  %v2228_v59 = vld [vmem:[#allocation2 + $0x5d] sm:$0xff] }
  0xf9   : > { %3351 = vmatprep.subr.bf16.mxu1 %v3802_v5  ;;  %3490 = vmatmul.mubr.bf16.gmra.mrb[8].mxu0 %v4317_v12  ;;  %v1215_v12 = vld [vmem:[#allocation2 + $0x22] sm:$0xff]  ;;  %v2240_v3 = vpack.c.bf16 %v2228_v59, %v2227_v55  ;;  %v4443_v58 = vld [vmem:[%s4554_s6 + $0x218] sm:$0xff]  }
  0xfa   : > { %3506 = vmatpush3.bf16.msra.mxu0 %v3805_v1  ;;  %3493 = vmatprep.mubr.bf16.mxu0 %v4330_v25  ;;  %v4390_v40 = vpack.c.bf16 %v1216_v11, %v1215_v12  ;;  %v3808_v25 = vld [vmem:[%s4554_s6 + $0xd0] sm:$0xff]   ;;  %v2233_v12 = vld [vmem:[#allocation2 + $0x85] sm:$0xff] }
  0xfb   : > { %3507 = vmatprep.subr.bf16.mxu0 %v3807_v6  ;;  %v2230_v1 = vld [vmem:[#allocation2 + $0x6d] sm:$0xff]  ;;  %v2434_v55 = vld [vmem:[#allocation2 + $0x7e] sm:$0xff] }
  0xfc   : > { %3352 = vmatpush3.bf16.msra.mxu1 %v3802_v5  ;;  %v2229_v5 = vld [vmem:[#allocation2 + $0x65] sm:$0xff]  ;;  %v1225_v11 = vld [vmem:[#allocation2 + $0x72] sm:$0xff]  ;;  %v2444_v63 = vpack.c.bf16 %v2434_v55, %v2433_v33 }
  0xfd   : > { %3369 = vmatprep.subr.bf16.mxu1 %v3804_v7  ;;  %v1234_v4 = vpack.c.bf16 %v1226_v8, %v1225_v11  ;;  %v2435_v59 = vld [vmem:[#allocation2 + $0x86] sm:$0xff] }
  0xfe   : > { %3508 = vmatpush3.bf16.msra.mxu0 %v3807_v6  ;;  %v2241_v6 = vpack.c.bf16 %v2230_v1, %v2229_v5  ;;  %v2437_v1 = vld [vmem:[#allocation2 + $0x96] sm:$0xff] }
  0xff   : > { %3354 = vmatmul.mubr.bf16.vlgmr.msra.gmra.mrb[0].mxu1 %v4388_v28  ;;  %3509 = vmatprep.subr.bf16.mxu0 %v3809_v15 }
 0x100   : > { %3357 = vmatprep.mubr.bf16.mxu1 %v4390_v40  ;;  %3370 = vmatpush3.bf16.msra.mxu1 %v3804_v7  ;;  %v3816_v7 = vld [vmem:[%s4554_s6 + $0xf0] sm:$0xff]  }
 0x101   : > { %3371 = vmatprep.subr.bf16.mxu1 %v3806_v51  ;;  %3494 = vmatmul.mubr.bf16.gmra.mrb[12].mxu0 %v2042_v19  ;;  %v3821_v19 = vld [vmem:[%s4554_s6 + $0x228] sm:$0xff]  }
 0x102   : > { %3510 = vmatpush3.bf16.msra.mxu0 %v3809_v15  ;;  %3513 = vmatprep.mubr.bf16.mxu0 %v2237_v24  ;;  %v2231_v15 = vld [vmem:[#allocation2 + $0x75] sm:$0xff] }
 0x103   : > { %3511 = vmatprep.subr.bf16.mxu0 %v3811_v23  ;;  %v3822_v24 = vld [vmem:[%s4554_s6 + $0x230] sm:$0xff]  }
 0x104   : > { %3372 = vmatpush3.bf16.msra.mxu1 %v3806_v51  ;;  %v2232_v51 = vld [vmem:[#allocation2 + $0x7d] sm:$0xff] }
 0x105   : > { %3373 = vmatprep.subr.bf16.mxu1 %v3808_v25  ;;  %v2242_v18 = vpack.c.bf16 %v2232_v51, %v2231_v15 }
 0x106   : > { %3512 = vmatpush3.bf16.msra.mxu0 %v3811_v23  ;;  %v2243_v23 = vpack.c.bf16 %v2234_v17, %v2233_v12 }
 0x107   : > { %3358 = vmatmul.mubr.bf16.gmra.mrb[4].mxu1 %v4408_v43  ;;  %3529 = vmatprep.subr.bf16.mxu0 %v4406_v32 }
 0x108   : > { %3361 = vmatprep.mubr.bf16.mxu1 %v4410_v47  ;;  %3374 = vmatpush3.bf16.msra.mxu1 %v3808_v25  ;;  %v2235_v25 = vld [vmem:[#allocation2 + $0x95] sm:$0xff] }
 0x109   : > { %3375 = vmatprep.subr.bf16.mxu1 %v3810_v41  ;;  %3514 = vmatmul.mubr.bf16.vlgmr.msra.gmra.mrb[0].mxu0 %v2238_v48  ;;  %v2430_v48 = vld [vmem:[#allocation2 + $0x5e] sm:$0xff] }
 0x10a   : > { %3530 = vmatpush3.bf16.msra.mxu0 %v4406_v32  ;;  %3517 = vmatprep.mubr.bf16.mxu0 %v2239_v50  ;;  %v2432_v50 = vld [vmem:[#allocation2 + $0x6e] sm:$0xff] }
 0x10b   : > { %3531 = vmatprep.subr.bf16.mxu0 %v4417_v49 }
 0x10c   : > { %3376 = vmatpush3.bf16.msra.mxu1 %v3810_v41  ;;  %v2424_v41 = vld [vmem:[#allocation2 + $0x2e] sm:$0xff] }
 0x10d   : > { %3377 = vmatprep.subr.bf16.mxu1 %v3812_v52  ;;  %v2439_v37 = vpack.c.bf16 %v2424_v41, %v2423_v30 }
 0x10e   : > { %3532 = vmatpush3.bf16.msra.mxu0 %v4417_v49 }
 0x10f   : > { %3362 = vmatmul.mubr.bf16.gmra.mrb[8].mxu1 %v4430_v62  ;;  %3533 = vmatprep.subr.bf16.mxu0 %v4428_v57 }
 0x110   : > { %3365 = vmatprep.mubr.bf16.mxu1 %v4435_v2  ;;  %3378 = vmatpush3.bf16.msra.mxu1 %v3812_v52  ;;  %v1427_v52 = vld [vmem:[#allocation2 + $0x82] sm:$0xff] }
 0x111   : > { %3379 = vmatprep.subr.bf16.mxu1 %v3814_v0  ;;  %3518 = vmatmul.mubr.bf16.gmra.mrb[4].mxu0 %v2240_v3 }
 0x112   : > { %3534 = vmatpush3.bf16.msra.mxu0 %v4428_v57  ;;  %3521 = vmatprep.mubr.bf16.mxu0 %v2241_v6 }
 0x113   : > { %3535 = vmatprep.subr.bf16.mxu0 %v4443_v58 }
 0x114   : > { %3380 = vmatpush3.bf16.msra.mxu1 %v3814_v0 }
 0x115   : > { %3381 = vmatprep.subr.bf16.mxu1 %v3816_v7 }
 0x116   : > { %3536 = vmatpush3.bf16.msra.mxu0 %v4443_v58 }
 0x117   : > { %3366 = vmatmul.mubr.bf16.gmra.mrb[12].mxu1 %v1234_v4  ;;  %3537 = vmatprep.subr.bf16.mxu0 %v4454_v10 }
 0x118   : > { %3382 = vmatpush3.bf16.msra.mxu1 %v3816_v7  ;;  %3385 = vmatprep.mubr.bf16.mxu1 %v4388_v28  ;;  %v2244_v28 = vpack.c.bf16 %v2236_v29, %v2235_v25 }
 0x119   : > { %3383 = vmatprep.subr.bf16.mxu1 %v3818_v16  ;;  %3522 = vmatmul.mubr.bf16.gmra.mrb[8].mxu0 %v2242_v18 }
 0x11a   : > { %3538 = vmatpush3.bf16.msra.mxu0 %v4454_v10  ;;  %3525 = vmatprep.mubr.bf16.mxu0 %v2243_v23 }
 0x11b   : > { %3539 = vmatprep.subr.bf16.mxu0 %v3821_v19 }
 0x11c   : > { %3384 = vmatpush3.bf16.msra.mxu1 %v3818_v16 }
 0x11d   : > { %3561 = vmatprep.subr.bf16.mxu1 %v4406_v32 }
 0x11e   : > { %3540 = vmatpush3.bf16.msra.mxu0 %v3821_v19 }
 0x11f   : > { %3386 = vmatmul.mubr.bf16.vlgmr.msra.gmra.mrb[0].mxu1 %v4390_v40  ;;  %3541 = vmatprep.subr.bf16.mxu0 %v3822_v24  ;;  %v2425_v40 = vld [vmem:[#allocation2 + $0x36] sm:$0xff] }
 0x120   : > { %3389 = vmatprep.mubr.bf16.mxu1 %v4408_v43  ;;  %3569 = vmatpush3.bf16.msra.mxu1 %v4406_v32  ;;  %v2440_v43 = vpack.c.bf16 %v2426_v38, %v2425_v40  ;;  %v2441_v32 = vpack.c.bf16 %v2428_v46, %v2427_v45 }
 0x121   : > { %3562 = vmatprep.subr.bf16.mxu1 %v4417_v49  ;;  %3526 = vmatmul.mubr.bf16.gmra.mrb[12].mxu0 %v2244_v28 }
 0x122   : > { %3542 = vmatpush3.bf16.msra.mxu0 %v3822_v24  ;;  %3545 = vmatprep.mubr.bf16.mxu0 %v2439_v37 }
 0x123   : > { %3543 = vmatprep.subr.bf16.mxu0 %v3823_v36 }
 0x124   : > { %3570 = vmatpush3.bf16.msra.mxu1 %v4417_v49  ;;  %v2442_v49 = vpack.c.bf16 %v2430_v48, %v2429_v31 }
 0x125   : > { %3563 = vmatprep.subr.bf16.mxu1 %v4428_v57 }
 0x126   : > { %3544 = vmatpush3.bf16.msra.mxu0 %v3823_v36 }
 0x127   : > { %3390 = vmatmul.mubr.bf16.gmra.mrb[4].mxu1 %v4410_v47  ;;  %v1428_v47 = vld [vmem:[#allocation2 + $0x8a] sm:$0xff] }
 0x128   : > { %3393 = vmatprep.mubr.bf16.mxu1 %v4430_v62  ;;  %3571 = vmatpush3.bf16.msra.mxu1 %v4428_v57  ;;  %v1436_v44 = vpack.c.bf16 %v1428_v47, %v1427_v52  ;;  %v2443_v57 = vpack.c.bf16 %v2432_v50, %v2431_v54  ;;  %v2436_v62 = vld [vmem:[#allocation2 + $0x8e] sm:$0xff] }
 0x129   : > { %3564 = vmatprep.subr.bf16.mxu1 %v4443_v58  ;;  %3546 = vmatmul.mubr.bf16.vlgmr.msra.gmra.mrb[0].mxu0 %v2440_v43  ;;  %v2445_v0 = vpack.c.bf16 %v2436_v62, %v2435_v59 }
 0x12a   : > { %3549 = vmatprep.mubr.bf16.mxu0 %v2441_v32 }
 0x12c   : > { %3572 = vmatpush3.bf16.msra.mxu1 %v4443_v58 }
 0x12d   : > { %3565 = vmatprep.subr.bf16.mxu1 %v4454_v10 }
 0x12f   : > { %3394 = vmatmul.mubr.bf16.gmra.mrb[8].mxu1 %v4435_v2  ;;  %v2438_v2 = vld [vmem:[#allocation2 + $0x9e] sm:$0xff] }
 0x130   : > { %3397 = vmatprep.mubr.bf16.mxu1 %v1234_v4  ;;  %3573 = vmatpush3.bf16.msra.mxu1 %v4454_v10  ;;  %v2446_v3 = vpack.c.bf16 %v2438_v2, %v2437_v1 }
 0x131   : > { %3566 = vmatprep.subr.bf16.mxu1 %v3821_v19  ;;  %3550 = vmatmul.mubr.bf16.gmra.mrb[4].mxu0 %v2442_v49 }
 0x134   : > { %3574 = vmatpush3.bf16.msra.mxu1 %v3821_v19 }
 0x135   : > { %3567 = vmatprep.subr.bf16.mxu1 %v3822_v24 }
 0x137   : > { %3398 = vmatmul.mubr.bf16.gmra.mrb[12].mxu1 %v1436_v44 }
 0x138   : > { %3575 = vmatpush3.bf16.msra.mxu1 %v3822_v24  ;;  %3553 = vmatprep.mubr.bf16.mxu1 %v2443_v57 }
 0x139   : > { %3568 = vmatprep.subr.bf16.mxu1 %v3823_v36 }
 0x13c   : > { %3576 = vmatpush3.bf16.msra.mxu1 %v3823_v36 }
 0x13f   : > { %3554 = vmatmul.mubr.bf16.vlgmr.msra.gmra.mrb[16].mxu1 %v2444_v63 }
 0x140   : > { %3557 = vmatprep.mubr.bf16.mxu1 %v2445_v0 }
 0x147   : > { %3558 = vmatmul.mubr.bf16.gmra.mrb[20].mxu1 %v2446_v3 }
 0x1ec   : > { %v3523_v5 = vpop.f32.mrb[8].mxu0 }
 0x1ed   : > { %v2376_v58 = vpop.f32.mrb[9].mxu0 }
 0x1ee   : > { %v3524_v6 = vpop.f32.mrb[10].mxu0 }
 0x1ef   : > { %v2379_v7 = vpop.f32.mrb[11].mxu0 }
 0x1f2   : > { %v3387_v8 = vpop.f32.mrb[0].mxu1 }
 0x1f3   : > { %v1536_v10 = vpop.f32.mrb[1].mxu1 }
 0x1f4   : > { %v3388_v11 = vpop.f32.mrb[2].mxu1  ;;  %v3527_v15 = vpop.f32.mrb[12].mxu0 }
 0x1f5   : > { %v1539_v51 = vpop.f32.mrb[3].mxu1  ;;  %v2392_v4 = vpop.f32.mrb[13].mxu0 }
 0x1f6   : > { %v4487_v16 = vpop.f32.mrb[14].mxu0 }
 0x1f7   : > { %v4489_v12 = vpop.f32.mrb[15].mxu0 }
 0x1fa   : > { %v3391_v17 = vpop.f32.mrb[4].mxu1 }
 0x1fb   : > { %v1552_v18 = vpop.f32.mrb[5].mxu1 }
 0x1fc   : > { %v3392_v19 = vpop.f32.mrb[6].mxu1  ;;  %v3547_v23 = vpop.f32.mrb[0].mxu0 }
 0x1fd   : > { %v1555_v24 = vpop.f32.mrb[7].mxu1  ;;  %v3577_v25 = vadd.f32 %v3547_v23, %v3387_v8  ;;  %v2546_v29 = vpop.f32.mrb[1].mxu0 }
 0x1fe   : > { %v3578_v30 = vadd.f32 %v2546_v29, %v1536_v10  ;;  %v3548_v41 = vpop.f32.mrb[2].mxu0 }
 0x1ff   : > { %v2627_v28 = vmul.f32 %v3577_v25, %v4109_v20  ;;  %v3579_v36 = vadd.f32 %v3548_v41, %v3388_v11  ;;  %v2549_v37 = vpop.f32.mrb[3].mxu0 }
 0x200   : > { %v2625_v40 = vmul.f32 %v3578_v30, %v4112_v21  ;;  %v3580_v38 = vadd.f32 %v2549_v37, %v1539_v51 }
 0x201   : > { %2643 = vst [vmem:[%s4495_s19 + $0x10] sm:$0xff] %v2627_v28  ;;  %v2628_v45 = vmul.f32 %v3579_v36, %v4133_v39  ;;  %v2681_v21 = vmul.f32 %v2627_v28, %v2627_v28 }
 0x202   : > { %v3395_v46 = vpop.f32.mrb[8].mxu1  ;;  %2641 = vst [vmem:[%s4495_s19] sm:$0xff] %v2625_v40  ;;  %v2626_v43 = vmul.f32 %v3580_v38, %v4115_v22  ;;  %v2679_v47 = vmul.f32 %v2625_v40, %v2625_v40 }
 0x203   : > { %v3585_v32 = vadd.f32 %v3523_v5, %v3395_v46  ;;  %v1568_v31 = vpop.f32.mrb[9].mxu1  ;;  %2644 = vst [vmem:[%s4495_s19 + $0x18] sm:$0xff] %v2628_v45  ;;  %v2682_v63 = vmul.f32 %v2628_v45, %v2628_v45 }
 0x204   : > { %v3587_v48 = vadd.f32 %v2376_v58, %v1568_v31  ;;  %v3396_v49 = vpop.f32.mrb[10].mxu1  ;;  %2642 = vst [vmem:[%s4495_s19 + $0x8] sm:$0xff] %v2626_v43  ;;  %v2657_v20 = vadd.f32 %v2626_v43, %v2625_v40  ;;  %v2680_v50 = vmul.f32 %v2626_v43, %v2626_v43  ;;  %v3551_v52 = vpop.f32.mrb[4].mxu0 }
 0x205   : > { %v3589_v44 = vadd.f32 %v3524_v6, %v3396_v49  ;;  %v1571_v54 = vpop.f32.mrb[11].mxu1  ;;  %v3581_v57 = vadd.f32 %v3551_v52, %v3391_v17  ;;  %v2562_v39 = vpop.f32.mrb[5].mxu0 }
 0x206   : > { %v3591_v33 = vadd.f32 %v2379_v7, %v1571_v54  ;;  %v2658_v55 = vadd.f32 %v2657_v20, %v2627_v28  ;;  %v2695_v22 = vadd.f32 %v2680_v50, %v2679_v47  ;;  %v3582_v59 = vadd.f32 %v2562_v39, %v1552_v18  ;;  %v3552_v62 = vpop.f32.mrb[6].mxu0 }
 0x207   : > { %v2631_v0 = vmul.f32 %v3581_v57, %v4159_v61  ;;  %v3583_v1 = vadd.f32 %v3552_v62, %v3392_v19  ;;  %v2565_v2 = vpop.f32.mrb[7].mxu0 }
 0x208   : > { %v2696_v3 = vadd.f32 %v2695_v22, %v2681_v21  ;;  %v2629_v5 = vmul.f32 %v3582_v59, %v4136_v42  ;;  %v2659_v58 = vadd.f32 %v2658_v55, %v2628_v45  ;;  %v3584_v6 = vadd.f32 %v2565_v2, %v1555_v24 }
 0x209   : > { %2647 = vst [vmem:[%s4495_s19 + $0x30] sm:$0xff] %v2631_v0  ;;  %v2632_v7 = vmul.f32 %v3583_v1, %v4176_v13  ;;  %v2685_v13 = vmul.f32 %v2631_v0, %v2631_v0 }
 0x20a   : > { %v3399_v8 = vpop.f32.mrb[12].mxu1  ;;  %2645 = vst [vmem:[%s4495_s19 + $0x20] sm:$0xff] %v2629_v5  ;;  %v2660_v10 = vadd.f32 %v2659_v58, %v2629_v5  ;;  %v2683_v11 = vmul.f32 %v2629_v5, %v2629_v5  ;;  %v2697_v51 = vadd.f32 %v2696_v3, %v2682_v63  ;;  %v2630_v17 = vmul.f32 %v3584_v6, %v4156_v60 }
 0x20b   : > { %v3593_v61 = vadd.f32 %v3527_v15, %v3399_v8  ;;  %v1584_v18 = vpop.f32.mrb[13].mxu1  ;;  %2648 = vst [vmem:[%s4495_s19 + $0x38] sm:$0xff] %v2632_v7  ;;  %v2686_v37 = vmul.f32 %v2632_v7, %v2632_v7 }
 0x20c   : > { %v3595_v19 = vadd.f32 %v2392_v4, %v1584_v18  ;;  %v3400_v23 = vpop.f32.mrb[14].mxu1  ;;  %v2698_v25 = vadd.f32 %v2697_v51, %v2683_v11  ;;  %2646 = vst [vmem:[%s4495_s19 + $0x28] sm:$0xff] %v2630_v17  ;;  %v2661_v42 = vadd.f32 %v2660_v10, %v2630_v17  ;;  %v2684_v29 = vmul.f32 %v2630_v17, %v2630_v17 }
 0x20d   : > { %v3597_v24 = vadd.f32 %v4487_v16, %v3400_v23  ;;  %v1587_v30 = vpop.f32.mrb[15].mxu1 }
 0x20e   : > { %v3599_v41 = vadd.f32 %v4489_v12, %v1587_v30  ;;  %v2662_v28 = vadd.f32 %v2661_v42, %v2631_v0  ;;  %v2699_v36 = vadd.f32 %v2698_v25, %v2684_v29 }
 0x210   : > { %v2700_v60 = vadd.f32 %v2699_v36, %v2685_v13  ;;  %v2663_v15 = vadd.f32 %v2662_v28, %v2632_v7 }
 0x212   : > { %v3555_v40 = vpop.f32.mrb[16].mxu1  ;;  %v2701_v4 = vadd.f32 %v2700_v60, %v2686_v37 }
 0x213   : > { %v3586_v38 = vadd.f32 %v3585_v32, %v3555_v40  ;;  %v2578_v45 = vpop.f32.mrb[17].mxu1 }
 0x214   : > { %v3588_v46 = vadd.f32 %v3587_v48, %v2578_v45  ;;  %v3556_v43 = vpop.f32.mrb[18].mxu1 }
 0x215   : > { %v2635_v16 = vmul.f32 %v3586_v38, %v4200_v35  ;;  %v3590_v31 = vadd.f32 %v3589_v44, %v3556_v43  ;;  %v2581_v49 = vpop.f32.mrb[19].mxu1 }
 0x216   : > { %v2633_v12 = vmul.f32 %v3588_v46, %v4179_v14  ;;  %v3592_v47 = vadd.f32 %v3591_v33, %v2581_v49 }
 0x217   : > { %2651 = vst [vmem:[%s4495_s19 + $0x50] sm:$0xff] %v2635_v16  ;;  %v2636_v20 = vmul.f32 %v3590_v31, %v4215_v56  ;;  %v2689_v14 = vmul.f32 %v2635_v16, %v2635_v16 }
 0x218   : > { %2649 = vst [vmem:[%s4495_s19 + $0x40] sm:$0xff] %v2633_v12  ;;  %v2664_v50 = vadd.f32 %v2663_v15, %v2633_v12  ;;  %v2687_v52 = vmul.f32 %v2633_v12, %v2633_v12  ;;  %v2634_v21 = vmul.f32 %v3592_v47, %v4197_v34 }
 0x219   : > { %2652 = vst [vmem:[%s4495_s19 + $0x58] sm:$0xff] %v2636_v20  ;;  %v2690_v22 = vmul.f32 %v2636_v20, %v2636_v20 }
 0x21a   : > { %v2702_v32 = vadd.f32 %v2701_v4, %v2687_v52  ;;  %2650 = vst [vmem:[%s4495_s19 + $0x48] sm:$0xff] %v2634_v21  ;;  %v2665_v48 = vadd.f32 %v2664_v50, %v2634_v21  ;;  %v2688_v54 = vmul.f32 %v2634_v21, %v2634_v21  ;;  %v3559_v57 = vpop.f32.mrb[20].mxu1 }
 0x21b   : > { %v3594_v35 = vadd.f32 %v3593_v61, %v3559_v57  ;;  %v2594_v44 = vpop.f32.mrb[21].mxu1 }
 0x21c   : > { %v2666_v39 = vadd.f32 %v2665_v48, %v2635_v16  ;;  %v2703_v33 = vadd.f32 %v2702_v32, %v2688_v54  ;;  %v3596_v55 = vadd.f32 %v3595_v19, %v2594_v44  ;;  %v3560_v56 = vpop.f32.mrb[22].mxu1 }
 0x21d   : > { %v2639_v59 = vmul.f32 %v3594_v35, %v4246_v27  ;;  %v3598_v34 = vadd.f32 %v3597_v24, %v3560_v56  ;;  %v2597_v62 = vpop.f32.mrb[23].mxu1 }
 0x21e   : > { %v2704_v63 = vadd.f32 %v2703_v33, %v2689_v14  ;;  %v2637_v0 = vmul.f32 %v3596_v55, %v4232_v9  ;;  %v2667_v1 = vadd.f32 %v2666_v39, %v2636_v20  ;;  %v3600_v2 = vadd.f32 %v3599_v41, %v2597_v62 }
 0x21f   : > { %2655 = vst [vmem:[%s4495_s19 + $0x70] sm:$0xff] %v2639_v59  ;;  %v2640_v3 = vmul.f32 %v3598_v34, %v4256_v53  ;;  %v2693_v11 = vmul.f32 %v2639_v59, %v2639_v59 }
 0x220   : > { %2653 = vst [vmem:[%s4495_s19 + $0x60] sm:$0xff] %v2637_v0  ;;  %v2668_v5 = vadd.f32 %v2667_v1, %v2637_v0  ;;  %v2691_v58 = vmul.f32 %v2637_v0, %v2637_v0  ;;  %v2705_v6 = vadd.f32 %v2704_v63, %v2690_v22  ;;  %v2638_v7 = vmul.f32 %v3600_v2, %v4243_v26 }
 0x221   : > { %2656 = vst [vmem:[%s4495_s19 + $0x78] sm:$0xff] %v2640_v3  ;;  %v2694_v9 = vmul.f32 %v2640_v3, %v2640_v3 }
 0x222   : > { %v2706_v8 = vadd.f32 %v2705_v6, %v2691_v58  ;;  %2654 = vst [vmem:[%s4495_s19 + $0x68] sm:$0xff] %v2638_v7  ;;  %v2669_v27 = vadd.f32 %v2668_v5, %v2638_v7  ;;  %v2692_v10 = vmul.f32 %v2638_v7, %v2638_v7 }
 0x224   : > { %v2670_v51 = vadd.f32 %v2669_v27, %v2639_v59  ;;  %v2707_v17 = vadd.f32 %v2706_v8, %v2692_v10 }
 0x226   : > { %v2671_v61 = vadd.f32 %v2670_v51, %v2640_v3  ;;  %v2708_v18 = vadd.f32 %v2707_v17, %v2693_v11 }
 0x228   : > { %v2672_v53 = vrot.slane %v2671_v61, 4  ;;  %v2709_v19 = vadd.f32 %v2708_v18, %v2694_v9 }
 0x22a   : > { %v2673_v23 = vadd.f32 %v2672_v53, %v2671_v61  ;;  %v2710_v25 = vrot.slane %v2709_v19, 4 }
 0x22c   : > { %v2674_v42 = vrot.slane %v2673_v23, 2  ;;  %v2711_v29 = vadd.f32 %v2710_v25, %v2709_v19 }
 0x22e   : > { %v2675_v26 = vadd.f32 %v2674_v42, %v2673_v23  ;;  %v2712_v24 = vrot.slane %v2711_v29, 2 }
 0x230   : > { %v2676_v30 = vrot.slane %v2675_v26, 1  ;;  %v2713_v13 = vadd.f32 %v2712_v24, %v2711_v29 }
 0x232   : > { %v2677_v41 = vadd.f32 %v2676_v30, %v2675_v26  ;;  %v2714_v28 = vrot.slane %v2713_v13, 1 }
 0x234   : > { %2678 = vst [vmem:[%s3993_s23] sm:$0x1] %v2677_v41  ;;  %v2715_v36 = vadd.f32 %v2714_v28, %v2713_v13 }
 0x236   : > { %2716 = vst [vmem:[%s3993_s23 + $0x1] sm:$0x1] %v2715_v36 }
 0x237 PF: > { %s19_s9 = sadd.s32 1, %s3862_s9   ;;  %s4558_s27 = smov %s3854_s29 }
 0x238   : > { %p16_p12 = scmp.ge.s32.totalorder %s19_s9, 8   ;;  %s4559_s28 = smov %s3858_s30 }
 0x239   : > { %s4560_s29 = smov %s4563_s10  ;;  %s4561_s30 = smov %s4567_s11 }
 0x23a   :  { %18 = sbr.rel (!%p16_p12) target bundleno = 3 (0x3), region = 107 }

// kernel: decoder_forward.7
= control target key start
LH: loop header
LB: loop body
LE: loop exit
PB: predicated region body
PF: predicated region fallthrough
CT: control target
= control target key end

     0   :  { %s3797_s27 = smov 0   ;;  %s3799_s28 = smov 0   ;;  %s4383_s0 = inlined_call_operand.vmem [shape: f32[2,384,128], index: 0, kind: input, shape index: {}, may-alias: {0,1,2}]   ;;  %s4384_s1 = inlined_call_operand.vmem [shape: f32[2,384,128], index: 1, kind: input, shape index: {}, may-alias: {0,1,2}]   ;;  %s4385_s2 = inlined_call_operand.vmem [shape: f32[2,384,128], index: 2, kind: input, shape index: {}, may-alias: {0,1,2}]   ;;  %s4386_s3 = inlined_call_operand.vmem [shape: f32[3,166,1], index: 3, kind: input, shape index: {}]   ;;  %s4387_s4 = inlined_call_operand.vmem [shape: f32[1,128], index: 4, kind: input, shape index: {}, may-alias: {4,5}]   ;;  %s4388_s5 = inlined_call_operand.vmem [shape: f32[1,128], index: 5, kind: input, shape index: {}, may-alias: {4,5}]   ;;  %s4389_s6 = inlined_call_operand.vmem [shape: bf16[9,128,128], index: 6, kind: input, shape index: {}]   ;;  %s4390_s7 = inlined_call_operand.vmem [shape: f32[2,384,128], index: 7, kind: output, shape index: {0}]   ;;  %s4391_s8 = inlined_call_operand.vmem [shape: f32[2,3,8,128], index: 8, kind: output, shape index: {1}]  }
   0x1   :  { %s3801_s29 = smov 0   ;;  %s3803_s30 = smov 0  }
   0x2   :  { %s3805_s4 = smov 0  }
   0x3 LB: > { %s28_s5 = sadd.s32 1, %s3740_s29  ;;  %s31_s9 = sadd.s32 1, %s3744_s30  ;;  %s3748_s4 = sphi %s3805_s4, %s19_s4   ;;  %s3744_s30 = sphi %s3803_s30, %s4397_s30   ;;  %s3740_s29 = sphi %s3801_s29, %s4396_s29   ;;  %s3736_s28 = sphi %s3799_s28, %s4395_s28   ;;  %s3732_s27 = sphi %s3797_s27, %s4394_s27  }
   0x4   : > { %p29_p0 = scmp.ge.s32.totalorder %s28_s5, 3  ;;  %p2801_p1 = scmp.ge.s32.totalorder %s3748_s4, 1 }
   0x5   : > { %p356_p2 = scmp.lt.s32.totalorder %s3748_s4, 7 }
   0x6   : > { %s4399_s5 = smov (%p29_p0, %s28_s5), 0  ;;  %s4401_s9 = smov (!%p29_p0, %s31_s9), %s3744_s30 }
   0x7   : > { %p357_p3 = pnand %p2801_p1, %p356_p2  ;;  %p33_p4 = scmp.ge.s32.totalorder %s4401_s9, 2 }
   0x8   : > { %p477_p5 = scmp.lt.s32.totalorder (!%p357_p3), %s3732_s27, 2  ;;  %v3750_v0 = vmov (!%p357_p3), 0   ;;  %v3638_v1 = vld [vmem:[%s4389_s6 + $0x100] sm:$0xff] (!%p357_p3)   ;;  %v3639_v2 = vld [vmem:[%s4389_s6 + $0x108] sm:$0xff] (!%p357_p3)   ;;  %v3640_v3 = vld [vmem:[%s4389_s6 + $0x110] sm:$0xff] (!%p357_p3)   ;;  %p439_p6 = scmp.lt.s32.totalorder (!%p357_p3), %s3736_s28, 1 }
   0x9   : > { %s4403_s9 = smov (%p33_p4, %s4401_s9), 0  ;;  %360 = sbr.rel (%p357_p3) target bundleno = 567 (0x237), region = 48 }
   0xa   : > { %3637 = vset.pattern.permute.xlu1 (!%p357_p3), %v3750_v0  ;;  %3636 = vset.pattern.permute.xlu0 (!%p357_p3), %v3750_v0  ;;  %v3641_v8 = vld [vmem:[%s4389_s6 + $0x118] sm:$0xff] (!%p357_p3)   ;;  %v3642_v11 = vld [vmem:[%s4389_s6 + $0x120] sm:$0xff] (!%p357_p3)   ;;  %v3644_v15 = vld [vmem:[%s4389_s6 + $0x128] sm:$0xff] (!%p357_p3)   ;;  %v3751_v18 = vmov (!%p357_p3), 0.0   ;;  %s2802_s26 = sadd.s32 (!%p357_p3), 4294967295, %s3732_s27  ;;  %vm626_vm0 = vcmask (!%p357_p3), 1044480  }
   0xb   : > { %3287 = vmatprep.subr.bf16.mxu0 (!%p357_p3), %v3638_v1  ;;  %v3643_v12 = vld [vmem:[%s4389_s6 + $0x40] sm:$0xff] (!%p357_p3)   ;;  %v3645_v16 = vld [vmem:[%s4389_s6 + $0x48] sm:$0xff] (!%p357_p3)   ;;  %v3646_v20 = vld [vmem:[%s4389_s6 + $0x130] sm:$0xff] (!%p357_p3)   ;;  %p436_p7 = scmp.gt.s32.totalorder (!%p357_p3), %s2802_s26, 0 }
   0xc   : > { %3288 = vmatpush3.bf16.msra.mxu0 (!%p357_p3), %v3638_v1  ;;  %3159 = vmatprep.subr.bf16.mxu1 (!%p357_p3), %v3643_v12  ;;  %v3647_v21 = vld [vmem:[%s4389_s6 + $0x50] sm:$0xff] (!%p357_p3)   ;;  %v3648_v24 = vld [vmem:[%s4389_s6 + $0x138] sm:$0xff] (!%p357_p3)   ;;  %v3906_v28 = vld [vmem:[%s4389_s6 + $0x140] sm:$0xff] (!%p357_p3)  }
   0xd   : > { %3289 = vmatprep.subr.bf16.mxu0 (!%p357_p3), %v3639_v2  ;;  %3160 = vmatpush3.bf16.msra.mxu1 (!%p357_p3), %v3643_v12  ;;  %v3649_v25 = vld [vmem:[%s4389_s6 + $0x58] sm:$0xff] (!%p357_p3)   ;;  %v3650_v29 = vld [vmem:[%s4389_s6 + $0x60] sm:$0xff] (!%p357_p3)   ;;  %v3652_v32 = vld [vmem:[%s4389_s6 + $0x68] sm:$0xff] (!%p357_p3)  }
   0xe   : > { %3161 = vmatprep.subr.bf16.mxu1 (!%p357_p3), %v3645_v16  ;;  %v3654_v35 = vld [vmem:[%s4389_s6 + $0x70] sm:$0xff] (!%p357_p3)   ;;  %v3656_v38 = vld [vmem:[%s4389_s6 + $0x78] sm:$0xff] (!%p357_p3)   ;;  %v3931_v40 = vld [vmem:[%s4389_s6] sm:$0xff] (!%p357_p3)  }
  0x10   : > { %s3836_s12 = scalar_select %p477_p5, %s3732_s27, 2  ;;  %3290 = vmatpush3.bf16.msra.mxu0 %v3639_v2 }
  0x11   : > { %3291 = vmatprep.subr.bf16.mxu0 %v3640_v3  ;;  %s4405_s28 = smov (!%p439_p6, %s3736_s28), 1  ;;  %3162 = vmatpush3.bf16.msra.mxu1 %v3645_v16  ;;  %s4407_s26 = smov (!%p436_p7, %s2802_s26), 0 }
  0x12   : > { %s3592_s15 = smul.u32 168, %s3836_s12  ;;  %3163 = vmatprep.subr.bf16.mxu1 %v3647_v21  ;;  %s2803_s10 = sshll.u32 %s4407_s26, 4 }
  0x13   : > { %s3593_s23 = smul.u32 3, %s4405_s28  ;;  %p441_p8 = scmp.lt.s32.totalorder %s2803_s10, 47 }
  0x14   : > { %s3845_s18 = scalar_lea.vmem %s4386_s3, %s3592_s15  ;;  %3292 = vmatpush3.bf16.msra.mxu0 %v3640_v3 }
  0x15   : > { %v505_v4 = vld [vmem:[%s3845_s18 + $0x20] sm:$0xff]  ;;  %v503_v5 = vld [vmem:[%s3845_s18 + $0x10] sm:$0xff]  ;;  %v506_v6 = vld [vmem:[%s3845_s18 + $0x28] sm:$0xff]  ;;  %3293 = vmatprep.subr.bf16.mxu0 %v3641_v8  ;;  %s497_s11 = sadd.s32 %s3593_s23, %s3836_s12  ;;  %3164 = vmatpush3.bf16.msra.mxu1 %v3647_v21  ;;  %s4409_s10 = smov (!%p441_p8, %s2803_s10), 47 }
  0x16   : > { %568 = vperm.xlu1 %3637, %v505_v4   ;;  %537 = vperm.xlu0 %3636, %v503_v5   ;;  %v504_v7 = vld [vmem:[%s3845_s18 + $0x18] sm:$0xff]  ;;  %v507_v10 = vld [vmem:[%s3845_s18 + $0x30] sm:$0xff]  ;;  %v510_v13 = vld [vmem:[%s3845_s18 + $0x48] sm:$0xff]  ;;  %s2812_s13 = sshll.u32 %s497_s11, 3  ;;  %s3936_s11 = smul.u32 48, %s4405_s28 }
  0x17   : > { %v508_v9 = vld [vmem:[%s3845_s18 + $0x38] sm:$0xff]  ;;  %v509_v14 = vld [vmem:[%s3845_s18 + $0x40] sm:$0xff]  ;;  %s3879_s19 = scalar_lea.vmem %s4391_s8, %s2812_s13  ;;  %v511_v19 = vld [vmem:[%s3845_s18 + $0x50] sm:$0xff]  ;;  %3165 = vmatprep.subr.bf16.mxu1 %v3649_v25  ;;  %s461_s23 = sadd.s32 1, %s3732_s27 }
  0x18   : > { %3294 = vmatpush3.bf16.msra.mxu0 %v3641_v8  ;;  %v512_v17 = vld [vmem:[%s3845_s18 + $0x58] sm:$0xff]  ;;  %2609 = vst [vmem:[%s3879_s19 + $0x2] sm:$0x3f] %v3751_v18  ;;  %v514_v22 = vld [vmem:[%s3845_s18 + $0x68] sm:$0xff]  ;;  %v513_v23 = vld [vmem:[%s3845_s18 + $0x60] sm:$0xff]  ;;  %s444_s13 = sadd.s32 %s3936_s11, %s4409_s10  ;;  %p3971_p10 = scmp.lt.s32.totalorder %s461_s23, 2 }
  0x19   : > { %3295 = vmatprep.subr.bf16.mxu0 %v3642_v11  ;;  %v515_v26 = vld [vmem:[%s3845_s18 + $0x70] sm:$0xff]  ;;  %v501_v27 = vld [vmem:[%s3845_s18] sm:$0xff]  ;;  %3166 = vmatpush3.bf16.msra.mxu1 %v3649_v25  ;;  %v502_v30 = vld [vmem:[%s3845_s18 + $0x8] sm:$0xff]  ;;  %s2804_s14 = sshll.u32 %s444_s13, 3 }
  0x1a   : > { %572 = vperm.xlu1 %3637, %v506_v6   ;;  %564 = vperm.xlu0 %3636, %v504_v7   ;;  %v516_v31 = vld [vmem:[%s3845_s18 + $0x78] sm:$0xff]  ;;  %v517_v33 = vld [vmem:[%s3845_s18 + $0x80] sm:$0xff]  ;;  %v518_v34 = vld [vmem:[%s3845_s18 + $0x88] sm:$0xff]  ;;  %s3943_s17 = scalar_lea.vmem %s4383_s0, %s2804_s14  ;;  %s4413_s23 = smov (!%p3971_p10, %s461_s23), 2 }
  0x1b   : > { %3167 = vmatprep.subr.bf16.mxu1 %v3650_v29  ;;  %v519_v36 = vld [vmem:[%s3845_s18 + $0x90] sm:$0xff]  ;;  %v520_v37 = vld [vmem:[%s3845_s18 + $0x98] sm:$0xff]  ;;  %v521_v39 = vld [vmem:[%s3845_s18 + $0xa0] sm:$0x3f]  ;;  %s2805_s18 = sshll.u32 %s3732_s27, 4  ;;  %s2807_s26 = sshll.u32 %s4413_s23, 4 }
  0x1c   : > { %3296 = vmatpush3.bf16.msra.mxu0 %v3642_v11  ;;  %p454_p9 = scmp.lt.s32.totalorder %s2805_s18, 47  ;;  %v524_v41 = vld [vmem:[%s3943_s17 + $0x7d] sm:$0x7]  ;;  %p4017_p11 = scmp.lt.s32.totalorder %s2807_s26, 47 }
  0x1d   : > { %3297 = vmatprep.subr.bf16.mxu0 %v3644_v15  ;;  %3168 = vmatpush3.bf16.msra.mxu1 %v3650_v29 }
  0x1e   : > { %580 = vperm.xlu1 %3637, %v508_v9   ;;  %576 = vperm.xlu0 %3636, %v507_v10   ;;  %s4411_s18 = smov (!%p454_p9, %s2805_s18), 47  ;;  %s4415_s26 = smov (!%p4017_p11, %s2807_s26), 47 }
  0x1f   : > { %3169 = vmatprep.subr.bf16.mxu1 %v3652_v32  ;;  %s457_s20 = sadd.s32 %s3936_s11, %s4411_s18  ;;  %s470_s28 = sadd.s32 %s3936_s11, %s4415_s26 }
  0x20   : > { %3298 = vmatpush3.bf16.msra.mxu0 %v3644_v15  ;;  %s3946_s21 = sshll.u32 %s457_s20, 3 }
  0x21   : > { %3299 = vmatprep.subr.bf16.mxu0 %v3646_v20  ;;  %3170 = vmatpush3.bf16.msra.mxu1 %v3652_v32  ;;  %s3953_s22 = scalar_lea.vmem %s4384_s1, %s3946_s21  ;;  %s4330_s24 = scalar_lea.vmem %s4390_s7, %s3946_s21 }
  0x22   : > { %588 = vperm.xlu1 %3637, %v510_v13   ;;  %584 = vperm.xlu0 %3636, %v509_v14   ;;  %v548_v47 = vld [vmem:[%s3953_s22 + $0x10] sm:$0xff]  ;;  %v546_v51 = vld [vmem:[%s3953_s22] sm:$0xff]  ;;  %v547_v52 = vld [vmem:[%s3953_s22 + $0x8] sm:$0xff] }
  0x23   : > { %3171 = vmatprep.subr.bf16.mxu1 %v3654_v35  ;;  %v549_v63 = vld [vmem:[%s3953_s22 + $0x18] sm:$0xff]  ;;  %v550_v0 = vld [vmem:[%s3953_s22 + $0x20] sm:$0xff]  ;;  %v551_v10 = vld [vmem:[%s3953_s22 + $0x28] sm:$0xff] }
  0x24   : > { %3300 = vmatpush3.bf16.msra.mxu0 %v3646_v20  ;;  %v552_v11 = vld [vmem:[%s3953_s22 + $0x30] sm:$0xff]  ;;  %v3653_v14 = vld [vmem:[%s4389_s6 + $0x148] sm:$0xff]  }
  0x25   : > { %3301 = vmatprep.subr.bf16.mxu0 %v3648_v24  ;;  %3172 = vmatpush3.bf16.msra.mxu1 %v3654_v35  ;;  %v556_v35 = vld [vmem:[%s3953_s22 + $0x50] sm:$0xff] }
  0x26   : > { %596 = vperm.xlu1 %3637, %v512_v17   ;;  %592 = vperm.xlu0 %3636, %v511_v19  }
  0x27   : > { %3173 = vmatprep.subr.bf16.mxu1 %v3656_v38 }
  0x28   : > { %3302 = vmatpush3.bf16.msra.mxu0 %v3648_v24 }
  0x29   : > { %3319 = vmatprep.subr.bf16.mxu0 %v3906_v28  ;;  %3174 = vmatpush3.bf16.msra.mxu1 %v3656_v38 }
  0x2a   : > { %604 = vperm.xlu1 %3637, %v514_v22   ;;  %600 = vperm.xlu0 %3636, %v513_v23   ;;  %v553_v22 = vld [vmem:[%s3953_s22 + $0x38] sm:$0xff]  ;;  %v554_v23 = vld [vmem:[%s3953_s22 + $0x40] sm:$0xff] }
  0x2b   : > { %3191 = vmatprep.subr.bf16.mxu1 %v3931_v40 }
  0x2e   : > { %608 = vperm.xlu0 %3636, %v515_v26   ;;  %527 = vperm.xlu1 %3637, %v501_v27   ;;  %v3655_v26 = vld [vmem:[%s4389_s6 + $0x150] sm:$0xff]  }
  0x32   : > { %532 = vperm.xlu0 %3636, %v502_v30   ;;  %612 = vperm.xlu1 %3637, %v516_v31  }
  0x36   : > { %616 = vperm.xlu0 %3636, %v517_v33   ;;  %620 = vperm.xlu1 %3637, %v518_v34   ;;  %v555_v34 = vld [vmem:[%s3953_s22 + $0x48] sm:$0xff] }
  0x3a   : > { %624 = vperm.xlu0 %3636, %v519_v36   ;;  %713 = vperm.xlu1 %3637, %v520_v37   ;;  %v522_v37 = vld [vmem:[%s3943_s17 + $0x6d] sm:$0xff] }
  0x3e   : > { %717 = vperm.xlu0 %3636, %v521_v39   ;;  %v3657_v39 = vld [vmem:[%s4389_s6 + $0x158] sm:$0xff]  }
  0x95   : > { %v569_v42 = vpop.permute.xlu1 %568  ;;  %v538_v43 = vpop.permute.xlu0 %537 }
  0x96   : > { %v542_v44 = vmul.f32 %v538_v43, %v524_v41  ;;  %v630_v45 = vrot.slane %v569_v42, 3  ;;  %v627_v49 = vrot.slane %v538_v43, 3 }
  0x98   : > { %545 = vst [vmem:[#allocation2 + $0x10] sm:$0x7] %v542_v44 }
  0x99   : > { %v573_v46 = vpop.permute.xlu1 %572  ;;  %v565_v48 = vpop.permute.xlu0 %564 }
  0x9a   : > { %v632_v50 = vrot.slane %v573_v46, 3  ;;  %v628_v53 = vrot.slane %v565_v48, 3 }
  0x9c   : > { %v3960_v54 = vsel %vm626_vm0, %v630_v45, %v632_v50  ;;  %v3963_v55 = vsel %vm626_vm0, %v627_v49, %v628_v53  ;;  %v3966_v56 = vsel %vm626_vm0, %v628_v53, %v630_v45 }
  0x9d   : > { %v678_v57 = vmul.f32 %v3960_v54, %v548_v47  ;;  %v676_v58 = vmul.f32 %v3963_v55, %v546_v51  ;;  %v677_v59 = vmul.f32 %v3966_v56, %v547_v52  ;;  %v581_v60 = vpop.permute.xlu1 %580  ;;  %v577_v61 = vpop.permute.xlu0 %576  ;;  %v557_v47 = vld [vmem:[%s3953_s22 + $0x58] sm:$0xff]  ;;  %v3659_v52 = vld [vmem:[%s4389_s6 + $0x160] sm:$0xff]  }
  0x9e   : > { %v636_v62 = vrot.slane %v581_v60, 3  ;;  %v634_v1 = vrot.slane %v577_v61, 3  ;;  %v558_v61 = vld [vmem:[%s3953_s22 + $0x60] sm:$0xff] }
  0x9f   : > { %694 = vst [vmem:[#allocation2 + $0x23] sm:$0xff] %v678_v57  ;;  %692 = vst [vmem:[#allocation2 + $0x13] sm:$0xff] %v676_v58  ;;  %v1523_v2 = vpack.c.bf16 %v677_v59, %v676_v58 }
  0xa0   : > { %693 = vst [vmem:[#allocation2 + $0x1b] sm:$0xff] %v677_v59  ;;  %v3978_v3 = vsel %vm626_vm0, %v632_v50, %v634_v1  ;;  %v3981_v4 = vsel %vm626_vm0, %v634_v1, %v636_v62  ;;  %v523_v50 = vld [vmem:[%s3943_s17 + $0x75] sm:$0xff]  ;;  %s2808_s17 = sshll.u32 %s470_s28, 3 }
  0xa1   : > { %v679_v5 = vmul.f32 %v3978_v3, %v549_v63  ;;  %v680_v6 = vmul.f32 %v3981_v4, %v550_v0  ;;  %v589_v7 = vpop.permute.xlu1 %588  ;;  %v585_v8 = vpop.permute.xlu0 %584  ;;  %3303 = vmatprep.mubr.bf16.mxu0 %v1523_v2  ;;  %v3661_v0 = vld [vmem:[%s4389_s6 + $0x168] sm:$0xff]   ;;  %s4070_s27 = scalar_lea.vmem %s4385_s2, %s2808_s17 }
  0xa2   : > { %v640_v9 = vrot.slane %v589_v7, 3  ;;  %v638_v12 = vrot.slane %v585_v8, 3  ;;  %v559_v7 = vld [vmem:[%s3953_s22 + $0x68] sm:$0xff] }
  0xa3   : > { %695 = vst [vmem:[#allocation2 + $0x2b] sm:$0xff] %v679_v5  ;;  %696 = vst [vmem:[#allocation2 + $0x33] sm:$0xff] %v680_v6  ;;  %v1524_v13 = vpack.c.bf16 %v679_v5, %v678_v57 }
  0xa4   : > { %v3995_v15 = vsel %vm626_vm0, %v636_v62, %v638_v12  ;;  %v3998_v16 = vsel %vm626_vm0, %v638_v12, %v640_v9 }
  0xa5   : > { %v681_v17 = vmul.f32 %v3995_v15, %v551_v10  ;;  %v682_v18 = vmul.f32 %v3998_v16, %v552_v11  ;;  %v597_v19 = vpop.permute.xlu1 %596  ;;  %v593_v20 = vpop.permute.xlu0 %592  ;;  %3304 = vmatmul.mubr.bf16.vlgmr.msra.gmra.mrb[0].mxu0 %v1524_v13  ;;  %v3663_v11 = vld [vmem:[%s4389_s6 + $0x170] sm:$0xff]  }
  0xa6   : > { %v644_v21 = vrot.slane %v597_v19, 3  ;;  %v642_v24 = vrot.slane %v593_v20, 3  ;;  %3320 = vmatpush3.bf16.msra.mxu0 %v3906_v28  ;;  %v561_v19 = vld [vmem:[%s3953_s22 + $0x78] sm:$0xff] }
  0xa7   : > { %697 = vst [vmem:[#allocation2 + $0x3b] sm:$0xff] %v681_v17  ;;  %698 = vst [vmem:[#allocation2 + $0x43] sm:$0xff] %v682_v18  ;;  %v1525_v25 = vpack.c.bf16 %v681_v17, %v680_v6  ;;  %3321 = vmatprep.subr.bf16.mxu0 %v3653_v14 }
  0xa8   : > { %v4010_v27 = vsel %vm626_vm0, %v640_v9, %v642_v24  ;;  %v4013_v29 = vsel %vm626_vm0, %v642_v24, %v644_v21  ;;  %v560_v9 = vld [vmem:[%s3953_s22 + $0x70] sm:$0xff] }
  0xa9   : > { %v683_v28 = vmul.f32 %v4010_v27, %v553_v22  ;;  %v684_v30 = vmul.f32 %v4013_v29, %v554_v23  ;;  %v605_v31 = vpop.permute.xlu1 %604  ;;  %v601_v32 = vpop.permute.xlu0 %600  ;;  %3307 = vmatprep.mubr.bf16.mxu0 %v1525_v25  ;;  %v774_v24 = vld [vmem:[#allocation2 + $0x11] sm:$0xff]  ;;  %v775_v25 = vld [vmem:[#allocation2 + $0x19] sm:$0xff] }
  0xaa   : > { %v648_v33 = vrot.slane %v605_v31, 3  ;;  %v646_v36 = vrot.slane %v601_v32, 3  ;;  %3322 = vmatpush3.bf16.msra.mxu0 %v3653_v14  ;;  %v777_v31 = vld [vmem:[#allocation2 + $0x29] sm:$0xff] }
  0xab   : > { %699 = vst [vmem:[#allocation2 + $0x4b] sm:$0xff] %v683_v28  ;;  %700 = vst [vmem:[#allocation2 + $0x53] sm:$0xff] %v684_v30  ;;  %v1526_v38 = vpack.c.bf16 %v683_v28, %v682_v18  ;;  %3323 = vmatprep.subr.bf16.mxu0 %v3655_v26 }
  0xac   : > { %v4030_v41 = vsel %vm626_vm0, %v644_v21, %v646_v36  ;;  %v4033_v42 = vsel %vm626_vm0, %v646_v36, %v648_v33  ;;  %v708_v21 = vld [vmem:[%s4070_s27] sm:$0xff] }
  0xad   : > { %v685_v43 = vmul.f32 %v4030_v41, %v555_v34  ;;  %v686_v44 = vmul.f32 %v4033_v42, %v556_v35  ;;  %v609_v45 = vpop.permute.xlu0 %608  ;;  %v528_v46 = vpop.permute.xlu1 %527  ;;  %3308 = vmatmul.mubr.bf16.gmra.mrb[4].mxu0 %v1526_v38  ;;  %v710_v35 = vld [vmem:[%s4070_s27 + $0x10] sm:$0x7] }
  0xae   : > { %v650_v48 = vrot.slane %v609_v45, 3  ;;  %v4042_v49 = vmul.f32 %v528_v46, %v522_v37  ;;  %3324 = vmatpush3.bf16.msra.mxu0 %v3655_v26  ;;  %v3665_v26 = vld [vmem:[%s4389_s6 + $0x178] sm:$0xff]   ;;  %v3660_v37 = vld [vmem:[%s4389_s6 + $0x8] sm:$0xff]  }
  0xaf   : > { %701 = vst [vmem:[#allocation2 + $0x5b] sm:$0xff] %v685_v43  ;;  %702 = vst [vmem:[#allocation2 + $0x63] sm:$0xff] %v686_v44  ;;  %v1527_v51 = vpack.c.bf16 %v685_v43, %v684_v30  ;;  %3325 = vmatprep.subr.bf16.mxu0 %v3657_v39  ;;  %v776_v45 = vld [vmem:[#allocation2 + $0x21] sm:$0xff]  ;;  %v1709_v46 = vld [vmem:[#allocation2 + $0x14] sm:$0xff] }
  0xb0   : > { %v4049_v53 = vsel %vm626_vm0, %v648_v33, %v650_v48  ;;  %543 = vst [vmem:[#allocation2] sm:$0xff] %v4042_v49 }
  0xb1   : > { %v687_v57 = vmul.f32 %v4049_v53, %v557_v47  ;;  %v533_v58 = vpop.permute.xlu0 %532  ;;  %v613_v59 = vpop.permute.xlu1 %612  ;;  %3311 = vmatprep.mubr.bf16.mxu0 %v1527_v51  ;;  %v1710_v47 = vld [vmem:[#allocation2 + $0x1c] sm:$0xff]  ;;  %v790_v51 = vpack.c.bf16 %v777_v31, %v776_v45 }
  0xb2   : > { %v4054_v60 = vmul.f32 %v533_v58, %v523_v50  ;;  %v652_v62 = vrot.slane %v613_v59, 3  ;;  %3326 = vmatpush3.bf16.msra.mxu0 %v3657_v39 }
  0xb3   : > { %703 = vst [vmem:[#allocation2 + $0x6b] sm:$0xff] %v687_v57  ;;  %v1528_v63 = vpack.c.bf16 %v687_v57, %v686_v44  ;;  %3327 = vmatprep.subr.bf16.mxu0 %v3659_v52  ;;  %v789_v44 = vpack.c.bf16 %v775_v25, %v774_v24  ;;  %v3667_v57 = vld [vmem:[%s4389_s6 + $0x180] sm:$0xff]   ;;  %v3671_v24 = vld [vmem:[%s4389_s6 + $0x190] sm:$0xff]  }
  0xb4   : > { %544 = vst [vmem:[#allocation2 + $0x8] sm:$0xff] %v4054_v60  ;;  %v4062_v1 = vsel %vm626_vm0, %v650_v48, %v652_v62  ;;  %v709_v48 = vld [vmem:[%s4070_s27 + $0x8] sm:$0xff]  ;;  %v782_v25 = vld [vmem:[#allocation2 + $0x51] sm:$0xff] }
  0xb5   : > { %v688_v2 = vmul.f32 %v4062_v1, %v558_v61  ;;  %v617_v5 = vpop.permute.xlu0 %616  ;;  %v621_v6 = vpop.permute.xlu1 %620  ;;  %3312 = vmatmul.mubr.bf16.gmra.mrb[8].mxu0 %v1528_v63  ;;  %v1725_v61 = vpack.c.bf16 %v1710_v47, %v1709_v46  ;;  %v3662_v63 = vld [vmem:[%s4389_s6 + $0x10] sm:$0xff]  }
  0xb6   : > { %v654_v8 = vrot.slane %v617_v5, 3  ;;  %v656_v10 = vrot.slane %v621_v6, 3  ;;  %3328 = vmatpush3.bf16.msra.mxu0 %v3659_v52  ;;  %v3664_v5 = vld [vmem:[%s4389_s6 + $0x18] sm:$0xff]   ;;  %v1711_v6 = vld [vmem:[#allocation2 + $0x24] sm:$0xff] }
  0xb7   : > { %704 = vst [vmem:[#allocation2 + $0x73] sm:$0xff] %v688_v2  ;;  %3329 = vmatprep.subr.bf16.mxu0 %v3661_v0  ;;  %v784_v31 = vld [vmem:[#allocation2 + $0x61] sm:$0xff] }
  0xb8   : > { %v4076_v12 = vsel %vm626_vm0, %v652_v62, %v654_v8  ;;  %v4079_v13 = vsel %vm626_vm0, %v654_v8, %v656_v10 }
  0xb9   : > { %v689_v14 = vmul.f32 %v4076_v12, %v559_v7  ;;  %v690_v17 = vmul.f32 %v4079_v13, %v560_v9  ;;  %v625_v18 = vpop.permute.xlu0 %624  ;;  %v714_v20 = vpop.permute.xlu1 %713  ;;  %v1712_v7 = vld [vmem:[#allocation2 + $0x2c] sm:$0xff]  ;;  %v780_v9 = vld [vmem:[#allocation2 + $0x41] sm:$0xff] }
  0xba   : > { %v658_v22 = vrot.slane %v625_v18, 3  ;;  %v719_v23 = vrot.slane %v714_v20, 3  ;;  %3330 = vmatpush3.bf16.msra.mxu0 %v3661_v0  ;;  %v779_v0 = vld [vmem:[#allocation2 + $0x39] sm:$0xff]  ;;  %v3669_v18 = vld [vmem:[%s4389_s6 + $0x188] sm:$0xff]  }
  0xbb   : > { %705 = vst [vmem:[#allocation2 + $0x7b] sm:$0xff] %v689_v14  ;;  %706 = vst [vmem:[#allocation2 + $0x83] sm:$0xff] %v690_v17  ;;  %v772_v28 = vld [vmem:[#allocation2 + $0x1] sm:$0xff]  ;;  %v773_v30 = vld [vmem:[#allocation2 + $0x9] sm:$0xff]  ;;  %v1529_v32 = vpack.c.bf16 %v689_v14, %v688_v2  ;;  %3331 = vmatprep.subr.bf16.mxu0 %v3663_v11 }
  0xbc   : > { %v4089_v33 = vsel %vm626_vm0, %v656_v10, %v658_v22  ;;  %v720_v34 = vsel %vm626_vm0, %v658_v22, %v719_v23  ;;  %v788_v36 = vpack.c.bf16 %v773_v30, %v772_v28  ;;  %v781_v2 = vld [vmem:[#allocation2 + $0x49] sm:$0xff]  ;;  %v1713_v10 = vld [vmem:[#allocation2 + $0x34] sm:$0xff]  ;;  %v3666_v20 = vld [vmem:[%s4389_s6 + $0x20] sm:$0xff]  }
  0xbd   : > { %v691_v38 = vmul.f32 %v4089_v33, %v561_v19  ;;  %v718_v39 = vpop.permute.xlu0 %717  ;;  %v726_v43 = vmul.f32 %v720_v34, %v708_v21  ;;  %3315 = vmatprep.mubr.bf16.mxu0 %v1529_v32  ;;  %v792_v14 = vpack.c.bf16 %v781_v2, %v780_v9  ;;  %v783_v21 = vld [vmem:[#allocation2 + $0x59] sm:$0xff]  ;;  %v785_v22 = vld [vmem:[#allocation2 + $0x69] sm:$0xff] }
  0xbe   : > { %v721_v50 = vrot.slane %v718_v39, 3  ;;  %3175 = vmatprep.mubr.bf16.mxu1 %v788_v36  ;;  %3332 = vmatpush3.bf16.msra.mxu0 %v3663_v11  ;;  %v1714_v11 = vld [vmem:[#allocation2 + $0x3c] sm:$0xff]  ;;  %v1716_v28 = vld [vmem:[#allocation2 + $0x4c] sm:$0xff]  ;;  %v793_v30 = vpack.c.bf16 %v783_v21, %v782_v25  ;;  %v1717_v32 = vld [vmem:[#allocation2 + $0x54] sm:$0xff] }
  0xbf   : > { %707 = vst [vmem:[#allocation2 + $0x8b] sm:$0xff] %v691_v38  ;;  %729 = vst [vmem:[#allocation2 + $0x93] sm:$0xff] %v726_v43  ;;  %3176 = vmatmul.mubr.bf16.vlgmr.msra.gmra.mrb[0].mxu1 %v789_v44  ;;  %v1530_v52 = vpack.c.bf16 %v691_v38, %v690_v17  ;;  %3333 = vmatprep.subr.bf16.mxu0 %v3665_v26  ;;  %v4109_v17 = vpack.c.bf16 %v1712_v7, %v1711_v6  ;;  %v1718_v34 = vld [vmem:[#allocation2 + $0x5c] sm:$0xff]  ;;  %v3670_v39 = vld [vmem:[%s4389_s6 + $0x30] sm:$0xff]  }
  0xc0   : > { %v722_v58 = vsel %vm626_vm0, %v719_v23, %v721_v50  ;;  %v728_v59 = vmul.f32 %v721_v50, %v710_v35  ;;  %3179 = vmatprep.mubr.bf16.mxu1 %v790_v51  ;;  %3192 = vmatpush3.bf16.msra.mxu1 %v3931_v40  ;;  %v778_v40 = vld [vmem:[#allocation2 + $0x31] sm:$0xff]  ;;  %v4114_v19 = vpack.c.bf16 %v1714_v11, %v1713_v10  ;;  %v3668_v23 = vld [vmem:[%s4389_s6 + $0x28] sm:$0xff]   ;;  %v3675_v44 = vld [vmem:[%s4389_s6 + $0x1a0] sm:$0xff]  }
  0xc1   : > { %v727_v62 = vmul.f32 %v722_v58, %v709_v48  ;;  %3193 = vmatprep.subr.bf16.mxu1 %v3660_v37  ;;  %3316 = vmatmul.mubr.bf16.gmra.mrb[12].mxu0 %v1530_v52  ;;  %v791_v8 = vpack.c.bf16 %v779_v0, %v778_v40  ;;  %v794_v35 = vpack.c.bf16 %v785_v22, %v784_v31  ;;  %v786_v45 = vld [vmem:[#allocation2 + $0x71] sm:$0xff]  ;;  %v736_v6 = vld [vmem:[#allocation2 + $0x20] sm:$0xff]  ;;  %v3676_v7 = vld [vmem:[%s4389_s6 + $0x88] sm:$0xff]  }
  0xc2   : > { %731 = vst [vmem:[#allocation2 + $0xa3] sm:$0x7] %v728_v59  ;;  %3335 = vmatprep.mubr.bf16.mxu0 %v1725_v61  ;;  %3334 = vmatpush3.bf16.msra.mxu0 %v3665_v26  ;;  %v1715_v26 = vld [vmem:[#allocation2 + $0x44] sm:$0xff]  ;;  %v4132_v38 = vpack.c.bf16 %v1718_v34, %v1717_v32  ;;  %v787_v43 = vld [vmem:[#allocation2 + $0x79] sm:$0xff]  ;;  %v1720_v46 = vld [vmem:[#allocation2 + $0x6c] sm:$0xff]  ;;  %v748_v52 = vpack.c.bf16 %v4054_v60, %v4042_v49 }
  0xc3   : > { %730 = vst [vmem:[#allocation2 + $0x9b] sm:$0xff] %v727_v62  ;;  %3351 = vmatprep.subr.bf16.mxu0 %v3667_v57  ;;  %v4127_v36 = vpack.c.bf16 %v1716_v28, %v1715_v26  ;;  %v795_v47 = vpack.c.bf16 %v787_v43, %v786_v45  ;;  %v3672_v48 = vld [vmem:[%s4389_s6 + $0x38] sm:$0xff]   ;;  %v3677_v59 = vld [vmem:[%s4389_s6 + $0x1a8] sm:$0xff]   ;;  %v3674_v62 = vld [vmem:[%s4389_s6 + $0x80] sm:$0xff]  }
  0xc4   : > { %3194 = vmatpush3.bf16.msra.mxu1 %v3660_v37  ;;  %v3673_v37 = vld [vmem:[%s4389_s6 + $0x198] sm:$0xff]   ;;  %v734_v49 = vld [vmem:[#allocation2 + $0x10] sm:$0xff]  ;;  %v3682_v26 = vld [vmem:[%s4389_s6 + $0xa0] sm:$0xff]  }
  0xc5   : > { %3195 = vmatprep.subr.bf16.mxu1 %v3662_v63  ;;  %v1721_v50 = vld [vmem:[#allocation2 + $0x74] sm:$0xff]  ;;  %v1722_v51 = vld [vmem:[#allocation2 + $0x7c] sm:$0xff]  ;;  %v1104_v45 = vld [vmem:[#allocation2 + $0xa] sm:$0xff] }
  0xc6   : > { %v4152_v61 = vpack.c.bf16 %v1722_v51, %v1721_v50  ;;  %v735_v60 = vld [vmem:[#allocation2 + $0x18] sm:$0xff]  ;;  %v3679_v0 = vld [vmem:[%s4389_s6 + $0x1b0] sm:$0xff]   ;;  %v1723_v2 = vld [vmem:[#allocation2 + $0x84] sm:$0xff] }
  0xc7   : > { %3180 = vmatmul.mubr.bf16.gmra.mrb[4].mxu1 %v791_v8  ;;  %v749_v40 = vpack.c.bf16 %v735_v60, %v734_v49  ;;  %v3681_v10 = vld [vmem:[%s4389_s6 + $0x1b8] sm:$0xff]   ;;  %v3678_v11 = vld [vmem:[%s4389_s6 + $0x90] sm:$0xff]   ;;  %v3693_v51 = vld [vmem:[%s4389_s6 + $0x1e8] sm:$0xff]  }
  0xc8   : > { %3183 = vmatprep.mubr.bf16.mxu1 %v792_v14  ;;  %3196 = vmatpush3.bf16.msra.mxu1 %v3662_v63  ;;  %v737_v63 = vld [vmem:[#allocation2 + $0x28] sm:$0xff]  ;;  %v739_v14 = vld [vmem:[#allocation2 + $0x38] sm:$0xff]  ;;  %v738_v21 = vld [vmem:[#allocation2 + $0x30] sm:$0xff] }
  0xc9   : > { %3197 = vmatprep.subr.bf16.mxu1 %v3664_v5  ;;  %3336 = vmatmul.mubr.bf16.vlgmr.msra.gmra.mrb[0].mxu0 %v4109_v17  ;;  %v750_v8 = vpack.c.bf16 %v737_v63, %v736_v6  ;;  %v751_v22 = vpack.c.bf16 %v739_v14, %v738_v21  ;;  %v743_v28 = vld [vmem:[#allocation2 + $0x58] sm:$0xff]  ;;  %v3687_v31 = vld [vmem:[%s4389_s6 + $0x1d0] sm:$0xff]   ;;  %v3692_v49 = vld [vmem:[%s4389_s6 + $0xc8] sm:$0xff]  }
  0xca   : > { %3352 = vmatpush3.bf16.msra.mxu0 %v3667_v57  ;;  %3339 = vmatprep.mubr.bf16.mxu0 %v4114_v19  ;;  %v1719_v57 = vld [vmem:[#allocation2 + $0x64] sm:$0xff]  ;;  %v742_v32 = vld [vmem:[#allocation2 + $0x50] sm:$0xff]  ;;  %v747_v43 = vld [vmem:[#allocation2 + $0x78] sm:$0xff] }
  0xcb   : > { %3353 = vmatprep.subr.bf16.mxu0 %v3669_v18  ;;  %v4147_v58 = vpack.c.bf16 %v1720_v46, %v1719_v57  ;;  %v753_v34 = vpack.c.bf16 %v743_v28, %v742_v32  ;;  %v3691_v46 = vld [vmem:[%s4389_s6 + $0x1e0] sm:$0xff]   ;;  %v3688_v50 = vld [vmem:[%s4389_s6 + $0xb8] sm:$0xff]  }
  0xcc   : > { %3198 = vmatpush3.bf16.msra.mxu1 %v3664_v5  ;;  %v1724_v5 = vld [vmem:[#allocation2 + $0x8c] sm:$0xff]  ;;  %v1925_v60 = vld [vmem:[#allocation2 + $0x94] sm:$0xff]  ;;  %v1926_v63 = vld [vmem:[#allocation2 + $0x9c] sm:$0xff] }
  0xcd   : > { %3199 = vmatprep.subr.bf16.mxu1 %v3666_v20  ;;  %v4165_v9 = vpack.c.bf16 %v1724_v5, %v1723_v2  ;;  %v1105_v57 = vld [vmem:[#allocation2 + $0x12] sm:$0xff]  ;;  %v2113_v2 = vld [vmem:[#allocation2 + $0x25] sm:$0xff]  ;;  %v1934_v6 = vpack.c.bf16 %v1926_v63, %v1925_v60 }
  0xce   : > { %3354 = vmatpush3.bf16.msra.mxu0 %v3669_v18  ;;  %v741_v18 = vld [vmem:[#allocation2 + $0x48] sm:$0xff]  ;;  %v3696_v14 = vld [vmem:[%s4389_s6 + $0xd8] sm:$0xff]   ;;  %v3698_v32 = vld [vmem:[%s4389_s6 + $0xe0] sm:$0xff]  }
  0xcf   : > { %3184 = vmatmul.mubr.bf16.gmra.mrb[8].mxu1 %v793_v30  ;;  %3355 = vmatprep.subr.bf16.mxu0 %v3671_v24  ;;  %v745_v30 = vld [vmem:[#allocation2 + $0x68] sm:$0xff]  ;;  %v2115_v21 = vld [vmem:[#allocation2 + $0x35] sm:$0xff] }
  0xd0   : > { %3187 = vmatprep.mubr.bf16.mxu1 %v794_v35  ;;  %3200 = vmatpush3.bf16.msra.mxu1 %v3666_v20  ;;  %v3683_v20 = vld [vmem:[%s4389_s6 + $0x1c0] sm:$0xff]   ;;  %v2114_v5 = vld [vmem:[#allocation2 + $0x2d] sm:$0xff]  ;;  %v3704_v63 = vld [vmem:[%s4389_s6 + $0xf8] sm:$0xff]  }
  0xd1   : > { %3201 = vmatprep.subr.bf16.mxu1 %v3668_v23  ;;  %3340 = vmatmul.mubr.bf16.gmra.mrb[4].mxu0 %v4127_v36  ;;  %v744_v35 = vld [vmem:[#allocation2 + $0x60] sm:$0xff] }
  0xd2   : > { %3356 = vmatpush3.bf16.msra.mxu0 %v3671_v24  ;;  %3343 = vmatprep.mubr.bf16.mxu0 %v4132_v38  ;;  %v3680_v24 = vld [vmem:[%s4389_s6 + $0x98] sm:$0xff]  }
  0xd3   : > { %3357 = vmatprep.subr.bf16.mxu0 %v3673_v37 }
  0xd4   : > { %3202 = vmatpush3.bf16.msra.mxu1 %v3668_v23  ;;  %v740_v23 = vld [vmem:[#allocation2 + $0x40] sm:$0xff] }
  0xd5   : > { %3203 = vmatprep.subr.bf16.mxu1 %v3670_v39  ;;  %v752_v25 = vpack.c.bf16 %v741_v18, %v740_v23  ;;  %v4241_v18 = vld [vmem:[%s4389_s6 + $0x200] sm:$0xff]  }
  0xd6   : > { %3358 = vmatpush3.bf16.msra.mxu0 %v3673_v37  ;;  %v3684_v37 = vld [vmem:[%s4389_s6 + $0xa8] sm:$0xff]  }
  0xd7   : > { %3188 = vmatmul.mubr.bf16.gmra.mrb[12].mxu1 %v795_v47  ;;  %3359 = vmatprep.subr.bf16.mxu0 %v3675_v44  ;;  %v746_v47 = vld [vmem:[#allocation2 + $0x70] sm:$0xff] }
  0xd8   : > { %3204 = vmatpush3.bf16.msra.mxu1 %v3670_v39  ;;  %3207 = vmatprep.mubr.bf16.mxu1 %v748_v52  ;;  %v3686_v39 = vld [vmem:[%s4389_s6 + $0xb0] sm:$0xff]   ;;  %v3690_v52 = vld [vmem:[%s4389_s6 + $0xc0] sm:$0xff]  }
  0xd9   : > { %3205 = vmatprep.subr.bf16.mxu1 %v3672_v48  ;;  %3344 = vmatmul.mubr.bf16.gmra.mrb[8].mxu0 %v4147_v58 }
  0xda   : > { %3360 = vmatpush3.bf16.msra.mxu0 %v3675_v44  ;;  %3347 = vmatprep.mubr.bf16.mxu0 %v4152_v61  ;;  %v1103_v44 = vld [vmem:[#allocation2 + $0x2] sm:$0xff] }
  0xdb   : > { %3361 = vmatprep.subr.bf16.mxu0 %v3677_v59 }
  0xdc   : > { %3206 = vmatpush3.bf16.msra.mxu1 %v3672_v48  ;;  %v755_v48 = vpack.c.bf16 %v747_v43, %v746_v47 }
  0xdd   : > { %3223 = vmatprep.subr.bf16.mxu1 %v3674_v62 }
  0xde   : > { %3362 = vmatpush3.bf16.msra.mxu0 %v3677_v59  ;;  %v1108_v59 = vld [vmem:[#allocation2 + $0x2a] sm:$0xff] }
  0xdf   : > { %3208 = vmatmul.mubr.bf16.vlgmr.msra.gmra.mrb[0].mxu1 %v749_v40  ;;  %3363 = vmatprep.subr.bf16.mxu0 %v3679_v0 }
  0xe0   : > { %3211 = vmatprep.mubr.bf16.mxu1 %v750_v8  ;;  %3224 = vmatpush3.bf16.msra.mxu1 %v3674_v62  ;;  %v3695_v62 = vld [vmem:[%s4389_s6 + $0x1f0] sm:$0xff]   ;;  %v2129_v8 = vpack.c.bf16 %v2114_v5, %v2113_v2 }
  0xe1   : > { %3225 = vmatprep.subr.bf16.mxu1 %v3676_v7  ;;  %3348 = vmatmul.mubr.bf16.gmra.mrb[12].mxu0 %v4165_v9  ;;  %v2126_v2 = vld [vmem:[#allocation2 + $0x8d] sm:$0xff] }
  0xe2   : > { %3364 = vmatpush3.bf16.msra.mxu0 %v3679_v0  ;;  %3367 = vmatprep.mubr.bf16.mxu0 %v4109_v17  ;;  %v3685_v17 = vld [vmem:[%s4389_s6 + $0x1c8] sm:$0xff]  }
  0xe3   : > { %3365 = vmatprep.subr.bf16.mxu0 %v3681_v10 }
  0xe4   : > { %3226 = vmatpush3.bf16.msra.mxu1 %v3676_v7  ;;  %v3697_v7 = vld [vmem:[%s4389_s6 + $0x1f8] sm:$0xff]  }
  0xe5   : > { %3227 = vmatprep.subr.bf16.mxu1 %v3678_v11 }
  0xe6   : > { %3366 = vmatpush3.bf16.msra.mxu0 %v3681_v10  ;;  %v1110_v10 = vld [vmem:[#allocation2 + $0x3a] sm:$0xff] }
  0xe7   : > { %3212 = vmatmul.mubr.bf16.gmra.mrb[4].mxu1 %v751_v22  ;;  %3383 = vmatprep.subr.bf16.mxu0 %v3683_v20  ;;  %v2116_v22 = vld [vmem:[#allocation2 + $0x3d] sm:$0xff] }
  0xe8   : > { %3215 = vmatprep.mubr.bf16.mxu1 %v752_v25  ;;  %3228 = vmatpush3.bf16.msra.mxu1 %v3678_v11  ;;  %v1112_v11 = vld [vmem:[#allocation2 + $0x4a] sm:$0xff]  ;;  %v2130_v28 = vpack.c.bf16 %v2116_v22, %v2115_v21  ;;  %v2318_v22 = vld [vmem:[#allocation2 + $0x3e] sm:$0xff] }
  0xe9   : > { %3229 = vmatprep.subr.bf16.mxu1 %v3680_v24  ;;  %3368 = vmatmul.mubr.bf16.vlgmr.msra.gmra.mrb[0].mxu0 %v4114_v19  ;;  %v754_v19 = vpack.c.bf16 %v745_v30, %v744_v35  ;;  %v2117_v25 = vld [vmem:[#allocation2 + $0x45] sm:$0xff] }
  0xea   : > { %3384 = vmatpush3.bf16.msra.mxu0 %v3683_v20  ;;  %3371 = vmatprep.mubr.bf16.mxu0 %v4127_v36  ;;  %v3689_v36 = vld [vmem:[%s4389_s6 + $0x1d8] sm:$0xff]   ;;  %v4252_v30 = vld [vmem:[%s4389_s6 + $0x208] sm:$0xff]  }
  0xeb   : > { %3385 = vmatprep.subr.bf16.mxu0 %v3685_v17  ;;  %v1109_v20 = vld [vmem:[#allocation2 + $0x32] sm:$0xff]  ;;  %v1116_v35 = vld [vmem:[#allocation2 + $0x6a] sm:$0xff] }
  0xec   : > { %3230 = vmatpush3.bf16.msra.mxu1 %v3680_v24  ;;  %v4243_v23 = vpack.c.bf16 %v1110_v10, %v1109_v20  ;;  %v1111_v24 = vld [vmem:[#allocation2 + $0x42] sm:$0xff]  ;;  %v3709_v20 = vld [vmem:[%s4389_s6 + $0x238] sm:$0xff]  }
  0xed   : > { %3231 = vmatprep.subr.bf16.mxu1 %v3682_v26  ;;  %v2128_v10 = vld [vmem:[#allocation2 + $0x9d] sm:$0xff] }
  0xee   : > { %3386 = vmatpush3.bf16.msra.mxu0 %v3685_v17  ;;  %v2118_v17 = vld [vmem:[#allocation2 + $0x4d] sm:$0xff] }
  0xef   : > { %3216 = vmatmul.mubr.bf16.gmra.mrb[8].mxu1 %v753_v34  ;;  %3387 = vmatprep.subr.bf16.mxu0 %v3687_v31  ;;  %v1114_v34 = vld [vmem:[#allocation2 + $0x5a] sm:$0xff] }
  0xf0   : > { %3219 = vmatprep.mubr.bf16.mxu1 %v754_v19  ;;  %3232 = vmatpush3.bf16.msra.mxu1 %v3682_v26  ;;  %v4245_v26 = vpack.c.bf16 %v1112_v11, %v1111_v24  ;;  %v1113_v19 = vld [vmem:[#allocation2 + $0x52] sm:$0xff]  ;;  %v2315_v11 = vld [vmem:[#allocation2 + $0x26] sm:$0xff] }
  0xf1   : > { %3233 = vmatprep.subr.bf16.mxu1 %v3684_v37  ;;  %3372 = vmatmul.mubr.bf16.gmra.mrb[4].mxu0 %v4132_v38  ;;  %v1119_v38 = vpack.c.bf16 %v1104_v45, %v1103_v44  ;;  %v4265_v43 = vpack.c.bf16 %v1114_v34, %v1113_v19  ;;  %v1115_v44 = vld [vmem:[#allocation2 + $0x62] sm:$0xff]  ;;  %v2325_v19 = vld [vmem:[#allocation2 + $0x76] sm:$0xff] }
  0xf2   : > { %3388 = vmatpush3.bf16.msra.mxu0 %v3687_v31  ;;  %3375 = vmatprep.mubr.bf16.mxu0 %v4147_v58  ;;  %v1106_v58 = vld [vmem:[#allocation2 + $0x1a] sm:$0xff]  ;;  %v2131_v31 = vpack.c.bf16 %v2118_v17, %v2117_v25  ;;  %v3700_v45 = vld [vmem:[%s4389_s6 + $0xe8] sm:$0xff]   ;;  %v4270_v47 = vpack.c.bf16 %v1116_v35, %v1115_v44 }
  0xf3   : > { %3389 = vmatprep.subr.bf16.mxu0 %v3689_v36  ;;  %v4223_v0 = vpack.c.bf16 %v1106_v58, %v1105_v57  ;;  %v1118_v57 = vld [vmem:[#allocation2 + $0x7a] sm:$0xff]  ;;  %v2319_v24 = vld [vmem:[#allocation2 + $0x46] sm:$0xff]  ;;  %v2320_v25 = vld [vmem:[#allocation2 + $0x4e] sm:$0xff] }
  0xf4   : > { %3234 = vmatpush3.bf16.msra.mxu1 %v3684_v37  ;;  %v4263_v37 = vld [vmem:[%s4389_s6 + $0x210] sm:$0xff]   ;;  %v4289_v58 = vld [vmem:[%s4389_s6 + $0x220] sm:$0xff]  }
  0xf5   : > { %3235 = vmatprep.subr.bf16.mxu1 %v3686_v39  ;;  %v2321_v17 = vld [vmem:[#allocation2 + $0x56] sm:$0xff]  ;;  %v2323_v35 = vld [vmem:[#allocation2 + $0x66] sm:$0xff] }
  0xf6   : > { %3390 = vmatpush3.bf16.msra.mxu0 %v3689_v36  ;;  %v2119_v36 = vld [vmem:[#allocation2 + $0x55] sm:$0xff] }
  0xf7   : > { %3220 = vmatmul.mubr.bf16.gmra.mrb[12].mxu1 %v755_v48  ;;  %3391 = vmatprep.subr.bf16.mxu0 %v3691_v46 }
  0xf8   : > { %3236 = vmatpush3.bf16.msra.mxu1 %v3686_v39  ;;  %3239 = vmatprep.mubr.bf16.mxu1 %v1119_v38  ;;  %v2120_v39 = vld [vmem:[#allocation2 + $0x5d] sm:$0xff] }
  0xf9   : > { %3237 = vmatprep.subr.bf16.mxu1 %v3688_v50  ;;  %3376 = vmatmul.mubr.bf16.gmra.mrb[8].mxu0 %v4152_v61  ;;  %v1107_v61 = vld [vmem:[#allocation2 + $0x22] sm:$0xff]  ;;  %v2132_v48 = vpack.c.bf16 %v2120_v39, %v2119_v36  ;;  %v4278_v38 = vld [vmem:[%s4389_s6 + $0x218] sm:$0xff]  }
  0xfa   : > { %3392 = vmatpush3.bf16.msra.mxu0 %v3691_v46  ;;  %3379 = vmatprep.mubr.bf16.mxu0 %v4165_v9  ;;  %v4225_v40 = vpack.c.bf16 %v1108_v59, %v1107_v61  ;;  %v3694_v9 = vld [vmem:[%s4389_s6 + $0xd0] sm:$0xff]   ;;  %v2125_v61 = vld [vmem:[#allocation2 + $0x85] sm:$0xff] }
  0xfb   : > { %3393 = vmatprep.subr.bf16.mxu0 %v3693_v51  ;;  %v2122_v46 = vld [vmem:[#allocation2 + $0x6d] sm:$0xff]  ;;  %v2326_v36 = vld [vmem:[#allocation2 + $0x7e] sm:$0xff] }
  0xfc   : > { %3238 = vmatpush3.bf16.msra.mxu1 %v3688_v50  ;;  %v2121_v50 = vld [vmem:[#allocation2 + $0x65] sm:$0xff]  ;;  %v1117_v59 = vld [vmem:[#allocation2 + $0x72] sm:$0xff]  ;;  %v2336_v44 = vpack.c.bf16 %v2326_v36, %v2325_v19 }
  0xfd   : > { %3255 = vmatprep.subr.bf16.mxu1 %v3690_v52  ;;  %v1126_v60 = vpack.c.bf16 %v1118_v57, %v1117_v59  ;;  %v2327_v39 = vld [vmem:[#allocation2 + $0x86] sm:$0xff] }
  0xfe   : > { %3394 = vmatpush3.bf16.msra.mxu0 %v3693_v51  ;;  %v2133_v51 = vpack.c.bf16 %v2122_v46, %v2121_v50  ;;  %v2329_v46 = vld [vmem:[#allocation2 + $0x96] sm:$0xff] }
  0xff   : > { %3240 = vmatmul.mubr.bf16.vlgmr.msra.gmra.mrb[0].mxu1 %v4223_v0  ;;  %3395 = vmatprep.subr.bf16.mxu0 %v3695_v62 }
 0x100   : > { %3243 = vmatprep.mubr.bf16.mxu1 %v4225_v40  ;;  %3256 = vmatpush3.bf16.msra.mxu1 %v3690_v52  ;;  %v3702_v52 = vld [vmem:[%s4389_s6 + $0xf0] sm:$0xff]  }
 0x101   : > { %3257 = vmatprep.subr.bf16.mxu1 %v3692_v49  ;;  %3380 = vmatmul.mubr.bf16.gmra.mrb[12].mxu0 %v1934_v6  ;;  %v3707_v6 = vld [vmem:[%s4389_s6 + $0x228] sm:$0xff]  }
 0x102   : > { %3396 = vmatpush3.bf16.msra.mxu0 %v3695_v62  ;;  %3399 = vmatprep.mubr.bf16.mxu0 %v2129_v8  ;;  %v2123_v62 = vld [vmem:[#allocation2 + $0x75] sm:$0xff] }
 0x103   : > { %3397 = vmatprep.subr.bf16.mxu0 %v3697_v7  ;;  %v3708_v8 = vld [vmem:[%s4389_s6 + $0x230] sm:$0xff]  }
 0x104   : > { %3258 = vmatpush3.bf16.msra.mxu1 %v3692_v49  ;;  %v2124_v49 = vld [vmem:[#allocation2 + $0x7d] sm:$0xff] }
 0x105   : > { %3259 = vmatprep.subr.bf16.mxu1 %v3694_v9  ;;  %v2134_v5 = vpack.c.bf16 %v2124_v49, %v2123_v62 }
 0x106   : > { %3398 = vmatpush3.bf16.msra.mxu0 %v3697_v7  ;;  %v2135_v7 = vpack.c.bf16 %v2126_v2, %v2125_v61 }
 0x107   : > { %3244 = vmatmul.mubr.bf16.gmra.mrb[4].mxu1 %v4243_v23  ;;  %3415 = vmatprep.subr.bf16.mxu0 %v4241_v18 }
 0x108   : > { %3247 = vmatprep.mubr.bf16.mxu1 %v4245_v26  ;;  %3260 = vmatpush3.bf16.msra.mxu1 %v3694_v9  ;;  %v2127_v9 = vld [vmem:[#allocation2 + $0x95] sm:$0xff] }
 0x109   : > { %3261 = vmatprep.subr.bf16.mxu1 %v3696_v14  ;;  %3400 = vmatmul.mubr.bf16.vlgmr.msra.gmra.mrb[0].mxu0 %v2130_v28  ;;  %v2322_v28 = vld [vmem:[#allocation2 + $0x5e] sm:$0xff] }
 0x10a   : > { %3416 = vmatpush3.bf16.msra.mxu0 %v4241_v18  ;;  %3403 = vmatprep.mubr.bf16.mxu0 %v2131_v31  ;;  %v2324_v31 = vld [vmem:[#allocation2 + $0x6e] sm:$0xff] }
 0x10b   : > { %3417 = vmatprep.subr.bf16.mxu0 %v4252_v30 }
 0x10c   : > { %3262 = vmatpush3.bf16.msra.mxu1 %v3696_v14  ;;  %v2316_v14 = vld [vmem:[#allocation2 + $0x2e] sm:$0xff] }
 0x10d   : > { %3263 = vmatprep.subr.bf16.mxu1 %v3698_v32  ;;  %v2331_v21 = vpack.c.bf16 %v2316_v14, %v2315_v11 }
 0x10e   : > { %3418 = vmatpush3.bf16.msra.mxu0 %v4252_v30 }
 0x10f   : > { %3248 = vmatmul.mubr.bf16.gmra.mrb[8].mxu1 %v4265_v43  ;;  %3419 = vmatprep.subr.bf16.mxu0 %v4263_v37 }
 0x110   : > { %3251 = vmatprep.mubr.bf16.mxu1 %v4270_v47  ;;  %3264 = vmatpush3.bf16.msra.mxu1 %v3698_v32  ;;  %v1319_v32 = vld [vmem:[#allocation2 + $0x82] sm:$0xff] }
 0x111   : > { %3265 = vmatprep.subr.bf16.mxu1 %v3700_v45  ;;  %3404 = vmatmul.mubr.bf16.gmra.mrb[4].mxu0 %v2132_v48 }
 0x112   : > { %3420 = vmatpush3.bf16.msra.mxu0 %v4263_v37  ;;  %3407 = vmatprep.mubr.bf16.mxu0 %v2133_v51 }
 0x113   : > { %3421 = vmatprep.subr.bf16.mxu0 %v4278_v38 }
 0x114   : > { %3266 = vmatpush3.bf16.msra.mxu1 %v3700_v45 }
 0x115   : > { %3267 = vmatprep.subr.bf16.mxu1 %v3702_v52 }
 0x116   : > { %3422 = vmatpush3.bf16.msra.mxu0 %v4278_v38 }
 0x117   : > { %3252 = vmatmul.mubr.bf16.gmra.mrb[12].mxu1 %v1126_v60  ;;  %3423 = vmatprep.subr.bf16.mxu0 %v4289_v58 }
 0x118   : > { %3268 = vmatpush3.bf16.msra.mxu1 %v3702_v52  ;;  %3271 = vmatprep.mubr.bf16.mxu1 %v4223_v0  ;;  %v2136_v0 = vpack.c.bf16 %v2128_v10, %v2127_v9 }
 0x119   : > { %3269 = vmatprep.subr.bf16.mxu1 %v3704_v63  ;;  %3408 = vmatmul.mubr.bf16.gmra.mrb[8].mxu0 %v2134_v5 }
 0x11a   : > { %3424 = vmatpush3.bf16.msra.mxu0 %v4289_v58  ;;  %3411 = vmatprep.mubr.bf16.mxu0 %v2135_v7 }
 0x11b   : > { %3425 = vmatprep.subr.bf16.mxu0 %v3707_v6 }
 0x11c   : > { %3270 = vmatpush3.bf16.msra.mxu1 %v3704_v63 }
 0x11d   : > { %3447 = vmatprep.subr.bf16.mxu1 %v4241_v18 }
 0x11e   : > { %3426 = vmatpush3.bf16.msra.mxu0 %v3707_v6 }
 0x11f   : > { %3272 = vmatmul.mubr.bf16.vlgmr.msra.gmra.mrb[0].mxu1 %v4225_v40  ;;  %3427 = vmatprep.subr.bf16.mxu0 %v3708_v8  ;;  %v2317_v40 = vld [vmem:[#allocation2 + $0x36] sm:$0xff] }
 0x120   : > { %3275 = vmatprep.mubr.bf16.mxu1 %v4243_v23  ;;  %3455 = vmatpush3.bf16.msra.mxu1 %v4241_v18  ;;  %v2332_v23 = vpack.c.bf16 %v2318_v22, %v2317_v40  ;;  %v2333_v18 = vpack.c.bf16 %v2320_v25, %v2319_v24 }
 0x121   : > { %3448 = vmatprep.subr.bf16.mxu1 %v4252_v30  ;;  %3412 = vmatmul.mubr.bf16.gmra.mrb[12].mxu0 %v2136_v0 }
 0x122   : > { %3428 = vmatpush3.bf16.msra.mxu0 %v3708_v8  ;;  %3431 = vmatprep.mubr.bf16.mxu0 %v2331_v21 }
 0x123   : > { %3429 = vmatprep.subr.bf16.mxu0 %v3709_v20 }
 0x124   : > { %3456 = vmatpush3.bf16.msra.mxu1 %v4252_v30  ;;  %v2334_v30 = vpack.c.bf16 %v2322_v28, %v2321_v17 }
 0x125   : > { %3449 = vmatprep.subr.bf16.mxu1 %v4263_v37 }
 0x126   : > { %3430 = vmatpush3.bf16.msra.mxu0 %v3709_v20 }
 0x127   : > { %3276 = vmatmul.mubr.bf16.gmra.mrb[4].mxu1 %v4245_v26  ;;  %v1320_v26 = vld [vmem:[#allocation2 + $0x8a] sm:$0xff] }
 0x128   : > { %3279 = vmatprep.mubr.bf16.mxu1 %v4265_v43  ;;  %3457 = vmatpush3.bf16.msra.mxu1 %v4263_v37  ;;  %v1328_v34 = vpack.c.bf16 %v1320_v26, %v1319_v32  ;;  %v2335_v37 = vpack.c.bf16 %v2324_v31, %v2323_v35  ;;  %v2328_v43 = vld [vmem:[#allocation2 + $0x8e] sm:$0xff] }
 0x129   : > { %3450 = vmatprep.subr.bf16.mxu1 %v4278_v38  ;;  %3432 = vmatmul.mubr.bf16.vlgmr.msra.gmra.mrb[0].mxu0 %v2332_v23  ;;  %v2337_v45 = vpack.c.bf16 %v2328_v43, %v2327_v39 }
 0x12a   : > { %3435 = vmatprep.mubr.bf16.mxu0 %v2333_v18 }
 0x12c   : > { %3458 = vmatpush3.bf16.msra.mxu1 %v4278_v38 }
 0x12d   : > { %3451 = vmatprep.subr.bf16.mxu1 %v4289_v58 }
 0x12f   : > { %3280 = vmatmul.mubr.bf16.gmra.mrb[8].mxu1 %v4270_v47  ;;  %v2330_v47 = vld [vmem:[#allocation2 + $0x9e] sm:$0xff] }
 0x130   : > { %3283 = vmatprep.mubr.bf16.mxu1 %v1126_v60  ;;  %3459 = vmatpush3.bf16.msra.mxu1 %v4289_v58  ;;  %v2338_v48 = vpack.c.bf16 %v2330_v47, %v2329_v46 }
 0x131   : > { %3452 = vmatprep.subr.bf16.mxu1 %v3707_v6  ;;  %3436 = vmatmul.mubr.bf16.gmra.mrb[4].mxu0 %v2334_v30 }
 0x134   : > { %3460 = vmatpush3.bf16.msra.mxu1 %v3707_v6 }
 0x135   : > { %3453 = vmatprep.subr.bf16.mxu1 %v3708_v8 }
 0x137   : > { %3284 = vmatmul.mubr.bf16.gmra.mrb[12].mxu1 %v1328_v34 }
 0x138   : > { %3461 = vmatpush3.bf16.msra.mxu1 %v3708_v8  ;;  %3439 = vmatprep.mubr.bf16.mxu1 %v2335_v37 }
 0x139   : > { %3454 = vmatprep.subr.bf16.mxu1 %v3709_v20 }
 0x13c   : > { %3462 = vmatpush3.bf16.msra.mxu1 %v3709_v20 }
 0x13f   : > { %3440 = vmatmul.mubr.bf16.vlgmr.msra.gmra.mrb[16].mxu1 %v2336_v44 }
 0x140   : > { %3443 = vmatprep.mubr.bf16.mxu1 %v2337_v45 }
 0x147   : > { %3444 = vmatmul.mubr.bf16.gmra.mrb[20].mxu1 %v2338_v48 }
 0x1ec   : > { %v3409_v50 = vpop.f32.mrb[8].mxu0 }
 0x1ed   : > { %v2268_v38 = vpop.f32.mrb[9].mxu0 }
 0x1ee   : > { %v3410_v51 = vpop.f32.mrb[10].mxu0 }
 0x1ef   : > { %v2271_v52 = vpop.f32.mrb[11].mxu0 }
 0x1f2   : > { %v3273_v57 = vpop.f32.mrb[0].mxu1 }
 0x1f3   : > { %v1428_v58 = vpop.f32.mrb[1].mxu1 }
 0x1f4   : > { %v3274_v59 = vpop.f32.mrb[2].mxu1  ;;  %v3413_v62 = vpop.f32.mrb[12].mxu0 }
 0x1f5   : > { %v1431_v49 = vpop.f32.mrb[3].mxu1  ;;  %v2284_v60 = vpop.f32.mrb[13].mxu0 }
 0x1f6   : > { %v4322_v63 = vpop.f32.mrb[14].mxu0 }
 0x1f7   : > { %v4324_v61 = vpop.f32.mrb[15].mxu0 }
 0x1fa   : > { %v3277_v2 = vpop.f32.mrb[4].mxu1 }
 0x1fb   : > { %v1444_v5 = vpop.f32.mrb[5].mxu1 }
 0x1fc   : > { %v3278_v6 = vpop.f32.mrb[6].mxu1  ;;  %v3433_v7 = vpop.f32.mrb[0].mxu0 }
 0x1fd   : > { %v1447_v8 = vpop.f32.mrb[7].mxu1  ;;  %v3463_v9 = vadd.f32 %v3433_v7, %v3273_v57  ;;  %v2438_v10 = vpop.f32.mrb[1].mxu0 }
 0x1fe   : > { %v3464_v11 = vadd.f32 %v2438_v10, %v1428_v58  ;;  %v3434_v14 = vpop.f32.mrb[2].mxu0 }
 0x1ff   : > { %v2519_v0 = vmul.f32 %v3463_v9, %v3960_v54  ;;  %v3465_v20 = vadd.f32 %v3434_v14, %v3274_v59  ;;  %v2441_v21 = vpop.f32.mrb[3].mxu0 }
 0x200   : > { %v2517_v40 = vmul.f32 %v3464_v11, %v3963_v55  ;;  %v3466_v22 = vadd.f32 %v2441_v21, %v1431_v49 }
 0x201   : > { %2535 = vst [vmem:[%s4330_s24 + $0x10] sm:$0xff] %v2519_v0  ;;  %v2520_v24 = vmul.f32 %v3465_v20, %v3978_v3  ;;  %v2573_v55 = vmul.f32 %v2519_v0, %v2519_v0 }
 0x202   : > { %v3281_v25 = vpop.f32.mrb[8].mxu1  ;;  %2533 = vst [vmem:[%s4330_s24] sm:$0xff] %v2517_v40  ;;  %v2518_v23 = vmul.f32 %v3466_v22, %v3966_v56  ;;  %v2571_v26 = vmul.f32 %v2517_v40, %v2517_v40 }
 0x203   : > { %v3471_v18 = vadd.f32 %v3409_v50, %v3281_v25  ;;  %v1460_v17 = vpop.f32.mrb[9].mxu1  ;;  %2536 = vst [vmem:[%s4330_s24 + $0x18] sm:$0xff] %v2520_v24  ;;  %v2574_v44 = vmul.f32 %v2520_v24, %v2520_v24 }
 0x204   : > { %v3473_v28 = vadd.f32 %v2268_v38, %v1460_v17  ;;  %v3282_v30 = vpop.f32.mrb[10].mxu1  ;;  %2534 = vst [vmem:[%s4330_s24 + $0x8] sm:$0xff] %v2518_v23  ;;  %v2549_v54 = vadd.f32 %v2518_v23, %v2517_v40  ;;  %v2572_v31 = vmul.f32 %v2518_v23, %v2518_v23  ;;  %v3437_v32 = vpop.f32.mrb[4].mxu0 }
 0x205   : > { %v3475_v34 = vadd.f32 %v3410_v51, %v3282_v30  ;;  %v1463_v35 = vpop.f32.mrb[11].mxu1  ;;  %v3467_v37 = vadd.f32 %v3437_v32, %v3277_v2  ;;  %v2454_v3 = vpop.f32.mrb[5].mxu0 }
 0x206   : > { %v3477_v19 = vadd.f32 %v2271_v52, %v1463_v35  ;;  %v2550_v36 = vadd.f32 %v2549_v54, %v2519_v0  ;;  %v2587_v56 = vadd.f32 %v2572_v31, %v2571_v26  ;;  %v3468_v39 = vadd.f32 %v2454_v3, %v1444_v5  ;;  %v3438_v43 = vpop.f32.mrb[6].mxu0 }
 0x207   : > { %v2523_v45 = vmul.f32 %v3467_v37, %v3998_v16  ;;  %v3469_v46 = vadd.f32 %v3438_v43, %v3278_v6  ;;  %v2457_v47 = vpop.f32.mrb[7].mxu0 }
 0x208   : > { %v2588_v48 = vadd.f32 %v2587_v56, %v2573_v55  ;;  %v2521_v50 = vmul.f32 %v3468_v39, %v3981_v4  ;;  %v2551_v38 = vadd.f32 %v2550_v36, %v2520_v24  ;;  %v3470_v51 = vadd.f32 %v2457_v47, %v1447_v8 }
 0x209   : > { %2539 = vst [vmem:[%s4330_s24 + $0x30] sm:$0xff] %v2523_v45  ;;  %v2524_v52 = vmul.f32 %v3469_v46, %v4010_v27  ;;  %v2577_v27 = vmul.f32 %v2523_v45, %v2523_v45 }
 0x20a   : > { %v3285_v57 = vpop.f32.mrb[12].mxu1  ;;  %2537 = vst [vmem:[%s4330_s24 + $0x20] sm:$0xff] %v2521_v50  ;;  %v2552_v58 = vadd.f32 %v2551_v38, %v2521_v50  ;;  %v2575_v59 = vmul.f32 %v2521_v50, %v2521_v50  ;;  %v2589_v49 = vadd.f32 %v2588_v48, %v2574_v44  ;;  %v2522_v2 = vmul.f32 %v3470_v51, %v3995_v15 }
 0x20b   : > { %v3479_v16 = vadd.f32 %v3413_v62, %v3285_v57  ;;  %v1476_v5 = vpop.f32.mrb[13].mxu1  ;;  %2540 = vst [vmem:[%s4330_s24 + $0x38] sm:$0xff] %v2524_v52  ;;  %v2578_v21 = vmul.f32 %v2524_v52, %v2524_v52 }
 0x20c   : > { %v3481_v6 = vadd.f32 %v2284_v60, %v1476_v5  ;;  %v3286_v7 = vpop.f32.mrb[14].mxu1  ;;  %v2590_v9 = vadd.f32 %v2589_v49, %v2575_v59  ;;  %2538 = vst [vmem:[%s4330_s24 + $0x28] sm:$0xff] %v2522_v2  ;;  %v2553_v4 = vadd.f32 %v2552_v58, %v2522_v2  ;;  %v2576_v10 = vmul.f32 %v2522_v2, %v2522_v2 }
 0x20d   : > { %v3483_v8 = vadd.f32 %v4322_v63, %v3286_v7  ;;  %v1479_v11 = vpop.f32.mrb[15].mxu1 }
 0x20e   : > { %v3485_v14 = vadd.f32 %v4324_v61, %v1479_v11  ;;  %v2554_v0 = vadd.f32 %v2553_v4, %v2523_v45  ;;  %v2591_v20 = vadd.f32 %v2590_v9, %v2576_v10 }
 0x210   : > { %v2592_v15 = vadd.f32 %v2591_v20, %v2577_v27  ;;  %v2555_v62 = vadd.f32 %v2554_v0, %v2524_v52 }
 0x212   : > { %v3441_v40 = vpop.f32.mrb[16].mxu1  ;;  %v2593_v60 = vadd.f32 %v2592_v15, %v2578_v21 }
 0x213   : > { %v3472_v22 = vadd.f32 %v3471_v18, %v3441_v40  ;;  %v2470_v24 = vpop.f32.mrb[17].mxu1 }
 0x214   : > { %v3474_v25 = vadd.f32 %v3473_v28, %v2470_v24  ;;  %v3442_v23 = vpop.f32.mrb[18].mxu1 }
 0x215   : > { %v2527_v63 = vmul.f32 %v3472_v22, %v4033_v42  ;;  %v3476_v17 = vadd.f32 %v3475_v34, %v3442_v23  ;;  %v2473_v30 = vpop.f32.mrb[19].mxu1 }
 0x216   : > { %v2525_v61 = vmul.f32 %v3474_v25, %v4013_v29  ;;  %v3478_v26 = vadd.f32 %v3477_v19, %v2473_v30 }
 0x217   : > { %2543 = vst [vmem:[%s4330_s24 + $0x50] sm:$0xff] %v2527_v63  ;;  %v2528_v54 = vmul.f32 %v3476_v17, %v4049_v53  ;;  %v2581_v29 = vmul.f32 %v2527_v63, %v2527_v63 }
 0x218   : > { %2541 = vst [vmem:[%s4330_s24 + $0x40] sm:$0xff] %v2525_v61  ;;  %v2556_v31 = vadd.f32 %v2555_v62, %v2525_v61  ;;  %v2579_v32 = vmul.f32 %v2525_v61, %v2525_v61  ;;  %v2526_v55 = vmul.f32 %v3478_v26, %v4030_v41 }
 0x219   : > { %2544 = vst [vmem:[%s4330_s24 + $0x58] sm:$0xff] %v2528_v54  ;;  %v2582_v56 = vmul.f32 %v2528_v54, %v2528_v54 }
 0x21a   : > { %v2594_v18 = vadd.f32 %v2593_v60, %v2579_v32  ;;  %2542 = vst [vmem:[%s4330_s24 + $0x48] sm:$0xff] %v2526_v55  ;;  %v2557_v28 = vadd.f32 %v2556_v31, %v2526_v55  ;;  %v2580_v35 = vmul.f32 %v2526_v55, %v2526_v55  ;;  %v3445_v37 = vpop.f32.mrb[20].mxu1 }
 0x21b   : > { %v3480_v42 = vadd.f32 %v3479_v16, %v3445_v37  ;;  %v2486_v34 = vpop.f32.mrb[21].mxu1 }
 0x21c   : > { %v2558_v3 = vadd.f32 %v2557_v28, %v2527_v63  ;;  %v2595_v19 = vadd.f32 %v2594_v18, %v2580_v35  ;;  %v3482_v36 = vadd.f32 %v3481_v6, %v2486_v34  ;;  %v3446_v53 = vpop.f32.mrb[22].mxu1 }
 0x21d   : > { %v2531_v39 = vmul.f32 %v3480_v42, %v4079_v13  ;;  %v3484_v41 = vadd.f32 %v3483_v8, %v3446_v53  ;;  %v2489_v43 = vpop.f32.mrb[23].mxu1 }
 0x21e   : > { %v2596_v44 = vadd.f32 %v2595_v19, %v2581_v29  ;;  %v2529_v45 = vmul.f32 %v3482_v36, %v4062_v1  ;;  %v2559_v46 = vadd.f32 %v2558_v3, %v2528_v54  ;;  %v3486_v47 = vadd.f32 %v3485_v14, %v2489_v43 }
 0x21f   : > { %2547 = vst [vmem:[%s4330_s24 + $0x70] sm:$0xff] %v2531_v39  ;;  %v2532_v48 = vmul.f32 %v3484_v41, %v4089_v33  ;;  %v2585_v59 = vmul.f32 %v2531_v39, %v2531_v39 }
 0x220   : > { %2545 = vst [vmem:[%s4330_s24 + $0x60] sm:$0xff] %v2529_v45  ;;  %v2560_v50 = vadd.f32 %v2559_v46, %v2529_v45  ;;  %v2583_v38 = vmul.f32 %v2529_v45, %v2529_v45  ;;  %v2597_v51 = vadd.f32 %v2596_v44, %v2582_v56  ;;  %v2530_v52 = vmul.f32 %v3486_v47, %v4076_v12 }
 0x221   : > { %2548 = vst [vmem:[%s4330_s24 + $0x78] sm:$0xff] %v2532_v48  ;;  %v2586_v1 = vmul.f32 %v2532_v48, %v2532_v48 }
 0x222   : > { %v2598_v57 = vadd.f32 %v2597_v51, %v2583_v38  ;;  %2546 = vst [vmem:[%s4330_s24 + $0x68] sm:$0xff] %v2530_v52  ;;  %v2561_v13 = vadd.f32 %v2560_v50, %v2530_v52  ;;  %v2584_v58 = vmul.f32 %v2530_v52, %v2530_v52 }
 0x224   : > { %v2562_v49 = vadd.f32 %v2561_v13, %v2531_v39  ;;  %v2599_v2 = vadd.f32 %v2598_v57, %v2584_v58 }
 0x226   : > { %v2563_v16 = vadd.f32 %v2562_v49, %v2532_v48  ;;  %v2600_v5 = vadd.f32 %v2599_v2, %v2585_v59 }
 0x228   : > { %v2564_v33 = vrot.slane %v2563_v16, 4  ;;  %v2601_v6 = vadd.f32 %v2600_v5, %v2586_v1 }
 0x22a   : > { %v2565_v7 = vadd.f32 %v2564_v33, %v2563_v16  ;;  %v2602_v9 = vrot.slane %v2601_v6, 4 }
 0x22c   : > { %v2566_v4 = vrot.slane %v2565_v7, 2  ;;  %v2603_v10 = vadd.f32 %v2602_v9, %v2601_v6 }
 0x22e   : > { %v2567_v12 = vadd.f32 %v2566_v4, %v2565_v7  ;;  %v2604_v8 = vrot.slane %v2603_v10, 2 }
 0x230   : > { %v2568_v11 = vrot.slane %v2567_v12, 1  ;;  %v2605_v27 = vadd.f32 %v2604_v8, %v2603_v10 }
 0x232   : > { %v2569_v14 = vadd.f32 %v2568_v11, %v2567_v12  ;;  %v2606_v0 = vrot.slane %v2605_v27, 1 }
 0x234   : > { %2570 = vst [vmem:[%s3879_s19] sm:$0x1] %v2569_v14  ;;  %v2607_v20 = vadd.f32 %v2606_v0, %v2605_v27 }
 0x236   : > { %2608 = vst [vmem:[%s3879_s19 + $0x1] sm:$0x1] %v2607_v20 }
 0x237 PF: > { %s19_s4 = sadd.s32 1, %s3748_s4   ;;  %s4394_s27 = smov %s3740_s29 }
 0x238   : > { %p16_p12 = scmp.ge.s32.totalorder %s19_s4, 8   ;;  %s4395_s28 = smov %s3744_s30 }
 0x239   : > { %s4396_s29 = smov %s4399_s5  ;;  %s4397_s30 = smov %s4403_s9 }
 0x23a   :  { %18 = sbr.rel (!%p16_p12) target bundleno = 3 (0x3), region = 107 }

</bundles_post_ra>
